<compile_context>
chip_gen: v7x
topology: tpu7x:2x2x1
jax: 0.10.0
libtpu: 0.0.40
codegen_flags: <defaults>
</compile_context>

<pallas_src>
import jax
import jax.numpy as jnp
from jax import lax
from jax.experimental import pallas as pl
from jax.experimental.pallas import tpu as pltpu


def mnist_fused_kernel(x_ref, s1e_ref, s1o_ref, b1_ref, s2e_ref, s2o_ref,
                       b2_ref, fw1_ref, fb1_ref, fw2_ref, fb2_ref, fw3_ref,
                       fb3_ref, o_ref):
    # x_ref:  (BT, 28, 28) bf16
    # s1e/s1o:(5, 28, 72)  bf16   b1_ref: (1, 72)  f32
    # s2e/s2o:(5, 72, 64)  bf16   b2_ref: (1, 64)  f32
    # fw1:(256,128) fw2/fw3:(128,128) bf16   fb1/fb2/fb3:(1,128) f32
    # o_ref:  (BT, 128) f32
    BT = x_ref.shape[0]
    x = x_ref[...]                                          # (BT, 28, 28) bf16

    # ---- conv1: 5 per-row-tap MXU matmuls, even/odd-ow column slabs --------
    # acc_e[b*24+oh, ow1p*6+c] = conv1 output at ow = 2*ow1p (pre-bias);
    # acc_o is the same at ow = 2*ow1p + 1.
    acc_e = None
    acc_o = None
    for di in range(5):
        xi = x[:, di:di + 24, :].reshape(BT * 24, 28)       # sublane-shifted
        pe = jnp.dot(xi, s1e_ref[di], preferred_element_type=jnp.float32)
        po = jnp.dot(xi, s1o_ref[di], preferred_element_type=jnp.float32)
        acc_e = pe if di == 0 else acc_e + pe
        acc_o = po if di == 0 else acc_o + po

    # width max-pool == elementwise max of the even/odd column slabs
    aw = jnp.maximum(acc_e, acc_o)                          # (BT*24, 72)
    # height max-pool over sublane row pairs
    aw = aw.reshape(BT, 12, 2, 72)
    a = jnp.maximum(aw[:, :, 0, :], aw[:, :, 1, :])         # (BT, 12, 72)
    # bias add commutes with max-pool; ReLU after pool (as in torch)
    p1 = jnp.maximum(a + b1_ref[...], 0.0)                  # (BT, 12, 72) f32
    p1 = p1.astype(jnp.bfloat16)

    # ---- conv2: same per-row-tap even/odd structure -------------------------
    # lanes of p1 are ow1p*6 + ci, exactly the contraction rows of s2e/s2o.
    he = None
    ho = None
    for di in range(5):
        li = p1[:, di:di + 8, :].reshape(BT * 8, 72)
        pe = jnp.dot(li, s2e_ref[di], preferred_element_type=jnp.float32)
        po = jnp.dot(li, s2o_ref[di], preferred_element_type=jnp.float32)
        he = pe if di == 0 else he + pe
        ho = po if di == 0 else ho + po

    hw = jnp.maximum(he, ho)                                # (BT*8, 64)
    hw = hw.reshape(BT, 4, 2, 64)
    h = jnp.maximum(hw[:, :, 0, :], hw[:, :, 1, :])         # (BT, 4, 64)
    feat = jnp.maximum(h + b2_ref[...], 0.0)                # (BT, 4, 64) f32
    feat = feat.astype(jnp.bfloat16)
    flat = feat.reshape(BT, 256)                 # f = oh2p*64 + w2p*16 + cout

    # ---- classifier: three lane-dense MXU matmuls + masked softmax ---------
    h1 = jnp.maximum(jnp.dot(flat, fw1_ref[...],
                             preferred_element_type=jnp.float32)
                     + fb1_ref[...], 0.0)                   # (BT, 128)
    h2 = jnp.maximum(jnp.dot(h1.astype(jnp.bfloat16), fw2_ref[...],
                             preferred_element_type=jnp.float32)
                     + fb2_ref[...], 0.0)                   # (BT, 128)
    logits = jnp.dot(h2.astype(jnp.bfloat16), fw3_ref[...],
                     preferred_element_type=jnp.float32) + fb3_ref[...]

    lane = lax.broadcasted_iota(jnp.int32, (BT, 128), 1)
    logits = jnp.where(lane < 10, logits, -1e30)            # mask padded lanes
    m = jnp.max(logits, axis=-1, keepdims=True)
    e = jnp.exp(logits - m)
    s = jnp.sum(e, axis=-1, keepdims=True)
    o_ref[...] = e * pl.reciprocal(s, approx=True)          # (BT, 128)


def mnist_net_forward(x_nchw, params, *, batch_tile=128):
    # batch_tile=128 fills MXU rows and amortizes per-grid-step overhead for
    # real batches; it is clamped to the (8-padded) batch for tiny batches.
    # On v6e (128 MiB VMEM) batch_tile=256 also fits; keep <=128 on v7x.
    B = x_nchw.shape[0]
    bt = min(batch_tile, ((B + 7) // 8) * 8)
    bt = max(8, (bt // 8) * 8)
    B_pad = ((B + bt - 1) // bt) * bt

    hp = lax.Precision.HIGHEST
    x = x_nchw[:, 0].astype(jnp.bfloat16)                   # (B, 28, 28)
    if B_pad != B:
        x = jnp.pad(x, ((0, B_pad - B), (0, 0), (0, 0)))

    # --- conv1 weights -> per-tap even/odd Toeplitz slabs (5, 28, 72) -------
    # s1e[di, j, ow1p*6 + c] = w1[c, di, j - 2*ow1p]   (0 <= j - 2*ow1p <= 4)
    # s1o[di, j, ow1p*6 + c] = w1[c, di, j - (2*ow1p+1)]
    w1 = params["conv1_w"][:, 0].astype(jnp.float32)        # (6, 5, 5) [c,i,d]
    jj = jnp.arange(28)[:, None]
    kk = jnp.arange(12)[None, :]
    E_e = jnp.stack([(jj == 2 * kk + d).astype(jnp.float32) for d in range(5)])
    E_o = jnp.stack([(jj == 2 * kk + 1 + d).astype(jnp.float32)
                     for d in range(5)])                    # (5, 28, 12)
    s1e = jnp.einsum("djk,cid->ijkc", E_e, w1,
                     precision=hp).reshape(5, 28, 72).astype(jnp.bfloat16)
    s1o = jnp.einsum("djk,cid->ijkc", E_o, w1,
                     precision=hp).reshape(5, 28, 72).astype(jnp.bfloat16)
    b1l = jnp.tile(params["conv1_b"].astype(jnp.float32), 12).reshape(1, 72)

    # --- conv2 weights -> per-tap even/odd slabs (5, 72, 64) ----------------
    # s2e[di, w*6 + ci, k*16 + cout] = w2[cout, ci, di, w - 2k]
    w2 = params["conv2_w"].astype(jnp.float32)              # (16, 6, 5, 5)
    ww = jnp.arange(12)[:, None]
    kk2 = jnp.arange(4)[None, :]
    F_e = jnp.stack([(ww == 2 * kk2 + d).astype(jnp.float32) for d in range(5)])
    F_o = jnp.stack([(ww == 2 * kk2 + 1 + d).astype(jnp.float32)
                     for d in range(5)])                    # (5, 12, 4)
    s2e = jnp.einsum("dwk,ocid->iwcko", F_e, w2,
                     precision=hp).reshape(5, 72, 64).astype(jnp.bfloat16)
    s2o = jnp.einsum("dwk,ocid->iwcko", F_o, w2,
                     precision=hp).reshape(5, 72, 64).astype(jnp.bfloat16)
    b2l = jnp.tile(params["conv2_b"].astype(jnp.float32), 4).reshape(1, 64)

    # --- FC weights: permute fc1 rows to the kernel's (h, w, c) flatten order
    # (feature index in-kernel is oh2p*64 + w2p*16 + cout), pad out dims to 128
    fw1 = params["fc1_w"].astype(jnp.float32).T.reshape(16, 4, 4, 120)
    fw1 = jnp.transpose(fw1, (1, 2, 0, 3)).reshape(256, 120)
    fw1 = jnp.pad(fw1, ((0, 0), (0, 8))).astype(jnp.bfloat16)          # (256,128)
    fb1 = jnp.pad(params["fc1_b"].astype(jnp.float32), (0, 8)).reshape(1, 128)
    fw2 = jnp.pad(params["fc2_w"].astype(jnp.float32).T,
                  ((0, 8), (0, 44))).astype(jnp.bfloat16)              # (128,128)
    fb2 = jnp.pad(params["fc2_b"].astype(jnp.float32), (0, 44)).reshape(1, 128)
    fw3 = jnp.pad(params["fc3_w"].astype(jnp.float32).T,
                  ((0, 44), (0, 118))).astype(jnp.bfloat16)            # (128,128)
    fb3 = jnp.pad(params["fc3_b"].astype(jnp.float32), (0, 118)).reshape(1, 128)

    out = pl.pallas_call(
        mnist_fused_kernel,
        out_shape=jax.ShapeDtypeStruct((B_pad, 128), jnp.float32),
        grid=(B_pad // bt,),
        in_specs=[
            pl.BlockSpec((bt, 28, 28), lambda i: (i, 0, 0)),   # x (batch tiled)
            pl.BlockSpec((5, 28, 72), lambda i: (0, 0, 0)),    # s1e
            pl.BlockSpec((5, 28, 72), lambda i: (0, 0, 0)),    # s1o
            pl.BlockSpec((1, 72), lambda i: (0, 0)),           # b1
            pl.BlockSpec((5, 72, 64), lambda i: (0, 0, 0)),    # s2e
            pl.BlockSpec((5, 72, 64), lambda i: (0, 0, 0)),    # s2o
            pl.BlockSpec((1, 64), lambda i: (0, 0)),           # b2
            pl.BlockSpec((256, 128), lambda i: (0, 0)),        # fw1
            pl.BlockSpec((1, 128), lambda i: (0, 0)),          # fb1
            pl.BlockSpec((128, 128), lambda i: (0, 0)),        # fw2
            pl.BlockSpec((1, 128), lambda i: (0, 0)),          # fb2
            pl.BlockSpec((128, 128), lambda i: (0, 0)),        # fw3
            pl.BlockSpec((1, 128), lambda i: (0, 0)),          # fb3
        ],
        out_specs=pl.BlockSpec((bt, 128), lambda i: (i, 0)),
        compiler_params=pltpu.CompilerParams(
            dimension_semantics=("parallel",),
            vmem_limit_bytes=48 * 1024 * 1024,   # <= ~48 MiB for v7x's 64 MiB/TC
        ),
    )(x, s1e, s1o, b1l, s2e, s2o, b2l, fw1, fb1, fw2, fb2, fw3, fb3)

    return out[:B, :10]


def reference_forward(x_nchw, params):
    # Plain-JAX reference (matches the PyTorch forward semantics).
    dn1 = lax.conv_dimension_numbers(x_nchw.shape, params["conv1_w"].shape,
                                     ("NCHW", "OIHW", "NCHW"))
    y = lax.conv_general_dilated(x_nchw, params["conv1_w"], (1, 1), "VALID",
                                 dimension_numbers=dn1,
                                 precision=lax.Precision.HIGHEST)
    y = y + params["conv1_b"][None, :, None, None]
    y = lax.reduce_window(y, -jnp.inf, lax.max, (1, 1, 2, 2), (1, 1, 2, 2),
                          "VALID")
    y = jnp.maximum(y, 0.0)
    dn2 = lax.conv_dimension_numbers(y.shape, params["conv2_w"].shape,
                                     ("NCHW", "OIHW", "NCHW"))
    y = lax.conv_general_dilated(y, params["conv2_w"], (1, 1), "VALID",
                                 dimension_numbers=dn2,
                                 precision=lax.Precision.HIGHEST)
    y = y + params["conv2_b"][None, :, None, None]
    y = lax.reduce_window(y, -jnp.inf, lax.max, (1, 1, 2, 2), (1, 1, 2, 2),
                          "VALID")
    y = jnp.maximum(y, 0.0)
    y = y.reshape(y.shape[0], -1)
    y = jnp.maximum(y @ params["fc1_w"].T + params["fc1_b"], 0.0)
    y = jnp.maximum(y @ params["fc2_w"].T + params["fc2_b"], 0.0)
    logits = y @ params["fc3_w"].T + params["fc3_b"]
    return jax.nn.softmax(logits, axis=1)


if __name__ == "__main__":
    key = jax.random.PRNGKey(0)
    keys = jax.random.split(key, 11)
    B = 2  # 28x28 input is fixed by the architecture (flatten 16*4*4)
    x = jax.random.normal(keys[0], (B, 1, 28, 28), jnp.float32)
    params = {
        "conv1_w": 0.1 * jax.random.normal(keys[1], (6, 1, 5, 5), jnp.float32),
        "conv1_b": 0.1 * jax.random.normal(keys[2], (6,), jnp.float32),
        "conv2_w": 0.1 * jax.random.normal(keys[3], (16, 6, 5, 5), jnp.float32),
        "conv2_b": 0.1 * jax.random.normal(keys[4], (16,), jnp.float32),
        "fc1_w": 0.05 * jax.random.normal(keys[5], (120, 256), jnp.float32),
        "fc1_b": 0.05 * jax.random.normal(keys[6], (120,), jnp.float32),
        "fc2_w": 0.05 * jax.random.normal(keys[7], (84, 120), jnp.float32),
        "fc2_b": 0.05 * jax.random.normal(keys[8], (84,), jnp.float32),
        "fc3_w": 0.05 * jax.random.normal(keys[9], (10, 84), jnp.float32),
        "fc3_b": 0.05 * jax.random.normal(keys[10], (10,), jnp.float32),
    }

    out = jax.block_until_ready(jax.jit(mnist_net_forward)(x, params))
    ref = jax.block_until_ready(reference_forward(x, params))

    assert out.shape == (B, 10)
    # approx reciprocal + bf16 operands: row sums ~1 to ~1e-3, values to ~1e-3
    assert bool(jnp.allclose(jnp.sum(out, axis=1), 1.0, atol=2e-3))
    assert bool(jnp.allclose(out, ref, atol=2e-3, rtol=2e-2))
    print("KERNEL_OK")
</pallas_src>

<mosaic_0001>
module attributes {stable_mosaic.version = 11 : i64} {
  func.func @mnist_fused_kernel(%arg0: i32, %arg1: memref<8x28x28xbf16, #tpu.memory_space<vmem>>, %arg2: memref<5x28x72xbf16, #tpu.memory_space<vmem>>, %arg3: memref<5x28x72xbf16, #tpu.memory_space<vmem>>, %arg4: memref<1x72xf32, #tpu.memory_space<vmem>>, %arg5: memref<5x72x64xbf16, #tpu.memory_space<vmem>>, %arg6: memref<5x72x64xbf16, #tpu.memory_space<vmem>>, %arg7: memref<1x64xf32, #tpu.memory_space<vmem>>, %arg8: memref<256x128xbf16, #tpu.memory_space<vmem>>, %arg9: memref<1x128xf32, #tpu.memory_space<vmem>>, %arg10: memref<128x128xbf16, #tpu.memory_space<vmem>>, %arg11: memref<1x128xf32, #tpu.memory_space<vmem>>, %arg12: memref<128x128xbf16, #tpu.memory_space<vmem>>, %arg13: memref<1x128xf32, #tpu.memory_space<vmem>>, %arg14: memref<8x128xf32, #tpu.memory_space<vmem>>) attributes {dimension_semantics = [#tpu.dimension_semantics<parallel>], iteration_bounds = array<i64: 1>, scalar_prefetch = 0 : i64, scratch_operands = 0 : i64, tpu.core_type = #tpu.core_type<tc>, window_params = [{transform_indices = @transform_0, window_bounds = array<i64: 8, 28, 28>}, {pipeline_mode = #tpu.pipeline_mode<synchronous>, transform_indices = @transform_1, window_bounds = array<i64: 5, 28, 72>}, {pipeline_mode = #tpu.pipeline_mode<synchronous>, transform_indices = @transform_2, window_bounds = array<i64: 5, 28, 72>}, {pipeline_mode = #tpu.pipeline_mode<synchronous>, transform_indices = @transform_3, window_bounds = array<i64: 1, 72>}, {pipeline_mode = #tpu.pipeline_mode<synchronous>, transform_indices = @transform_4, window_bounds = array<i64: 5, 72, 64>}, {pipeline_mode = #tpu.pipeline_mode<synchronous>, transform_indices = @transform_5, window_bounds = array<i64: 5, 72, 64>}, {pipeline_mode = #tpu.pipeline_mode<synchronous>, transform_indices = @transform_6, window_bounds = array<i64: 1, 64>}, {pipeline_mode = #tpu.pipeline_mode<synchronous>, transform_indices = @transform_7, window_bounds = array<i64: 256, 128>}, {pipeline_mode = #tpu.pipeline_mode<synchronous>, transform_indices = @transform_8, window_bounds = array<i64: 1, 128>}, {pipeline_mode = #tpu.pipeline_mode<synchronous>, transform_indices = @transform_9, window_bounds = array<i64: 128, 128>}, {pipeline_mode = #tpu.pipeline_mode<synchronous>, transform_indices = @transform_10, window_bounds = array<i64: 1, 128>}, {pipeline_mode = #tpu.pipeline_mode<synchronous>, transform_indices = @transform_11, window_bounds = array<i64: 128, 128>}, {pipeline_mode = #tpu.pipeline_mode<synchronous>, transform_indices = @transform_12, window_bounds = array<i64: 1, 128>}, {transform_indices = @transform_13, window_bounds = array<i64: 8, 128>}]} {
    %c0 = arith.constant 0 : index
    %c0_0 = arith.constant 0 : index
    %c0_1 = arith.constant 0 : index
    %0 = vector.load %arg1[%c0, %c0_0, %c0_1] : memref<8x28x28xbf16, #tpu.memory_space<vmem>>, vector<8x28x28xbf16>
    %1 = vector.extract_strided_slice %0 {offsets = [0, 0, 0], sizes = [8, 24, 28], strides = [1, 1, 1]} : vector<8x28x28xbf16> to vector<8x24x28xbf16>
    %2 = vector.shape_cast %1 : vector<8x24x28xbf16> to vector<192x28xbf16>
    %c0_2 = arith.constant 0 : index
    %c0_3 = arith.constant 0 : index
    %c0_4 = arith.constant 0 : index
    %3 = vector.load %arg2[%c0_2, %c0_3, %c0_4] : memref<5x28x72xbf16, #tpu.memory_space<vmem>>, vector<1x28x72xbf16>
    %4 = vector.shape_cast %3 : vector<1x28x72xbf16> to vector<28x72xbf16>
    %cst = arith.constant dense<0.000000e+00> : vector<192x72xf32>
    %5 = tpu.matmul %2, %4, %cst {dimension_numbers = #tpu.dot_dimension_numbers<[1], [0], [0], [1], [0, 0, 1, 1], [], []>} : vector<192x28xbf16>, vector<28x72xbf16>, vector<192x72xf32> -> vector<192x72xf32>
    %c0_5 = arith.constant 0 : index
    %c0_6 = arith.constant 0 : index
    %c0_7 = arith.constant 0 : index
    %6 = vector.load %arg3[%c0_5, %c0_6, %c0_7] : memref<5x28x72xbf16, #tpu.memory_space<vmem>>, vector<1x28x72xbf16>
    %7 = vector.shape_cast %6 : vector<1x28x72xbf16> to vector<28x72xbf16>
    %cst_8 = arith.constant dense<0.000000e+00> : vector<192x72xf32>
    %8 = tpu.matmul %2, %7, %cst_8 {dimension_numbers = #tpu.dot_dimension_numbers<[1], [0], [0], [1], [0, 0, 1, 1], [], []>} : vector<192x28xbf16>, vector<28x72xbf16>, vector<192x72xf32> -> vector<192x72xf32>
    %9 = vector.extract_strided_slice %0 {offsets = [0, 1, 0], sizes = [8, 24, 28], strides = [1, 1, 1]} : vector<8x28x28xbf16> to vector<8x24x28xbf16>
    %10 = vector.shape_cast %9 : vector<8x24x28xbf16> to vector<192x28xbf16>
    %c1 = arith.constant 1 : index
    %c0_9 = arith.constant 0 : index
    %c0_10 = arith.constant 0 : index
    %11 = vector.load %arg2[%c1, %c0_9, %c0_10] : memref<5x28x72xbf16, #tpu.memory_space<vmem>>, vector<1x28x72xbf16>
    %12 = vector.shape_cast %11 : vector<1x28x72xbf16> to vector<28x72xbf16>
    %cst_11 = arith.constant dense<0.000000e+00> : vector<192x72xf32>
    %13 = tpu.matmul %10, %12, %cst_11 {dimension_numbers = #tpu.dot_dimension_numbers<[1], [0], [0], [1], [0, 0, 1, 1], [], []>} : vector<192x28xbf16>, vector<28x72xbf16>, vector<192x72xf32> -> vector<192x72xf32>
    %c1_12 = arith.constant 1 : index
    %c0_13 = arith.constant 0 : index
    %c0_14 = arith.constant 0 : index
    %14 = vector.load %arg3[%c1_12, %c0_13, %c0_14] : memref<5x28x72xbf16, #tpu.memory_space<vmem>>, vector<1x28x72xbf16>
    %15 = vector.shape_cast %14 : vector<1x28x72xbf16> to vector<28x72xbf16>
    %cst_15 = arith.constant dense<0.000000e+00> : vector<192x72xf32>
    %16 = tpu.matmul %10, %15, %cst_15 {dimension_numbers = #tpu.dot_dimension_numbers<[1], [0], [0], [1], [0, 0, 1, 1], [], []>} : vector<192x28xbf16>, vector<28x72xbf16>, vector<192x72xf32> -> vector<192x72xf32>
    %17 = arith.addf %5, %13 : vector<192x72xf32>
    %18 = arith.addf %8, %16 : vector<192x72xf32>
    %19 = vector.extract_strided_slice %0 {offsets = [0, 2, 0], sizes = [8, 24, 28], strides = [1, 1, 1]} : vector<8x28x28xbf16> to vector<8x24x28xbf16>
    %20 = vector.shape_cast %19 : vector<8x24x28xbf16> to vector<192x28xbf16>
    %c2 = arith.constant 2 : index
    %c0_16 = arith.constant 0 : index
    %c0_17 = arith.constant 0 : index
    %21 = vector.load %arg2[%c2, %c0_16, %c0_17] : memref<5x28x72xbf16, #tpu.memory_space<vmem>>, vector<1x28x72xbf16>
    %22 = vector.shape_cast %21 : vector<1x28x72xbf16> to vector<28x72xbf16>
    %cst_18 = arith.constant dense<0.000000e+00> : vector<192x72xf32>
    %23 = tpu.matmul %20, %22, %cst_18 {dimension_numbers = #tpu.dot_dimension_numbers<[1], [0], [0], [1], [0, 0, 1, 1], [], []>} : vector<192x28xbf16>, vector<28x72xbf16>, vector<192x72xf32> -> vector<192x72xf32>
    %c2_19 = arith.constant 2 : index
    %c0_20 = arith.constant 0 : index
    %c0_21 = arith.constant 0 : index
    %24 = vector.load %arg3[%c2_19, %c0_20, %c0_21] : memref<5x28x72xbf16, #tpu.memory_space<vmem>>, vector<1x28x72xbf16>
    %25 = vector.shape_cast %24 : vector<1x28x72xbf16> to vector<28x72xbf16>
    %cst_22 = arith.constant dense<0.000000e+00> : vector<192x72xf32>
    %26 = tpu.matmul %20, %25, %cst_22 {dimension_numbers = #tpu.dot_dimension_numbers<[1], [0], [0], [1], [0, 0, 1, 1], [], []>} : vector<192x28xbf16>, vector<28x72xbf16>, vector<192x72xf32> -> vector<192x72xf32>
    %27 = arith.addf %17, %23 : vector<192x72xf32>
    %28 = arith.addf %18, %26 : vector<192x72xf32>
    %29 = vector.extract_strided_slice %0 {offsets = [0, 3, 0], sizes = [8, 24, 28], strides = [1, 1, 1]} : vector<8x28x28xbf16> to vector<8x24x28xbf16>
    %30 = vector.shape_cast %29 : vector<8x24x28xbf16> to vector<192x28xbf16>
    %c3 = arith.constant 3 : index
    %c0_23 = arith.constant 0 : index
    %c0_24 = arith.constant 0 : index
    %31 = vector.load %arg2[%c3, %c0_23, %c0_24] : memref<5x28x72xbf16, #tpu.memory_space<vmem>>, vector<1x28x72xbf16>
    %32 = vector.shape_cast %31 : vector<1x28x72xbf16> to vector<28x72xbf16>
    %cst_25 = arith.constant dense<0.000000e+00> : vector<192x72xf32>
    %33 = tpu.matmul %30, %32, %cst_25 {dimension_numbers = #tpu.dot_dimension_numbers<[1], [0], [0], [1], [0, 0, 1, 1], [], []>} : vector<192x28xbf16>, vector<28x72xbf16>, vector<192x72xf32> -> vector<192x72xf32>
    %c3_26 = arith.constant 3 : index
    %c0_27 = arith.constant 0 : index
    %c0_28 = arith.constant 0 : index
    %34 = vector.load %arg3[%c3_26, %c0_27, %c0_28] : memref<5x28x72xbf16, #tpu.memory_space<vmem>>, vector<1x28x72xbf16>
    %35 = vector.shape_cast %34 : vector<1x28x72xbf16> to vector<28x72xbf16>
    %cst_29 = arith.constant dense<0.000000e+00> : vector<192x72xf32>
    %36 = tpu.matmul %30, %35, %cst_29 {dimension_numbers = #tpu.dot_dimension_numbers<[1], [0], [0], [1], [0, 0, 1, 1], [], []>} : vector<192x28xbf16>, vector<28x72xbf16>, vector<192x72xf32> -> vector<192x72xf32>
    %37 = arith.addf %27, %33 : vector<192x72xf32>
    %38 = arith.addf %28, %36 : vector<192x72xf32>
    %39 = vector.extract_strided_slice %0 {offsets = [0, 4, 0], sizes = [8, 24, 28], strides = [1, 1, 1]} : vector<8x28x28xbf16> to vector<8x24x28xbf16>
    %40 = vector.shape_cast %39 : vector<8x24x28xbf16> to vector<192x28xbf16>
    %c4 = arith.constant 4 : index
    %c0_30 = arith.constant 0 : index
    %c0_31 = arith.constant 0 : index
    %41 = vector.load %arg2[%c4, %c0_30, %c0_31] : memref<5x28x72xbf16, #tpu.memory_space<vmem>>, vector<1x28x72xbf16>
    %42 = vector.shape_cast %41 : vector<1x28x72xbf16> to vector<28x72xbf16>
    %cst_32 = arith.constant dense<0.000000e+00> : vector<192x72xf32>
    %43 = tpu.matmul %40, %42, %cst_32 {dimension_numbers = #tpu.dot_dimension_numbers<[1], [0], [0], [1], [0, 0, 1, 1], [], []>} : vector<192x28xbf16>, vector<28x72xbf16>, vector<192x72xf32> -> vector<192x72xf32>
    %c4_33 = arith.constant 4 : index
    %c0_34 = arith.constant 0 : index
    %c0_35 = arith.constant 0 : index
    %44 = vector.load %arg3[%c4_33, %c0_34, %c0_35] : memref<5x28x72xbf16, #tpu.memory_space<vmem>>, vector<1x28x72xbf16>
    %45 = vector.shape_cast %44 : vector<1x28x72xbf16> to vector<28x72xbf16>
    %cst_36 = arith.constant dense<0.000000e+00> : vector<192x72xf32>
    %46 = tpu.matmul %40, %45, %cst_36 {dimension_numbers = #tpu.dot_dimension_numbers<[1], [0], [0], [1], [0, 0, 1, 1], [], []>} : vector<192x28xbf16>, vector<28x72xbf16>, vector<192x72xf32> -> vector<192x72xf32>
    %47 = arith.addf %37, %43 : vector<192x72xf32>
    %48 = arith.addf %38, %46 : vector<192x72xf32>
    %49 = arith.maximumf %47, %48 : vector<192x72xf32>
    %50 = vector.shape_cast %49 : vector<192x72xf32> to vector<8x12x2x72xf32>
    %51 = vector.extract_strided_slice %50 {offsets = [0, 0, 0, 0], sizes = [8, 12, 1, 72], strides = [1, 1, 1, 1]} : vector<8x12x2x72xf32> to vector<8x12x1x72xf32>
    %52 = vector.shape_cast %51 : vector<8x12x1x72xf32> to vector<8x12x72xf32>
    %53 = vector.extract_strided_slice %50 {offsets = [0, 0, 1, 0], sizes = [8, 12, 1, 72], strides = [1, 1, 1, 1]} : vector<8x12x2x72xf32> to vector<8x12x1x72xf32>
    %54 = vector.shape_cast %53 : vector<8x12x1x72xf32> to vector<8x12x72xf32>
    %55 = arith.maximumf %52, %54 : vector<8x12x72xf32>
    %c0_37 = arith.constant 0 : index
    %c0_38 = arith.constant 0 : index
    %56 = vector.load %arg4[%c0_37, %c0_38] : memref<1x72xf32, #tpu.memory_space<vmem>>, vector<1x72xf32>
    %57 = vector.shape_cast %56 : vector<1x72xf32> to vector<1x1x72xf32>
    %58 = vector.broadcast %57 : vector<1x1x72xf32> to vector<8x12x72xf32>
    %59 = arith.addf %55, %58 : vector<8x12x72xf32>
    %cst_39 = arith.constant 0.000000e+00 : f32
    %60 = vector.broadcast %cst_39 : f32 to vector<8x12x72xf32>
    %61 = arith.maximumf %59, %60 : vector<8x12x72xf32>
    %62 = arith.truncf %61 : vector<8x12x72xf32> to vector<8x12x72xbf16>
    %63 = vector.extract_strided_slice %62 {offsets = [0, 0, 0], sizes = [8, 8, 72], strides = [1, 1, 1]} : vector<8x12x72xbf16> to vector<8x8x72xbf16>
    %64 = vector.shape_cast %63 : vector<8x8x72xbf16> to vector<64x72xbf16>
    %c0_40 = arith.constant 0 : index
    %c0_41 = arith.constant 0 : index
    %c0_42 = arith.constant 0 : index
    %65 = vector.load %arg5[%c0_40, %c0_41, %c0_42] : memref<5x72x64xbf16, #tpu.memory_space<vmem>>, vector<1x72x64xbf16>
    %66 = vector.shape_cast %65 : vector<1x72x64xbf16> to vector<72x64xbf16>
    %cst_43 = arith.constant dense<0.000000e+00> : vector<64x64xf32>
    %67 = tpu.matmul %64, %66, %cst_43 {dimension_numbers = #tpu.dot_dimension_numbers<[1], [0], [0], [1], [0, 0, 1, 1], [], []>} : vector<64x72xbf16>, vector<72x64xbf16>, vector<64x64xf32> -> vector<64x64xf32>
    %c0_44 = arith.constant 0 : index
    %c0_45 = arith.constant 0 : index
    %c0_46 = arith.constant 0 : index
    %68 = vector.load %arg6[%c0_44, %c0_45, %c0_46] : memref<5x72x64xbf16, #tpu.memory_space<vmem>>, vector<1x72x64xbf16>
    %69 = vector.shape_cast %68 : vector<1x72x64xbf16> to vector<72x64xbf16>
    %cst_47 = arith.constant dense<0.000000e+00> : vector<64x64xf32>
    %70 = tpu.matmul %64, %69, %cst_47 {dimension_numbers = #tpu.dot_dimension_numbers<[1], [0], [0], [1], [0, 0, 1, 1], [], []>} : vector<64x72xbf16>, vector<72x64xbf16>, vector<64x64xf32> -> vector<64x64xf32>
    %71 = vector.extract_strided_slice %62 {offsets = [0, 1, 0], sizes = [8, 8, 72], strides = [1, 1, 1]} : vector<8x12x72xbf16> to vector<8x8x72xbf16>
    %72 = vector.shape_cast %71 : vector<8x8x72xbf16> to vector<64x72xbf16>
    %c1_48 = arith.constant 1 : index
    %c0_49 = arith.constant 0 : index
    %c0_50 = arith.constant 0 : index
    %73 = vector.load %arg5[%c1_48, %c0_49, %c0_50] : memref<5x72x64xbf16, #tpu.memory_space<vmem>>, vector<1x72x64xbf16>
    %74 = vector.shape_cast %73 : vector<1x72x64xbf16> to vector<72x64xbf16>
    %cst_51 = arith.constant dense<0.000000e+00> : vector<64x64xf32>
    %75 = tpu.matmul %72, %74, %cst_51 {dimension_numbers = #tpu.dot_dimension_numbers<[1], [0], [0], [1], [0, 0, 1, 1], [], []>} : vector<64x72xbf16>, vector<72x64xbf16>, vector<64x64xf32> -> vector<64x64xf32>
    %c1_52 = arith.constant 1 : index
    %c0_53 = arith.constant 0 : index
    %c0_54 = arith.constant 0 : index
    %76 = vector.load %arg6[%c1_52, %c0_53, %c0_54] : memref<5x72x64xbf16, #tpu.memory_space<vmem>>, vector<1x72x64xbf16>
    %77 = vector.shape_cast %76 : vector<1x72x64xbf16> to vector<72x64xbf16>
    %cst_55 = arith.constant dense<0.000000e+00> : vector<64x64xf32>
    %78 = tpu.matmul %72, %77, %cst_55 {dimension_numbers = #tpu.dot_dimension_numbers<[1], [0], [0], [1], [0, 0, 1, 1], [], []>} : vector<64x72xbf16>, vector<72x64xbf16>, vector<64x64xf32> -> vector<64x64xf32>
    %79 = arith.addf %67, %75 : vector<64x64xf32>
    %80 = arith.addf %70, %78 : vector<64x64xf32>
    %81 = vector.extract_strided_slice %62 {offsets = [0, 2, 0], sizes = [8, 8, 72], strides = [1, 1, 1]} : vector<8x12x72xbf16> to vector<8x8x72xbf16>
    %82 = vector.shape_cast %81 : vector<8x8x72xbf16> to vector<64x72xbf16>
    %c2_56 = arith.constant 2 : index
    %c0_57 = arith.constant 0 : index
    %c0_58 = arith.constant 0 : index
    %83 = vector.load %arg5[%c2_56, %c0_57, %c0_58] : memref<5x72x64xbf16, #tpu.memory_space<vmem>>, vector<1x72x64xbf16>
    %84 = vector.shape_cast %83 : vector<1x72x64xbf16> to vector<72x64xbf16>
    %cst_59 = arith.constant dense<0.000000e+00> : vector<64x64xf32>
    %85 = tpu.matmul %82, %84, %cst_59 {dimension_numbers = #tpu.dot_dimension_numbers<[1], [0], [0], [1], [0, 0, 1, 1], [], []>} : vector<64x72xbf16>, vector<72x64xbf16>, vector<64x64xf32> -> vector<64x64xf32>
    %c2_60 = arith.constant 2 : index
    %c0_61 = arith.constant 0 : index
    %c0_62 = arith.constant 0 : index
    %86 = vector.load %arg6[%c2_60, %c0_61, %c0_62] : memref<5x72x64xbf16, #tpu.memory_space<vmem>>, vector<1x72x64xbf16>
    %87 = vector.shape_cast %86 : vector<1x72x64xbf16> to vector<72x64xbf16>
    %cst_63 = arith.constant dense<0.000000e+00> : vector<64x64xf32>
    %88 = tpu.matmul %82, %87, %cst_63 {dimension_numbers = #tpu.dot_dimension_numbers<[1], [0], [0], [1], [0, 0, 1, 1], [], []>} : vector<64x72xbf16>, vector<72x64xbf16>, vector<64x64xf32> -> vector<64x64xf32>
    %89 = arith.addf %79, %85 : vector<64x64xf32>
    %90 = arith.addf %80, %88 : vector<64x64xf32>
    %91 = vector.extract_strided_slice %62 {offsets = [0, 3, 0], sizes = [8, 8, 72], strides = [1, 1, 1]} : vector<8x12x72xbf16> to vector<8x8x72xbf16>
    %92 = vector.shape_cast %91 : vector<8x8x72xbf16> to vector<64x72xbf16>
    %c3_64 = arith.constant 3 : index
    %c0_65 = arith.constant 0 : index
    %c0_66 = arith.constant 0 : index
    %93 = vector.load %arg5[%c3_64, %c0_65, %c0_66] : memref<5x72x64xbf16, #tpu.memory_space<vmem>>, vector<1x72x64xbf16>
    %94 = vector.shape_cast %93 : vector<1x72x64xbf16> to vector<72x64xbf16>
    %cst_67 = arith.constant dense<0.000000e+00> : vector<64x64xf32>
    %95 = tpu.matmul %92, %94, %cst_67 {dimension_numbers = #tpu.dot_dimension_numbers<[1], [0], [0], [1], [0, 0, 1, 1], [], []>} : vector<64x72xbf16>, vector<72x64xbf16>, vector<64x64xf32> -> vector<64x64xf32>
    %c3_68 = arith.constant 3 : index
    %c0_69 = arith.constant 0 : index
    %c0_70 = arith.constant 0 : index
    %96 = vector.load %arg6[%c3_68, %c0_69, %c0_70] : memref<5x72x64xbf16, #tpu.memory_space<vmem>>, vector<1x72x64xbf16>
    %97 = vector.shape_cast %96 : vector<1x72x64xbf16> to vector<72x64xbf16>
    %cst_71 = arith.constant dense<0.000000e+00> : vector<64x64xf32>
    %98 = tpu.matmul %92, %97, %cst_71 {dimension_numbers = #tpu.dot_dimension_numbers<[1], [0], [0], [1], [0, 0, 1, 1], [], []>} : vector<64x72xbf16>, vector<72x64xbf16>, vector<64x64xf32> -> vector<64x64xf32>
    %99 = arith.addf %89, %95 : vector<64x64xf32>
    %100 = arith.addf %90, %98 : vector<64x64xf32>
    %101 = vector.extract_strided_slice %62 {offsets = [0, 4, 0], sizes = [8, 8, 72], strides = [1, 1, 1]} : vector<8x12x72xbf16> to vector<8x8x72xbf16>
    %102 = vector.shape_cast %101 : vector<8x8x72xbf16> to vector<64x72xbf16>
    %c4_72 = arith.constant 4 : index
    %c0_73 = arith.constant 0 : index
    %c0_74 = arith.constant 0 : index
    %103 = vector.load %arg5[%c4_72, %c0_73, %c0_74] : memref<5x72x64xbf16, #tpu.memory_space<vmem>>, vector<1x72x64xbf16>
    %104 = vector.shape_cast %103 : vector<1x72x64xbf16> to vector<72x64xbf16>
    %cst_75 = arith.constant dense<0.000000e+00> : vector<64x64xf32>
    %105 = tpu.matmul %102, %104, %cst_75 {dimension_numbers = #tpu.dot_dimension_numbers<[1], [0], [0], [1], [0, 0, 1, 1], [], []>} : vector<64x72xbf16>, vector<72x64xbf16>, vector<64x64xf32> -> vector<64x64xf32>
    %c4_76 = arith.constant 4 : index
    %c0_77 = arith.constant 0 : index
    %c0_78 = arith.constant 0 : index
    %106 = vector.load %arg6[%c4_76, %c0_77, %c0_78] : memref<5x72x64xbf16, #tpu.memory_space<vmem>>, vector<1x72x64xbf16>
    %107 = vector.shape_cast %106 : vector<1x72x64xbf16> to vector<72x64xbf16>
    %cst_79 = arith.constant dense<0.000000e+00> : vector<64x64xf32>
    %108 = tpu.matmul %102, %107, %cst_79 {dimension_numbers = #tpu.dot_dimension_numbers<[1], [0], [0], [1], [0, 0, 1, 1], [], []>} : vector<64x72xbf16>, vector<72x64xbf16>, vector<64x64xf32> -> vector<64x64xf32>
    %109 = arith.addf %99, %105 : vector<64x64xf32>
    %110 = arith.addf %100, %108 : vector<64x64xf32>
    %111 = arith.maximumf %109, %110 : vector<64x64xf32>
    %112 = vector.shape_cast %111 : vector<64x64xf32> to vector<8x4x2x64xf32>
    %113 = vector.extract_strided_slice %112 {offsets = [0, 0, 0, 0], sizes = [8, 4, 1, 64], strides = [1, 1, 1, 1]} : vector<8x4x2x64xf32> to vector<8x4x1x64xf32>
    %114 = vector.shape_cast %113 : vector<8x4x1x64xf32> to vector<8x4x64xf32>
    %115 = vector.extract_strided_slice %112 {offsets = [0, 0, 1, 0], sizes = [8, 4, 1, 64], strides = [1, 1, 1, 1]} : vector<8x4x2x64xf32> to vector<8x4x1x64xf32>
    %116 = vector.shape_cast %115 : vector<8x4x1x64xf32> to vector<8x4x64xf32>
    %117 = arith.maximumf %114, %116 : vector<8x4x64xf32>
    %c0_80 = arith.constant 0 : index
    %c0_81 = arith.constant 0 : index
    %118 = vector.load %arg7[%c0_80, %c0_81] : memref<1x64xf32, #tpu.memory_space<vmem>>, vector<1x64xf32>
    %119 = vector.shape_cast %118 : vector<1x64xf32> to vector<1x1x64xf32>
    %120 = vector.broadcast %119 : vector<1x1x64xf32> to vector<8x4x64xf32>
    %121 = arith.addf %117, %120 : vector<8x4x64xf32>
    %cst_82 = arith.constant 0.000000e+00 : f32
    %122 = vector.broadcast %cst_82 : f32 to vector<8x4x64xf32>
    %123 = arith.maximumf %121, %122 : vector<8x4x64xf32>
    %124 = arith.truncf %123 : vector<8x4x64xf32> to vector<8x4x64xbf16>
    %125 = vector.shape_cast %124 : vector<8x4x64xbf16> to vector<8x256xbf16>
    %c0_83 = arith.constant 0 : index
    %c0_84 = arith.constant 0 : index
    %126 = vector.load %arg8[%c0_83, %c0_84] : memref<256x128xbf16, #tpu.memory_space<vmem>>, vector<256x128xbf16>
    %cst_85 = arith.constant dense<0.000000e+00> : vector<8x128xf32>
    %127 = tpu.matmul %125, %126, %cst_85 {dimension_numbers = #tpu.dot_dimension_numbers<[1], [0], [0], [1], [0, 0, 1, 1], [], []>} : vector<8x256xbf16>, vector<256x128xbf16>, vector<8x128xf32> -> vector<8x128xf32>
    %c0_86 = arith.constant 0 : index
    %c0_87 = arith.constant 0 : index
    %128 = vector.load %arg9[%c0_86, %c0_87] : memref<1x128xf32, #tpu.memory_space<vmem>>, vector<1x128xf32>
    %129 = vector.broadcast %128 : vector<1x128xf32> to vector<8x128xf32>
    %130 = arith.addf %127, %129 : vector<8x128xf32>
    %cst_88 = arith.constant 0.000000e+00 : f32
    %131 = vector.broadcast %cst_88 : f32 to vector<8x128xf32>
    %132 = arith.maximumf %130, %131 : vector<8x128xf32>
    %133 = arith.truncf %132 : vector<8x128xf32> to vector<8x128xbf16>
    %c0_89 = arith.constant 0 : index
    %c0_90 = arith.constant 0 : index
    %134 = vector.load %arg10[%c0_89, %c0_90] : memref<128x128xbf16, #tpu.memory_space<vmem>>, vector<128x128xbf16>
    %cst_91 = arith.constant dense<0.000000e+00> : vector<8x128xf32>
    %135 = tpu.matmul %133, %134, %cst_91 {dimension_numbers = #tpu.dot_dimension_numbers<[1], [0], [0], [1], [0, 0, 1, 1], [], []>} : vector<8x128xbf16>, vector<128x128xbf16>, vector<8x128xf32> -> vector<8x128xf32>
    %c0_92 = arith.constant 0 : index
    %c0_93 = arith.constant 0 : index
    %136 = vector.load %arg11[%c0_92, %c0_93] : memref<1x128xf32, #tpu.memory_space<vmem>>, vector<1x128xf32>
    %137 = vector.broadcast %136 : vector<1x128xf32> to vector<8x128xf32>
    %138 = arith.addf %135, %137 : vector<8x128xf32>
    %cst_94 = arith.constant 0.000000e+00 : f32
    %139 = vector.broadcast %cst_94 : f32 to vector<8x128xf32>
    %140 = arith.maximumf %138, %139 : vector<8x128xf32>
    %141 = arith.truncf %140 : vector<8x128xf32> to vector<8x128xbf16>
    %c0_95 = arith.constant 0 : index
    %c0_96 = arith.constant 0 : index
    %142 = vector.load %arg12[%c0_95, %c0_96] : memref<128x128xbf16, #tpu.memory_space<vmem>>, vector<128x128xbf16>
    %cst_97 = arith.constant dense<0.000000e+00> : vector<8x128xf32>
    %143 = tpu.matmul %141, %142, %cst_97 {dimension_numbers = #tpu.dot_dimension_numbers<[1], [0], [0], [1], [0, 0, 1, 1], [], []>} : vector<8x128xbf16>, vector<128x128xbf16>, vector<8x128xf32> -> vector<8x128xf32>
    %c0_98 = arith.constant 0 : index
    %c0_99 = arith.constant 0 : index
    %144 = vector.load %arg13[%c0_98, %c0_99] : memref<1x128xf32, #tpu.memory_space<vmem>>, vector<1x128xf32>
    %145 = vector.broadcast %144 : vector<1x128xf32> to vector<8x128xf32>
    %146 = arith.addf %143, %145 : vector<8x128xf32>
    %147 = tpu.iota {dimensions = array<i32: 1>} : vector<8x128xi32>
    %c10_i32 = arith.constant 10 : i32
    %148 = vector.broadcast %c10_i32 : i32 to vector<8x128xi32>
    %149 = arith.cmpi slt, %147, %148 : vector<8x128xi32>
    %cst_100 = arith.constant -1.000000e+30 : f32
    %150 = vector.broadcast %cst_100 : f32 to vector<8x128xf32>
    %151 = arith.select %149, %146, %150 : vector<8x128xi1>, vector<8x128xf32>
    %cst_101 = arith.constant dense<0xFF800000> : vector<8xf32>
    %152 = vector.multi_reduction <maximumf>, %151, %cst_101 [1] : vector<8x128xf32> to vector<8xf32>
    %153 = vector.shape_cast %152 : vector<8xf32> to vector<8x1xf32>
    %154 = vector.broadcast %153 : vector<8x1xf32> to vector<8x128xf32>
    %155 = arith.subf %151, %154 : vector<8x128xf32>
    %156 = math.exp %155 : vector<8x128xf32>
    %cst_102 = arith.constant dense<0.000000e+00> : vector<8xf32>
    %157 = vector.multi_reduction <add>, %156, %cst_102 [1] : vector<8x128xf32> to vector<8xf32>
    %158 = vector.shape_cast %157 : vector<8xf32> to vector<8x1xf32>
    %159 = tpu.reciprocal %158 {approx = true} : vector<8x1xf32> -> vector<8x1xf32>
    %160 = vector.broadcast %159 : vector<8x1xf32> to vector<8x128xf32>
    %161 = arith.mulf %156, %160 : vector<8x128xf32>
    %c0_103 = arith.constant 0 : index
    %c0_104 = arith.constant 0 : index
    %162 = vector.load %arg14[%c0_103, %c0_104] : memref<8x128xf32, #tpu.memory_space<vmem>>, vector<8x128xf32>
    tpu.vector_store %arg14[%c0_103, %c0_104], %161 {strides = array<i32>} : memref<8x128xf32, #tpu.memory_space<vmem>>, vector<8x128xf32>,
    return
  }
  func.func @transform_0(%arg0: i32) -> (i32, i32, i32) {
    %c0_i32 = arith.constant 0 : i32
    %c0_i32_0 = arith.constant 0 : i32
    %c0_i32_1 = arith.constant 0 : i32
    return %arg0, %c0_i32, %c0_i32_0 : i32, i32, i32
  }
  func.func @transform_1(%arg0: i32) -> (i32, i32, i32) {
    %c0_i32 = arith.constant 0 : i32
    %c0_i32_0 = arith.constant 0 : i32
    %c0_i32_1 = arith.constant 0 : i32
    %c0_i32_2 = arith.constant 0 : i32
    return %c0_i32, %c0_i32_0, %c0_i32_1 : i32, i32, i32
  }
  func.func @transform_2(%arg0: i32) -> (i32, i32, i32) {
    %c0_i32 = arith.constant 0 : i32
    %c0_i32_0 = arith.constant 0 : i32
    %c0_i32_1 = arith.constant 0 : i32
    %c0_i32_2 = arith.constant 0 : i32
    return %c0_i32, %c0_i32_0, %c0_i32_1 : i32, i32, i32
  }
  func.func @transform_3(%arg0: i32) -> (i32, i32) {
    %c0_i32 = arith.constant 0 : i32
    %c0_i32_0 = arith.constant 0 : i32
    %c0_i32_1 = arith.constant 0 : i32
    return %c0_i32, %c0_i32_0 : i32, i32
  }
  func.func @transform_4(%arg0: i32) -> (i32, i32, i32) {
    %c0_i32 = arith.constant 0 : i32
    %c0_i32_0 = arith.constant 0 : i32
    %c0_i32_1 = arith.constant 0 : i32
    %c0_i32_2 = arith.constant 0 : i32
    return %c0_i32, %c0_i32_0, %c0_i32_1 : i32, i32, i32
  }
  func.func @transform_5(%arg0: i32) -> (i32, i32, i32) {
    %c0_i32 = arith.constant 0 : i32
    %c0_i32_0 = arith.constant 0 : i32
    %c0_i32_1 = arith.constant 0 : i32
    %c0_i32_2 = arith.constant 0 : i32
    return %c0_i32, %c0_i32_0, %c0_i32_1 : i32, i32, i32
  }
  func.func @transform_6(%arg0: i32) -> (i32, i32) {
    %c0_i32 = arith.constant 0 : i32
    %c0_i32_0 = arith.constant 0 : i32
    %c0_i32_1 = arith.constant 0 : i32
    return %c0_i32, %c0_i32_0 : i32, i32
  }
  func.func @transform_7(%arg0: i32) -> (i32, i32) {
    %c0_i32 = arith.constant 0 : i32
    %c0_i32_0 = arith.constant 0 : i32
    %c0_i32_1 = arith.constant 0 : i32
    return %c0_i32, %c0_i32_0 : i32, i32
  }
  func.func @transform_8(%arg0: i32) -> (i32, i32) {
    %c0_i32 = arith.constant 0 : i32
    %c0_i32_0 = arith.constant 0 : i32
    %c0_i32_1 = arith.constant 0 : i32
    return %c0_i32, %c0_i32_0 : i32, i32
  }
  func.func @transform_9(%arg0: i32) -> (i32, i32) {
    %c0_i32 = arith.constant 0 : i32
    %c0_i32_0 = arith.constant 0 : i32
    %c0_i32_1 = arith.constant 0 : i32
    return %c0_i32, %c0_i32_0 : i32, i32
  }
  func.func @transform_10(%arg0: i32) -> (i32, i32) {
    %c0_i32 = arith.constant 0 : i32
    %c0_i32_0 = arith.constant 0 : i32
    %c0_i32_1 = arith.constant 0 : i32
    return %c0_i32, %c0_i32_0 : i32, i32
  }
  func.func @transform_11(%arg0: i32) -> (i32, i32) {
    %c0_i32 = arith.constant 0 : i32
    %c0_i32_0 = arith.constant 0 : i32
    %c0_i32_1 = arith.constant 0 : i32
    return %c0_i32, %c0_i32_0 : i32, i32
  }
  func.func @transform_12(%arg0: i32) -> (i32, i32) {
    %c0_i32 = arith.constant 0 : i32
    %c0_i32_0 = arith.constant 0 : i32
    %c0_i32_1 = arith.constant 0 : i32
    return %c0_i32, %c0_i32_0 : i32, i32
  }
  func.func @transform_13(%arg0: i32) -> (i32, i32) {
    %c0_i32 = arith.constant 0 : i32
    %c0_i32_0 = arith.constant 0 : i32
    return %arg0, %c0_i32 : i32, i32
  }
}

</mosaic_0001>

<bundles_post_ra>
// kernel: tile.13
= control target key start
LH: loop header
LB: loop body
LE: loop exit
PB: predicated region body
PF: predicated region fallthrough
CT: control target
= control target key end

     0   :  { %s28_s0 = inlined_call_operand.vmem [shape: f32[6], index: 0, kind: input, shape index: {}]   ;;  %s29_s1 = inlined_call_operand.vmem [shape: f32[12,6], index: 1, kind: output, shape index: {}]  }
   0x1   :  { %v4_v0 = vld [vmem:[%s28_s0] ss:$0 sm:$0xff] }
   0x2   :  { %5 = vst [vmem:[%s29_s1] sm:$0xff] %v4_v0  ;;  %8 = vst [vmem:[%s29_s1 + $0x8] sm:$0xff] %v4_v0 }

// kernel: tile.14
= control target key start
LH: loop header
LB: loop body
LE: loop exit
PB: predicated region body
PF: predicated region fallthrough
CT: control target
= control target key end

     0   :  { %s99_s10 = smov 66   ;;  %s100_s11 = smov 54   ;;  %vm3_vm0 = vcmask 48128   ;;  %vm9_vm1 = vcmask 589328   ;;  %vm15_vm2 = vcmask 540128   ;;  %vm21_vm3 = vcmask 490928   ;;  %s159_s0 = inlined_call_operand.vmem [shape: f32[12,6], index: 0, kind: input, shape index: {}]   ;;  %s160_s1 = inlined_call_operand.vmem [shape: f32[1,72], index: 1, kind: output, shape index: {}]  }
   0x1   :  { %v77_v0 = vld [vmem:[%s159_s0 + $0xb] sm:$0x1]   ;;  %v79_v1 = vld [vmem:[%s159_s0 + $0x9] sm:$0x1]   ;;  %v78_v2 = vld [vmem:[%s159_s0 + $0xa] sm:$0x1]  }
   0x2   :  { %7 = vrot.lane.b32.xlu0 %v77_v0, %s99_s10  ;;  %19 = vrot.lane.b32.xlu1 %v79_v1, %s100_s11  ;;  %v80_v3 = vld [vmem:[%s159_s0 + $0x8] sm:$0x1]   ;;  %s101_s16 = smov 60   ;;  %s102_s17 = smov 48   ;;  %v81_v4 = vld [vmem:[%s159_s0 + $0x7] sm:$0x1]  }
   0x3   :  { %v2_v5 = vld [vmem:[%s159_s0] sm:$0x1]   ;;  %v82_v6 = vld [vmem:[%s159_s0 + $0x6] sm:$0x1]   ;;  %s103_s24 = smov 42   ;;  %s104_s25 = smov 36  }
   0x4   :  { %4 = vst.msk [vmem:[#allocation0] sm:$0x1] %vm3_vm0, %v2_v5   ;;  %v83_v7 = vld [vmem:[%s159_s0 + $0x5] sm:$0x1]   ;;  %v84_v8 = vld [vmem:[%s159_s0 + $0x4] sm:$0x1]  }
   0x5   :  { %s105_s30 = smov 30   ;;  %s106_s2 = smov 24   ;;  %v85_v9 = vld [vmem:[%s159_s0 + $0x3] sm:$0x1]   ;;  %v86_v10 = vld [vmem:[%s159_s0 + $0x2] sm:$0x1]  }
   0x6   :  { %13 = vrot.lane.b32.xlu0 %v78_v2, %s101_s16  ;;  %25 = vrot.lane.b32.xlu1 %v80_v3, %s102_s17  ;;  %s107_s7 = smov 18   ;;  %s108_s8 = smov 12   ;;  %v87_v11 = vld [vmem:[%s159_s0 + $0x1] sm:$0x1]   ;;  %vm27_vm4 = vcmask 441728   ;;  %vm33_vm5 = vcmask 392528  }
   0x7   :  { %s109_s0 = smov 6   ;;  %vm39_vm6 = vcmask 343328   ;;  %vm45_vm7 = vcmask 294128   ;;  %vm51_vm8 = vcmask 244928   ;;  %vm57_vm9 = vcmask 195728  }
   0x8   :  { %vm63_vm10 = vcmask 146528   ;;  %vm69_vm11 = vcmask 97328  }
   0xa   :  { %31 = vrot.lane.b32.xlu0 %v81_v4, %s103_s24  ;;  %37 = vrot.lane.b32.xlu1 %v82_v6, %s104_s25 }
   0xe   :  { %43 = vrot.lane.b32.xlu0 %v83_v7, %s105_s30  ;;  %49 = vrot.lane.b32.xlu1 %v84_v8, %s106_s2 }
  0x12   :  { %55 = vrot.lane.b32.xlu0 %v85_v9, %s107_s7  ;;  %61 = vrot.lane.b32.xlu1 %v86_v10, %s108_s8 }
  0x16   :  { %67 = vrot.lane.b32.xlu0 %v87_v11, %s109_s0 }
  0x74   :  { %v8_v12 = vpop.permute.xlu0 %7   ;;  %v20_v13 = vpop.permute.xlu1 %19  }
  0x75   :  { %10 = vst.msk [vmem:[#allocation0] sm:$0x1] %vm9_vm1, %v8_v12  }
  0x78   :  { %v14_v14 = vpop.permute.xlu0 %13   ;;  %v26_v15 = vpop.permute.xlu1 %25  }
  0x79   :  { %16 = vst.msk [vmem:[#allocation0] sm:$0x1] %vm15_vm2, %v14_v14  }
  0x7a   :  { %22 = vst.msk [vmem:[#allocation0] sm:$0x1] %vm21_vm3, %v20_v13  }
  0x7b   :  { %28 = vst.msk [vmem:[#allocation0] sm:$0x1] %vm27_vm4, %v26_v15  }
  0x7c   :  { %v32_v16 = vpop.permute.xlu0 %31   ;;  %v38_v17 = vpop.permute.xlu1 %37  }
  0x7d   :  { %34 = vst.msk [vmem:[#allocation0] sm:$0x1] %vm33_vm5, %v32_v16  }
  0x7e   :  { %40 = vst.msk [vmem:[#allocation0] sm:$0x1] %vm39_vm6, %v38_v17  }
  0x80   :  { %v44_v18 = vpop.permute.xlu0 %43   ;;  %v50_v19 = vpop.permute.xlu1 %49  }
  0x81   :  { %46 = vst.msk [vmem:[#allocation0] sm:$0x1] %vm45_vm7, %v44_v18  }
  0x82   :  { %52 = vst.msk [vmem:[#allocation0] sm:$0x1] %vm51_vm8, %v50_v19  }
  0x84   :  { %v56_v20 = vpop.permute.xlu0 %55   ;;  %v62_v21 = vpop.permute.xlu1 %61  }
  0x85   :  { %58 = vst.msk [vmem:[#allocation0] sm:$0x1] %vm57_vm9, %v56_v20  }
  0x86   :  { %64 = vst.msk [vmem:[#allocation0] sm:$0x1] %vm63_vm10, %v62_v21  }
  0x88   :  { %v68_v22 = vpop.permute.xlu0 %67  }
  0x89   :  { %70 = vst.msk [vmem:[#allocation0] sm:$0x1] %vm69_vm11, %v68_v22  }
  0x90   :  { %v74_v23 = vld [vmem:[#allocation0] sm:$0x1] }
  0x91   :  { %76 = vst [vmem:[%s160_s1] sm:$0x1] %v74_v23 }

// kernel: tile.18
= control target key start
LH: loop header
LB: loop body
LE: loop exit
PB: predicated region body
PF: predicated region fallthrough
CT: control target
= control target key end

     0   :  { %s22_s0 = inlined_call_operand.vmem [shape: f32[16], index: 0, kind: input, shape index: {}]   ;;  %s23_s1 = inlined_call_operand.vmem [shape: f32[4,16], index: 1, kind: output, shape index: {}]  }
   0x1   :  { %v4_v0 = vld [vmem:[%s22_s0] ss:$0 sm:$0xff] }
   0x2   :  { %5 = vst [vmem:[%s23_s1] sm:$0xf] %v4_v0 }

// kernel: tile.19
= control target key start
LH: loop header
LB: loop body
LE: loop exit
PB: predicated region body
PF: predicated region fallthrough
CT: control target
= control target key end

     0   :  { %vm7_vm0 = vcmask 130048   ;;  %s37_s8 = smov 16   ;;  %s38_s9 = smov 32   ;;  %vm13_vm1 = vcmask 523648   ;;  %vm19_vm2 = vcmask 392448   ;;  %vm25_vm3 = vcmask 261248   ;;  %s55_s0 = inlined_call_operand.vmem [shape: f32[4,16], index: 0, kind: input, shape index: {}]   ;;  %s56_s1 = inlined_call_operand.vmem [shape: f32[1,64], index: 1, kind: output, shape index: {}]  }
   0x1   :  { %v4_v0 = vld [vmem:[%s55_s0] sm:$0xf]  ;;  %s36_s0 = smov 48  }
   0x2   :  { %5 = vst [vmem:[#allocation1] sm:$0xf] %v4_v0 }
   0x9   :  { %v10_v1 = vld [vmem:[#allocation1 + $0x3] sm:$0x1]   ;;  %v22_v2 = vld [vmem:[#allocation1 + $0x1] sm:$0x1]   ;;  %v6_v3 = vld [vmem:[#allocation1] sm:$0x1]  }
   0xa   :  { %11 = vrot.lane.b32.xlu0 %v10_v1, %s36_s0  ;;  %23 = vrot.lane.b32.xlu1 %v22_v2, %s37_s8  ;;  %v16_v4 = vld [vmem:[#allocation1 + $0x2] sm:$0x1]   ;;  %8 = vst.msk [vmem:[#allocation0] sm:$0x1] %vm7_vm0, %v6_v3  }
   0xe   :  { %17 = vrot.lane.b32.xlu0 %v16_v4, %s38_s9 }
  0x7c   :  { %v12_v5 = vpop.permute.xlu0 %11   ;;  %v24_v6 = vpop.permute.xlu1 %23  }
  0x7d   :  { %14 = vst.msk [vmem:[#allocation0] sm:$0x1] %vm13_vm1, %v12_v5  }
  0x80   :  { %v18_v7 = vpop.permute.xlu0 %17  }
  0x81   :  { %20 = vst.msk [vmem:[#allocation0] sm:$0x1] %vm19_vm2, %v18_v7  }
  0x82   :  { %26 = vst.msk [vmem:[#allocation0] sm:$0x1] %vm25_vm3, %v24_v6  }
  0x89   :  { %v30_v8 = vld [vmem:[#allocation0] sm:$0x1] }
  0x8a   :  { %32 = vst [vmem:[%s56_s1] sm:$0x1] %v30_v8 }

// kernel: mnist_net_forward.1
= control target key start
LH: loop header
LB: loop body
LE: loop exit
PB: predicated region body
PF: predicated region fallthrough
CT: control target
= control target key end

     0   :  { %vm85_vm0 = vsmask.f32 3328  ;;  %vm86_vm1 = vsmask.f32 7440  ;;  %vm449_vm2 = vcmask 1045504   ;;  %vm412_vm4 = vcmask 228352   ;;  %s11935_s1 = inlined_call_operand.vmem [shape: bf16[5,28,72], index: 1, kind: input, shape index: {}]   ;;  %s11936_s0 = inlined_call_operand.vmem [shape: bf16[8,28,28], index: 0, kind: input, shape index: {}]   ;;  %s11937_s2 = inlined_call_operand.vmem [shape: bf16[5,28,72], index: 2, kind: input, shape index: {}]   ;;  %s11938_s4 = inlined_call_operand.vmem [shape: bf16[5,72,64], index: 4, kind: input, shape index: {}]   ;;  %s11939_s5 = inlined_call_operand.vmem [shape: bf16[5,72,64], index: 5, kind: input, shape index: {}]   ;;  %s11940_s3 = inlined_call_operand.vmem [shape: f32[1,72], index: 3, kind: input, shape index: {}]   ;;  %s11941_s7 = inlined_call_operand.vmem [shape: bf16[256,128], index: 7, kind: input, shape index: {}]   ;;  %s11942_s6 = inlined_call_operand.vmem [shape: f32[1,64], index: 6, kind: input, shape index: {}]   ;;  %s11943_s9 = inlined_call_operand.vmem [shape: bf16[128,128], index: 9, kind: input, shape index: {}]   ;;  %s11944_s11 = inlined_call_operand.vmem [shape: bf16[128,128], index: 11, kind: input, shape index: {}]   ;;  %s11945_s8 = inlined_call_operand.vmem [shape: f32[1,128], index: 8, kind: input, shape index: {}]   ;;  %s11946_s10 = inlined_call_operand.vmem [shape: f32[1,128], index: 10, kind: input, shape index: {}]   ;;  %s11947_s12 = inlined_call_operand.vmem [shape: f32[1,128], index: 12, kind: input, shape index: {}]   ;;  %s11948_s13 = inlined_call_operand.vmem [shape: f32[8,128], index: 13, kind: output, shape index: {}]  }
   0x1   :  { %v8579_v0 = vld [vmem:[%s11935_s1 + $0x10] sm:$0xff]   ;;  %v8580_v1 = vld [vmem:[%s11935_s1 + $0x18] sm:$0x3f]   ;;  %v8811_v2 = vld [vmem:[%s11936_s0] sm:$0xf]  ;;  %vm1120_vm5 = vcmask 1042432  }
   0x2   :  { %8292 = vmatprep.subr.bf16.mxu1 %v8579_v0  ;;  %7792 = vmatprep.subr.bf16.mxu0 %v8579_v0  ;;  %v8816_v3 = vld [vmem:[%s11936_s0 + $0x4] sm:$0xf]  ;;  %v8821_v4 = vld [vmem:[%s11936_s0 + $0x8] sm:$0xf]  ;;  %v451_v5 = vsel %vm449_vm2, %v8580_v1, 0  ;;  %v11990_v6 = vshrl.u32 %v8811_v2, 16  ;;  %vm8867_vm3 = vmor %vm85_vm0, %vm86_vm1 }
   0x3   :  { %8294 = vmatpush3.bf16.msra.mxu1 %v8579_v0  ;;  %7793 = vmatpush3.bf16.msra.mxu0 %v8579_v0  ;;  %v11989_v7 = vshll.u32 %v8811_v2, 16  ;;  %v11983_v8 = vshll.u32 %v8816_v3, 16  ;;  %v8830_v9 = vld [vmem:[%s11936_s0 + $0x54] sm:$0xf]  ;;  %v11986_v10 = vshrl.u32 %v8816_v3, 16  ;;  %v11978_v11 = vshll.u32 %v8821_v4, 16 }
   0x4   :  { %8553 = vmatprep.subr.msk.bf16.mxu1 %vm449_vm2, %v8580_v1  ;;  %8552 = vmatprep.subr.msk.bf16.mxu0 %vm449_vm2, %v8580_v1  ;;  %v11965_v12 = vshrl.u32 %v8821_v4, 16  ;;  %v11975_v13 = vshll.u32 %v8830_v9, 16  ;;  %v91_v14 = vrot.slane %v11990_v6, 4  ;;  %v8847_v17 = vld [vmem:[%s11936_s0 + $0x58] sm:$0xf]  ;;  %v8863_v23 = vld [vmem:[%s11937_s2 + $0x10] sm:$0xff]  }
   0x5   :  { %v94_v15 = vrot.slane %v11989_v7, 5  ;;  %v100_v16 = vrot.slane %v11983_v8, 5  ;;  %v104_v18 = vrot.slane %v11986_v10, 4  ;;  %v8854_v19 = vld [vmem:[%s11936_s0 + $0x5c] sm:$0x3]  ;;  %v110_v21 = vrot.slane %v11978_v11, 5 }
   0x6   :  { %v114_v22 = vrot.slane %v11965_v12, 4  ;;  %v8873_v26 = vrot.slane %v11975_v13, 5  ;;  %v11976_v27 = vshrl.u32 %v8830_v9, 16  ;;  %v11967_v29 = vshll.u32 %v8847_v17, 16  ;;  %v8891_v38 = vld [vmem:[%s11936_s0 + $0xc] sm:$0x3] }
   0x7   :  { %8295 = vmatpush3.bf16.msra.mxu1 %v451_v5  ;;  %7795 = vmatpush3.bf16.msra.mxu0 %v451_v5  ;;  %v95_v20 = vor.u32 %v94_v15, %v91_v14  ;;  %v105_v25 = vor.u32 %v104_v18, %v100_v16  ;;  %v11968_v30 = vshrl.u32 %v8847_v17, 16  ;;  %v11966_v31 = vshll.u32 %v8854_v19, 16  ;;  %v8896_v39 = vld [vmem:[%s11936_s0 + $0x10] sm:$0xf]  ;;  %v8904_v42 = vld [vmem:[%s11936_s0 + $0x14] sm:$0xf] }
   0x8   :  { %7820 = vmatprep.subr.bf16.mxu1 %v8863_v23  ;;  %v274_v33 = vrot.slane %v11976_v27, 4  ;;  %v115_v35 = vor.u32 %v114_v22, %v110_v21  ;;  %v280_v36 = vrot.slane %v11967_v29, 5  ;;  %v8909_v43 = vld [vmem:[%s11936_s0 + $0x60] sm:$0xf]  ;;  %v11991_v48 = vshll.u32 %v8891_v38, 16 }
   0x9   :  { %v96_v28 = vrot.slane %v95_v20, 4  ;;  %v106_v32 = vrot.slane %v105_v25, 4  ;;  %v284_v37 = vrot.slane %v11968_v30, 4  ;;  %12111 = vst [vmem:[#allocation2_spill] sm:$0xff] %v8909_v43  ;;  %v290_v46 = vrot.slane %v11966_v31, 5  ;;  %v8584_v59 = vld [vmem:[%s11935_s1] sm:$0xff]  }
   0xa   :  { %v275_v41 = vor.u32 %v274_v33, %v8873_v26  ;;  %v123_v49 = vshrl.u32 %v8896_v39, 16  ;;  %v126_v50 = vshll.u32 %v8896_v39, 16  ;;  %v116_v51 = vrot.slane %v115_v35, 4  ;;  %v8934_v61 = vld [vmem:[%s11936_s0 + $0x64] sm:$0xf]  ;;  %7848 = vmatprep.subr.bf16.mxu0 %v8584_v59 }
   0xb   :  { %v101_v34 = vsel %vm8867_vm3, %v96_v28, %v100_v16  ;;  %v111_v40 = vsel %vm8867_vm3, %v106_v32, %v110_v21  ;;  %v285_v45 = vor.u32 %v284_v37, %v280_v36  ;;  %v132_v53 = vshll.u32 %v8904_v42, 16  ;;  %12112 = vst [vmem:[#allocation3_spill] sm:$0xff] %v8934_v61  ;;  %v8943_v5 = vld [vmem:[%s11936_s0 + $0x68] sm:$0xf]  ;;  %v8948_v14 = vld [vmem:[%s11936_s0 + $0x18] sm:$0xf] }
   0xc   :  { %v8911_v44 = vcombine.low %v101_v34, %v111_v40  ;;  %v276_v47 = vrot.slane %v275_v41, 4  ;;  %v11956_v54 = vshrl.u32 %v8909_v43, 16  ;;  %v120_v56 = vrot.slane %v11991_v48, 5  ;;  %12113 = vst [vmem:[#allocation4_spill] sm:$0xff] %v8943_v5  ;;  %v8977_v41 = vld [vmem:[%s11936_s0 + $0x1c] sm:$0x3] }
   0xd   :  { %v286_v52 = vrot.slane %v285_v45, 4  ;;  %v125_v57 = vrot.slane %v123_v49, 4  ;;  %v128_v58 = vrot.slane %v126_v50, 5  ;;  %v134_v0 = vrot.slane %v132_v53, 5  ;;  %v9217_v10 = vld [vmem:[%s11936_s0 + $0x50] sm:$0xf] }
   0xe   :  { %7796 = vmatprep.mubr.msk.bf16.mxu0 %vm412_vm4, %v8911_v44  ;;  %v281_v55 = vsel %vm8867_vm3, %v276_v47, %v280_v36  ;;  %v8938_v1 = vrot.slane %v123_v49, 5  ;;  %v121_v15 = vsel %vm8867_vm3, %v116_v51, %v120_v56  ;;  %v8952_v16 = vrot.slane %v126_v50, 6  ;;  %v8986_v50 = vld [vmem:[%s11936_s0 + $0x6c] sm:$0x3] }
   0xf   :  { %v291_v60 = vsel %vm8867_vm3, %v286_v52, %v290_v46  ;;  %v129_v63 = vor.u32 %v128_v58, %v125_v57  ;;  %v295_v18 = vrot.slane %v11956_v54, 4  ;;  %v11954_v21 = vshll.u32 %v8909_v43, 16  ;;  %12114 = vst [vmem:[#allocation5_spill] sm:$0xff] %v8986_v50 }
  0x10   :  { %v8936_v62 = vcombine.low %v281_v55, %v291_v60  ;;  %v11951_v22 = vshll.u32 %v8934_v61, 16  ;;  %v11953_v25 = vshrl.u32 %v8934_v61, 16  ;;  %v11949_v32 = vshll.u32 %v8943_v5, 16 }
  0x11   :  { %v130_v20 = vrot.slane %v129_v63, 4  ;;  %v136_v33 = vshrl.u32 %v8904_v42, 16  ;;  %v11958_v34 = vshll.u32 %v8948_v14, 16  ;;  %v298_v36 = vrot.slane %v11954_v21, 5  ;;  %v9002_v63 = vld [vmem:[%s11936_s0 + $0x74] sm:$0xf] }
  0x12   :  { %7812 = vmatprep.mubr.msk.bf16.mxu1 %vm412_vm4, %v8936_v62  ;;  %v304_v37 = vrot.slane %v11951_v22, 5  ;;  %v308_v40 = vrot.slane %v11953_v25, 4  ;;  %v1647_v46 = vrot.slane %v132_v53, 6  ;;  %v314_v47 = vrot.slane %v11949_v32, 5  ;;  %v8994_v53 = vld [vmem:[%s11936_s0 + $0x70] sm:$0xf] }
  0x13   :  { %v135_v35 = vsel %vm8867_vm3, %v130_v20, %v134_v0  ;;  %v138_v49 = vrot.slane %v136_v33, 4  ;;  %v299_v51 = vor.u32 %v298_v36, %v295_v18  ;;  %v144_v55 = vrot.slane %v11958_v34, 5  ;;  %12115 = vst [vmem:[#allocation6_spill] sm:$0xff] %v8994_v53  ;;  %12116 = vst [vmem:[#allocation7_spill] sm:$0xff] %v9002_v63  ;;  %v9060_v25 = vld [vmem:[%s11936_s0 + $0x7c] sm:$0x3] }
  0x14   :  { %v8979_v45 = vcombine.low %v121_v15, %v135_v35  ;;  %v309_v52 = vor.u32 %v308_v40, %v304_v37  ;;  %v11964_v56 = vshrl.u32 %v8948_v14, 16  ;;  %v11957_v58 = vshll.u32 %v8977_v41, 16  ;;  %12118 = vst [vmem:[#allocation9_spill] sm:$0xff] %v9060_v25 }
  0x15   :  { %v139_v57 = vor.u32 %v138_v49, %v134_v0  ;;  %v1646_v60 = vrot.slane %v136_v33, 5  ;;  %v11950_v15 = vshrl.u32 %v8943_v5, 16  ;;  %v300_v18 = vrot.slane %v299_v51, 4  ;;  %v9017_v51 = vld [vmem:[%s11936_s0 + $0x20] sm:$0xf] }
  0x16   :  { %7797 = vmatmul.mubr.msk.bf16.vlgmr.msra.gmra.mrb[0].mxu0 %vm412_vm4, %v8979_v45  ;;  %v310_v20 = vrot.slane %v309_v52, 4  ;;  %v148_v35 = vrot.slane %v11964_v56, 4  ;;  %v11952_v36 = vshll.u32 %v8986_v50, 16  ;;  %v154_v0 = vrot.slane %v11957_v58, 5 }
  0x17   :  { %7849 = vmatpush3.bf16.msra.mxu0 %v8584_v59  ;;  %v140_v40 = vrot.slane %v139_v57, 4  ;;  %v9010_v33 = vor.u32 %v1647_v46, %v1646_v60  ;;  %v318_v49 = vrot.slane %v11950_v15, 4  ;;  %v305_v52 = vsel %vm8867_vm3, %v300_v18, %v304_v37  ;;  %v9028_v46 = vld [vmem:[%s11936_s0 + $0x24] sm:$0xf]  ;;  %v8582_v18 = vld [vmem:[%s11937_s2 + $0x18] sm:$0x3f]  }
  0x18   :  { %v315_v59 = vsel %vm8867_vm3, %v310_v20, %v314_v47  ;;  %v149_v57 = vor.u32 %v148_v35, %v144_v55  ;;  %v324_v32 = vrot.slane %v11952_v36, 5  ;;  %v11955_v37 = vshrl.u32 %v8994_v53, 16  ;;  %v9041_v20 = vld [vmem:[%s11936_s0 + $0x28] sm:$0xf] }
  0x19   :  { %v9030_v60 = vcombine.low %v305_v52, %v315_v59  ;;  %v145_v15 = vsel %vm8867_vm3, %v140_v40, %v144_v55  ;;  %v319_v22 = vor.u32 %v318_v49, %v314_v47  ;;  %v11959_v36 = vshll.u32 %v8994_v53, 16  ;;  %v9049_v47 = vld [vmem:[%s11936_s0 + $0x78] sm:$0xf] }
  0x1a   :  { %v150_v35 = vrot.slane %v149_v57, 4  ;;  %v11960_v52 = vshll.u32 %v9002_v63, 16  ;;  %v11961_v59 = vshrl.u32 %v9017_v51, 16  ;;  %12117 = vst [vmem:[#allocation8_spill] sm:$0xff] %v9049_v47  ;;  %v329_v40 = vrot.slane %v11955_v37, 4 }
  0x1b   :  { %7813 = vmatmul.mubr.msk.bf16.vlgmr.msra.gmra.mrb[0].mxu1 %vm412_vm4, %v9030_v60  ;;  %v320_v55 = vrot.slane %v319_v22, 4  ;;  %v11963_v49 = vshll.u32 %v9017_v51, 16  ;;  %v11962_v57 = vshll.u32 %v9028_v46, 16  ;;  %v332_v22 = vrot.slane %v11959_v36, 5 }
  0x1c   :  { %7821 = vmatpush3.bf16.msra.mxu1 %v8863_v23  ;;  %v155_v21 = vsel %vm8867_vm3, %v150_v35, %v154_v0  ;;  %v338_v37 = vrot.slane %v11960_v52, 5  ;;  %v159_v54 = vrot.slane %v11961_v59, 4  ;;  %v11970_v36 = vshrl.u32 %v9028_v46, 16 }
  0x1d   :  { %v9071_v58 = vcombine.low %v145_v15, %v155_v21  ;;  %v325_v34 = vsel %vm8867_vm3, %v320_v55, %v324_v32  ;;  %8554 = vmatprep.subr.msk.bf16.mxu1 %vm449_vm2, %v8582_v18  ;;  %v162_v23 = vrot.slane %v11963_v49, 5  ;;  %v168_v0 = vrot.slane %v11962_v57, 5 }
  0x1e   :  { %v333_v35 = vor.u32 %v332_v22, %v329_v40  ;;  %v11969_v52 = vshll.u32 %v9041_v20, 16  ;;  %v11971_v59 = vshrl.u32 %v9002_v63, 16  ;;  %v11972_v32 = vshll.u32 %v9049_v47, 16  ;;  %v9091_v40 = vld [vmem:[%s11936_s0 + $0x2c] sm:$0x3] }
  0x1f   :  { %7800 = vmatprep.mubr.msk.bf16.mxu0 %vm412_vm4, %v9071_v58  ;;  %v163_v21 = vor.u32 %v162_v23, %v159_v54  ;;  %v11974_v15 = vshrl.u32 %v9049_v47, 16  ;;  %v11973_v55 = vshll.u32 %v9060_v25, 16  ;;  %v9096_v22 = vld [vmem:[%s11936_s0 + $0x30] sm:$0xf]  ;;  %v9101_v54 = vld [vmem:[%s11937_s2] sm:$0xff]   ;;  %v172_v49 = vrot.slane %v11970_v36, 4 }
  0x20   :  { %v9106_v23 = vld [vmem:[%s11935_s1 + $0x8] sm:$0x3f]   ;;  %v334_v57 = vrot.slane %v333_v35, 4  ;;  %v178_v56 = vrot.slane %v11969_v52, 5  ;;  %v342_v12 = vrot.slane %v11971_v59, 4  ;;  %v348_v31 = vrot.slane %v11972_v32, 5 }
  0x21   :  { %v164_v28 = vrot.slane %v163_v21, 4  ;;  %v352_v29 = vrot.slane %v11974_v15, 4  ;;  %v358_v30 = vrot.slane %v11973_v55, 5  ;;  %8555 = vmatprep.subr.msk.bf16.mxu0 %vm449_vm2, %v9106_v23  ;;  %v173_v52 = vor.u32 %v172_v49, %v168_v0  ;;  %v9128_v21 = vld [vmem:[%s11936_s0 + $0x34] sm:$0xf] }
  0x22   :  { %v339_v35 = vsel %vm8867_vm3, %v334_v57, %v338_v37  ;;  %v343_v36 = vor.u32 %v342_v12, %v338_v37  ;;  %v599_v59 = vsel %vm449_vm2, %v8582_v18, 0  ;;  %v11977_v13 = vshrl.u32 %v9041_v20, 16  ;;  %v9138_v12 = vld [vmem:[%s11936_s0 + $0x38] sm:$0xf] }
  0x23   :  { %v9130_v32 = vcombine.low %v325_v34, %v339_v35  ;;  %v169_v55 = vsel %vm8867_vm3, %v164_v28, %v168_v0  ;;  %v353_v15 = vor.u32 %v352_v29, %v348_v31  ;;  %7823 = vmatpush3.bf16.msra.mxu1 %v599_v59  ;;  %v174_v37 = vrot.slane %v173_v52, 4  ;;  %v9146_v29 = vld [vmem:[%s11936_s0 + $0x3c] sm:$0x3] }
  0x24   :  { %v344_v18 = vrot.slane %v343_v36, 4  ;;  %v11980_v49 = vshll.u32 %v9091_v40, 16  ;;  %v11979_v57 = vshrl.u32 %v9096_v22, 16  ;;  %7876 = vmatprep.subr.bf16.mxu1 %v9101_v54  ;;  %12119 = vst [vmem:[#allocation10_spill] sm:$0xff] %v9146_v29  ;;  %v182_v34 = vrot.slane %v11977_v13, 4 }
  0x25   :  { %7816 = vmatprep.mubr.msk.bf16.mxu1 %vm412_vm4, %v9130_v32  ;;  %v354_v28 = vrot.slane %v353_v15, 4  ;;  %v11982_v36 = vshll.u32 %v9096_v22, 16  ;;  %v11981_v52 = vshll.u32 %v9128_v21, 16  ;;  %v179_v59 = vsel %vm8867_vm3, %v174_v37, %v178_v56  ;;  %v9165_v15 = vld [vmem:[%s11936_s0 + $0x40] sm:$0xf] }
  0x26   :  { %v349_v0 = vsel %vm8867_vm3, %v344_v18, %v348_v31  ;;  %v188_v35 = vrot.slane %v11980_v49, 5  ;;  %v193_v27 = vrot.slane %v11979_v57, 4  ;;  %v9167_v13 = vcombine.low %v169_v55, %v179_v59  ;;  %v9176_v18 = vld [vmem:[%s11936_s0 + $0x44] sm:$0xf] }
  0x27   :  { %v359_v11 = vsel %vm8867_vm3, %v354_v28, %v358_v30  ;;  %v183_v37 = vor.u32 %v182_v34, %v178_v56  ;;  %v196_v31 = vrot.slane %v11982_v36, 5  ;;  %v202_v49 = vrot.slane %v11981_v52, 5  ;;  %v9187_v30 = vld [vmem:[%s11936_s0 + $0x48] sm:$0xf] }
  0x28   :  { %v9178_v57 = vcombine.low %v349_v0, %v359_v11  ;;  %v11984_v55 = vshrl.u32 %v9128_v21, 16  ;;  %v11985_v59 = vshll.u32 %v9138_v12, 16  ;;  %7801 = vmatmul.mubr.msk.bf16.gmra.mrb[4].mxu0 %vm412_vm4, %v9167_v13  ;;  %v11988_v11 = vshrl.u32 %v9138_v12, 16 }
  0x29   :  { %v184_v56 = vrot.slane %v183_v37, 4  ;;  %v197_v28 = vor.u32 %v196_v31, %v193_v27  ;;  %v11987_v34 = vshll.u32 %v9146_v29, 16  ;;  %v11996_v36 = vshrl.u32 %v9165_v15, 16 }
  0x2a   :  { %7817 = vmatmul.mubr.msk.bf16.gmra.mrb[4].mxu1 %vm412_vm4, %v9178_v57  ;;  %v206_v0 = vrot.slane %v11984_v55, 4  ;;  %v212_v52 = vrot.slane %v11985_v59, 5  ;;  %v11997_v8 = vshll.u32 %v9165_v15, 16  ;;  %v216_v31 = vrot.slane %v11988_v11, 4  ;;  %v9212_v59 = vld [vmem:[%s11936_s0 + $0x4c] sm:$0x3] }
  0x2b   :  { %v189_v27 = vsel %vm8867_vm3, %v184_v56, %v188_v35  ;;  %v198_v37 = vrot.slane %v197_v28, 4  ;;  %7824 = vmatprep.mubr.msk.bf16.mxu1 %vm412_vm4, %v8911_v44  ;;  %v222_v55 = vrot.slane %v11987_v34, 5  ;;  %v227_v44 = vrot.slane %v11996_v36, 4 }
  0x2c   :  { %v207_v35 = vor.u32 %v206_v0, %v202_v49  ;;  %v230_v56 = vrot.slane %v11997_v8, 5  ;;  %v12001_v28 = vshll.u32 %v9176_v18, 16  ;;  %v217_v11 = vor.u32 %v216_v31, %v212_v52 }
  0x2d   :  { %v203_v34 = vsel %vm8867_vm3, %v198_v37, %v202_v49  ;;  %v12002_v7 = vshrl.u32 %v9176_v18, 16  ;;  %v12000_v6 = vshll.u32 %v9187_v30, 16  ;;  %v12006_v49 = vshrl.u32 %v9187_v30, 16 }
  0x2e   :  { %v6951_v48 = vcombine.low %v189_v27, %v203_v34  ;;  %v208_v25 = vrot.slane %v207_v35, 4  ;;  %v231_v50 = vor.u32 %v230_v56, %v227_v44  ;;  %v236_v0 = vrot.slane %v12001_v28, 5  ;;  %v8595_v35 = vld [vmem:[%s11935_s1 + $0x20] sm:$0xff]  }
  0x2f   :  { %v218_v36 = vrot.slane %v217_v11, 4  ;;  %v240_v8 = vrot.slane %v12002_v7, 4  ;;  %v246_v29 = vrot.slane %v12000_v6, 5  ;;  %v12005_v27 = vshll.u32 %v9212_v59, 16  ;;  %v8589_v11 = vld [vmem:[%s11937_s2 + $0x8] sm:$0x3f]  }
  0x30   :  { %7804 = vmatprep.mubr.msk.bf16.mxu0 %vm412_vm4, %v6951_v48  ;;  %v213_v37 = vsel %vm8867_vm3, %v208_v25, %v212_v52  ;;  %v232_v34 = vrot.slane %v231_v50, 4  ;;  %v12004_v31 = vshrl.u32 %v9217_v10, 16  ;;  %v250_v25 = vrot.slane %v12006_v49, 4 }
  0x31   :  { %v223_v44 = vsel %vm8867_vm3, %v218_v36, %v222_v55  ;;  %v241_v56 = vor.u32 %v240_v8, %v236_v0  ;;  %v12003_v50 = vshll.u32 %v9217_v10, 16  ;;  %v256_v28 = vrot.slane %v12005_v27, 5 }
  0x32   :  { %v6952_v52 = vcombine.low %v213_v37, %v223_v44  ;;  %7825 = vmatmul.mubr.msk.bf16.vlgmr.msra.gmra.mrb[8].mxu1 %vm412_vm4, %v8979_v45  ;;  %v237_v6 = vsel %vm8867_vm3, %v232_v34, %v236_v0  ;;  %v261_v7 = vrot.slane %v12004_v31, 4  ;;  %v251_v36 = vor.u32 %v250_v25, %v246_v29 }
  0x33   :  { %7877 = vmatpush3.bf16.msra.mxu1 %v9101_v54  ;;  %v242_v8 = vrot.slane %v241_v56, 4  ;;  %7828 = vmatprep.mubr.msk.bf16.mxu1 %vm412_vm4, %v9071_v58  ;;  %v264_v55 = vrot.slane %v12003_v50, 5  ;;  %v838_v45 = vsel %vm449_vm2, %v9106_v23, 0  ;;  %v981_v0 = vsel %vm449_vm2, %v8589_v11, 0  ;;  %v9272_v54 = vld [vmem:[%s11937_s2 + $0x20] sm:$0xff]  }
  0x34   :  { %7805 = vmatmul.mubr.msk.bf16.gmra.mrb[8].mxu0 %vm412_vm4, %v6952_v52  ;;  %8556 = vmatprep.subr.msk.bf16.mxu1 %vm449_vm2, %v8589_v11  ;;  %v252_v37 = vrot.slane %v251_v36, 4  ;;  %v9299_v24 = vcombine.low %v8904_v42, %v8948_v14  ;;  %v12122_v36 = vshrl.u32 %v8811_v2, 16  ;;  %vm1121_vm6 = vcmask 1046532  }
  0x35   :  { %v247_v58 = vsel %vm8867_vm3, %v242_v8, %v246_v29  ;;  %v265_v34 = vor.u32 %v264_v55, %v261_v7  ;;  %7851 = vmatpush3.bf16.msra.mxu0 %v838_v45  ;;  %v9285_v29 = vcombine.low %v8811_v2, %v8816_v3  ;;  %vm9381_vm7 = vmor %vm1120_vm5, %vm1121_vm6  ;;  %v9410_v31 = vcombine.low %v9002_v63, %v9049_v47 }
  0x36   :  { %v6953_v44 = vcombine.low %v237_v6, %v247_v58  ;;  %7904 = vmatprep.subr.bf16.mxu0 %v8595_v35  ;;  %v257_v23 = vsel %vm8867_vm3, %v252_v37, %v256_v28  ;;  %v9295_v6 = vcombine.low %v8821_v4, %v8896_v39  ;;  %v9316_v28 = vld [vmem:[%s11935_s1 + $0x30] sm:$0xff]   ;;  %v1622_v55 = vrot.slane %v12122_v36, 5 }
  0x37   :  { %v266_v56 = vrot.slane %v265_v34, 4  ;;  %7879 = vmatpush3.bf16.msra.mxu1 %v981_v0  ;;  %12120 = vst [vmem:[#allocation11_spill] sm:$0xff] %v9316_v28  ;;  %v9330_v0 = vcombine.low %v9017_v51, %v9028_v46  ;;  %v1125_v58 = vrot.slane %v8816_v3, 5  ;;  %v12124_v37 = vshrl.u32 %v8816_v3, 16 }
  0x38   :  { %7808 = vmatprep.mubr.msk.bf16.mxu0 %vm412_vm4, %v6953_v44  ;;  %7932 = vmatprep.subr.bf16.mxu1 %v9272_v54  ;;  %v12128_v36 = vshll.u32 %v8830_v9, 16  ;;  %vm1619_vm8 = vsmask.f32 2304  ;;  %vm1620_vm9 = vsmask.f32 6416  ;;  %v12143_v63 = vshll.u32 %v8977_v41, 16 }
  0x39   :  { %v271_v11 = vsel %vm8867_vm3, %v266_v56, %v8873_v26  ;;  %v1636_v26 = vshrl.u32 %v8891_v38, 16  ;;  %v1626_v34 = vrot.slane %v12124_v37, 5  ;;  %v9339_v56 = vcombine.low %v9041_v20, %v9096_v22  ;;  %vm9416_vm10 = vmor %vm1619_vm8, %vm1620_vm9 }
  0x3a   :  { %v6954_v7 = vcombine.low %v257_v23, %v271_v11  ;;  %7829 = vmatmul.mubr.msk.bf16.gmra.mrb[12].mxu1 %vm412_vm4, %v9167_v13  ;;  %v8601_v13 = vld [vmem:[%s11935_s1 + $0x28] sm:$0x3f]   ;;  %v12126_v11 = vshll.u32 %v8821_v4, 16  ;;  %vm2198_vm11 = vcmask 1041408   ;;  %vm2199_vm12 = vcmask 1045508  }
  0x3b   :  { %7832 = vmatprep.mubr.msk.bf16.mxu1 %vm412_vm4, %v6951_v48  ;;  %v1292_v48 = vsel %vm449_vm2, %v8601_v13, 0  ;;  %v9318_v25 = vrot.slane %v1636_v26, 5  ;;  %v12127_v26 = vshrl.u32 %v8830_v9, 16  ;;  %vm9869_vm13 = vmor %vm2198_vm11, %vm2199_vm12  ;;  %vm4113_vm14 = vcmask 1041409  }
  0x3c   :  { %7809 = vmatmul.mubr.msk.bf16.gmra.mrb[12].mxu0 %vm412_vm4, %v6954_v7  ;;  %vm4116_vm15 = vcmask 1042434   ;;  %vm4119_vm0 = vcmask 1043459   ;;  %vm4122_vm1 = vcmask 1044484   ;;  %vm4128_vm3 = vcmask 1046534  }
  0x3d   :  { %7852 = vmatprep.mubr.msk.bf16.mxu0 %vm412_vm4, %v9285_v29  ;;  %vm4262_vm5 = vcmask 588800   ;;  %vm4275_vm6 = vcmask 1043456   ;;  %vm8731_vm8 = vmmov 0  }
  0x42   :  { %7833 = vmatmul.mubr.msk.bf16.gmra.mrb[16].mxu1 %vm412_vm4, %v6952_v52  ;;  %v12121_v52 = vshll.u32 %v8891_v38, 16 }
  0x43   :  { %7836 = vmatprep.mubr.msk.bf16.mxu1 %vm412_vm4, %v6953_v44  ;;  %v12125_v44 = vshll.u32 %v8816_v3, 16  ;;  %v12129_v3 = vshrl.u32 %v8847_v17, 16 }
  0x44   :  { %7853 = vmatmul.mubr.msk.bf16.vlgmr.msra.gmra.mrb[0].mxu0 %vm412_vm4, %v9295_v6  ;;  %v9322_v8 = vrot.slane %v12121_v52, 6  ;;  %v9345_v52 = vrot.slane %v12127_v26, 5 }
  0x45   :  { %7856 = vmatprep.mubr.msk.bf16.mxu0 %vm412_vm4, %v9299_v24  ;;  %7905 = vmatpush3.bf16.msra.mxu0 %v8595_v35  ;;  %v12123_v35 = vshll.u32 %v8811_v2, 16  ;;  %v1627_v23 = vrot.slane %v12125_v44, 6  ;;  %v9353_v37 = vrot.slane %v12129_v3, 5  ;;  %v7031_v3 = vrot.slane %v8811_v2, 9 }
  0x46   :  { %8557 = vmatprep.subr.msk.bf16.mxu0 %vm449_vm2, %v8601_v13  ;;  %v1632_v13 = vrot.slane %v12126_v11, 6  ;;  %v12131_v11 = vshll.u32 %v8854_v19, 16  ;;  %v12139_v2 = vshrl.u32 %v8821_v4, 16 }
  0x47   :  { %v1623_v45 = vrot.slane %v12123_v35, 6  ;;  %v9349_v35 = vrot.slane %v12128_v36, 6  ;;  %v1640_v36 = vor.u32 %v9322_v8, %v9318_v25  ;;  %v12134_v25 = vmov 0 }
  0x48   :  { %v9363_v26 = vrot.slane %v12131_v11, 6  ;;  %v12135_v25 = vsel %vm9381_vm7, 4294967295, %v12134_v25  ;;  %v9398_v8 = vcombine.low %v8830_v9, %v8847_v17  ;;  %v9402_v11 = vcombine.low %v8909_v43, %v8934_v61 }
  0x49   :  { %7907 = vmatpush3.bf16.msra.mxu0 %v1292_v48  ;;  %v12130_v48 = vshll.u32 %v8847_v17, 16  ;;  %12136 = vst [vmem:[#allocation13_spill] sm:$0xff] %v12135_v25  ;;  %v9414_v27 = vsel %vm9381_vm7, %v7031_v3, %v1125_v58  ;;  %v1624_v17 = vor.u32 %v1623_v45, %v1622_v55  ;;  %v1628_v49 = vor.u32 %v1627_v23, %v1626_v34 }
  0x4a   :  { %7837 = vmatmul.mubr.msk.bf16.gmra.mrb[20].mxu1 %vm412_vm4, %v6954_v7  ;;  %7960 = vmatprep.subr.bf16.mxu0 %v9316_v28  ;;  %v12132_v7 = vor.u32 %v8952_v16, %v8938_v1  ;;  %v9390_v1 = vcombine.low %v9165_v15, %v9176_v18  ;;  %v9394_v16 = vcombine.low %v9187_v30, %v9217_v10  ;;  %v1631_v43 = vrot.slane %v12139_v2, 5 }
  0x4b   :  { %v9359_v44 = vrot.slane %v12130_v48, 6  ;;  %7840 = vmatprep.mubr.msk.bf16.mxu1 %vm412_vm4, %v8936_v62  ;;  %v9377_v48 = vcombine.low %v9128_v21, %v9138_v12  ;;  %v1127_v62 = vrot.slane %v1125_v58, 4  ;;  %v12141_v3 = vshrl.u32 %v8948_v14, 16 }
  0x4c   :  { %v1645_v50 = vrot.slane %v12132_v7, 4  ;;  %7857 = vmatmul.mubr.msk.bf16.gmra.mrb[4].mxu0 %vm412_vm4, %v9330_v0  ;;  %v9406_v7 = vcombine.low %v8943_v5, %v8994_v53  ;;  %v12140_v53 = vrot.slane %v8821_v4, 5  ;;  %v1625_v55 = vrot.slane %v1624_v17, 4 }
  0x4d   :  { %12133 = vst [vmem:[#allocation12_spill] sm:$0xff] %v9377_v48  ;;  %7860 = vmatprep.mubr.msk.bf16.mxu0 %vm412_vm4, %v9339_v56  ;;  %v1651_v5 = vrot.slane %v12141_v3, 5  ;;  %v1630_v45 = vrot.slane %v1628_v49, 4  ;;  %v1633_v34 = vor.u32 %v1632_v13, %v1631_v43  ;;  %v1650_v23 = vrot.slane %v9010_v33, 4  ;;  %v9449_v43 = vld [vmem:[%s11937_s2 + $0x28] sm:$0x3f]  }
  0x4e   :  { %v9426_v47 = vsel %vm9381_vm7, %v1127_v62, %v12140_v53  ;;  %v1649_v58 = vsel %vm9416_vm10, %v1645_v50, %v9010_v33  ;;  %v12142_v53 = vshll.u32 %v8948_v14, 16  ;;  %v1656_v2 = vshrl.u32 %v8977_v41, 16 }
  0x4f   :  { %v1659_v61 = vrot.slane %v12143_v63, 6  ;;  %v12144_v50 = vshrl.u32 %v9017_v51, 16  ;;  %v1629_v33 = vsel %vm9416_vm10, %v1625_v55, %v1628_v49  ;;  %v1635_v13 = vrot.slane %v1633_v34, 4 }
  0x50   :  { %v1652_v62 = vrot.slane %v12142_v53, 6  ;;  %v12145_v63 = vshll.u32 %v9017_v51, 16  ;;  %v1658_v53 = vrot.slane %v1656_v2, 5 }
  0x51   :  { %v1662_v28 = vrot.slane %v12144_v50, 5  ;;  %v12147_v50 = vshrl.u32 %v9028_v46, 16  ;;  %v1641_v49 = vsel %vm9416_vm10, %v1635_v13, %v1640_v36 }
  0x52   :  { %7841 = vmatmul.mubr.msk.bf16.gmra.mrb[24].mxu1 %vm412_vm4, %v9030_v60  ;;  %v1634_v60 = vsel %vm9416_vm10, %v1630_v45, %v1633_v34  ;;  %v1663_v17 = vrot.slane %v12145_v63, 6  ;;  %v12148_v45 = vshll.u32 %v9028_v46, 16  ;;  %v12149_v63 = vshrl.u32 %v9041_v20, 16 }
  0x53   :  { %7844 = vmatprep.mubr.msk.bf16.mxu1 %vm412_vm4, %v9130_v32  ;;  %v9459_v3 = vcombine.low %v1629_v33, %v1634_v60  ;;  %v1653_v32 = vor.u32 %v1652_v62, %v1651_v5  ;;  %v1666_v25 = vrot.slane %v12147_v50, 5  ;;  %v9471_v33 = vcombine.low %v1641_v49, %v1649_v58 }
  0x54   :  { %7861 = vmatmul.mubr.msk.bf16.gmra.mrb[8].mxu0 %vm412_vm4, %v9377_v48  ;;  %v1664_v55 = vor.u32 %v1663_v17, %v1662_v28  ;;  %v1667_v34 = vrot.slane %v12148_v45, 6  ;;  %v1671_v48 = vrot.slane %v12149_v63, 5  ;;  %v1660_v2 = vor.u32 %v1659_v61, %v1658_v53 }
  0x55   :  { %12146 = vst [vmem:[#allocation14_spill] sm:$0xff] %v9459_v3  ;;  %7864 = vmatprep.mubr.msk.bf16.mxu0 %vm412_vm4, %v9390_v1  ;;  %12150 = vst [vmem:[#allocation15_spill] sm:$0xff] %v9471_v33  ;;  %v1654_v5 = vsel %vm9416_vm10, %v1650_v23, %v1653_v32  ;;  %v1655_v62 = vrot.slane %v1653_v32, 4  ;;  %v9477_v60 = vsel %vm449_vm2, %v9449_v43, 0  ;;  %v12151_v28 = vshll.u32 %v9041_v20, 16 }
  0x56   :  { %v1665_v50 = vrot.slane %v1664_v55, 4  ;;  %v1668_v36 = vor.u32 %v1667_v34, %v1666_v25  ;;  %v1676_v58 = vshrl.u32 %v9091_v40, 16  ;;  %v12152_v49 = vshll.u32 %v9091_v40, 16 }
  0x57   :  { %v1672_v13 = vrot.slane %v12151_v28, 6  ;;  %v1661_v17 = vsel %vm9416_vm10, %v1655_v62, %v1660_v2  ;;  %v12153_v23 = vshrl.u32 %v9096_v22, 16  ;;  %v12155_v63 = vshll.u32 %v9096_v22, 16 }
  0x58   :  { %v1679_v45 = vrot.slane %v12152_v49, 6  ;;  %v9488_v32 = vcombine.low %v1654_v5, %v1661_v17  ;;  %v1669_v53 = vsel %vm9416_vm10, %v1665_v50, %v1668_v36  ;;  %v1670_v25 = vrot.slane %v1668_v36, 4 }
  0x59   :  { %v1682_v61 = vrot.slane %v12153_v23, 5  ;;  %v1673_v55 = vor.u32 %v1672_v13, %v1671_v48  ;;  %v1678_v34 = vrot.slane %v1676_v58, 5  ;;  %v1683_v62 = vrot.slane %v12155_v63, 6 }
  0x5a   :  { %12154 = vst [vmem:[#allocation16_spill] sm:$0xff] %v9488_v32  ;;  %7845 = vmatmul.mubr.msk.bf16.gmra.mrb[28].mxu1 %vm412_vm4, %v9178_v57  ;;  %v12156_v2 = vshrl.u32 %v9128_v21, 16  ;;  %v12157_v49 = vshll.u32 %v9128_v21, 16  ;;  %v12158_v50 = vshrl.u32 %v9138_v12, 16  ;;  %v12159_v36 = vshll.u32 %v9138_v12, 16 }
  0x5b   :  { %7880 = vmatprep.mubr.msk.bf16.mxu1 %vm412_vm4, %v9285_v29  ;;  %v1674_v5 = vsel %vm9416_vm10, %v1670_v25, %v1673_v55  ;;  %v1675_v48 = vrot.slane %v1673_v55, 4  ;;  %v1680_v58 = vor.u32 %v1679_v45, %v1678_v34  ;;  %v1684_v63 = vor.u32 %v1683_v62, %v1682_v61  ;;  %v12161_v25 = vld [vmem:[#allocation10_spill] sm:$0xff] }
  0x5c   :  { %v1686_v28 = vrot.slane %v12156_v2, 5  ;;  %v1687_v23 = vrot.slane %v12157_v49, 6  ;;  %v1691_v57 = vrot.slane %v12158_v50, 5  ;;  %v1692_v13 = vrot.slane %v12159_v36, 6  ;;  %7865 = vmatmul.mubr.msk.bf16.gmra.mrb[12].mxu0 %vm412_vm4, %v9394_v16 }
  0x5d   :  { %v9510_v17 = vcombine.low %v1669_v53, %v1674_v5  ;;  %7868 = vmatprep.mubr.msk.bf16.mxu0 %vm412_vm4, %v9398_v8  ;;  %v1696_v55 = vshrl.u32 %v12161_v25, 16  ;;  %v12162_v49 = vshll.u32 %v12161_v25, 16  ;;  %v12163_v32 = vshrl.u32 %v9165_v15, 16 }
  0x5e   :  { %v1688_v2 = vor.u32 %v1687_v23, %v1686_v28  ;;  %v1693_v29 = vor.u32 %v1692_v13, %v1691_v57  ;;  %v1681_v33 = vsel %vm9416_vm10, %v1675_v48, %v1680_v58  ;;  %v1685_v53 = vrot.slane %v1684_v63, 4 }
  0x5f   :  { %12160 = vst [vmem:[#allocation17_spill] sm:$0xff] %v9510_v17  ;;  %v1699_v50 = vrot.slane %v12162_v49, 6  ;;  %v1702_v36 = vrot.slane %v12163_v32, 5  ;;  %v12164_v45 = vshll.u32 %v9165_v15, 16  ;;  %v1698_v62 = vrot.slane %v1696_v55, 5 }
  0x60   :  { %v1690_v5 = vrot.slane %v1688_v2, 4  ;;  %v1695_v34 = vrot.slane %v1693_v29, 4  ;;  %v12165_v28 = vshrl.u32 %v9176_v18, 16  ;;  %v12166_v57 = vshll.u32 %v9176_v18, 16 }
  0x61   :  { %v1703_v61 = vrot.slane %v12164_v45, 6  ;;  %v1689_v49 = vsel %vm9416_vm10, %v1685_v53, %v1688_v2  ;;  %v12167_v58 = vshrl.u32 %v9187_v30, 16  ;;  %v1700_v45 = vor.u32 %v1699_v50, %v1698_v62 }
  0x62   :  { %v1706_v23 = vrot.slane %v12165_v28, 5  ;;  %v1707_v13 = vrot.slane %v12166_v57, 6  ;;  %v1694_v32 = vsel %vm9416_vm10, %v1690_v5, %v1693_v29  ;;  %v9533_v17 = vcombine.low %v1681_v33, %v1689_v49  ;;  %7881 = vmatmul.mubr.msk.bf16.vlgmr.msra.gmra.mrb[8].mxu1 %vm412_vm4, %v9295_v6 }
  0x63   :  { %v1704_v48 = vor.u32 %v1703_v61, %v1702_v36  ;;  %v1711_v63 = vrot.slane %v12167_v58, 5  ;;  %v12168_v3 = vshll.u32 %v9187_v30, 16  ;;  %v1716_v2 = vshrl.u32 %v9212_v59, 16  ;;  %7933 = vmatpush3.bf16.msra.mxu1 %v9272_v54  ;;  %7884 = vmatprep.mubr.msk.bf16.mxu1 %vm412_vm4, %v9299_v24  ;;  %v9558_v54 = vld [vmem:[%s11937_s2 + $0x30] sm:$0xff]  }
  0x64   :  { %v1708_v55 = vor.u32 %v1707_v13, %v1706_v23  ;;  %v12169_v53 = vshll.u32 %v9212_v59, 16  ;;  %v12170_v36 = vshrl.u32 %v9217_v10, 16  ;;  %v12171_v6 = vshll.u32 %v9217_v10, 16  ;;  %7869 = vmatmul.mubr.msk.bf16.gmra.mrb[16].mxu0 %vm412_vm4, %v9402_v11  ;;  %8558 = vmatprep.subr.msk.bf16.mxu1 %vm449_vm2, %v9449_v43 }
  0x65   :  { %v1712_v28 = vrot.slane %v12168_v3, 6  ;;  %v1705_v57 = vrot.slane %v1704_v48, 4  ;;  %v1701_v3 = vsel %vm9416_vm10, %v1695_v34, %v1700_v45  ;;  %v1718_v62 = vrot.slane %v1716_v2, 5  ;;  %7872 = vmatprep.mubr.msk.bf16.mxu0 %vm412_vm4, %v9406_v7 }
  0x66   :  { %v1719_v29 = vrot.slane %v12169_v53, 6  ;;  %v1722_v5 = vrot.slane %v12170_v36, 5  ;;  %v1710_v33 = vrot.slane %v1708_v55, 4  ;;  %v1723_v61 = vrot.slane %v12171_v6, 6 }
  0x67   :  { %v1713_v50 = vor.u32 %v1712_v28, %v1711_v63  ;;  %v9560_v24 = vcombine.low %v1694_v32, %v1701_v3  ;;  %v1709_v34 = vsel %vm9416_vm10, %v1705_v57, %v1708_v55  ;;  %v1728_v23 = vor.u32 %v9349_v35, %v9345_v52  ;;  %7935 = vmatpush3.bf16.msra.mxu1 %v9477_v60 }
  0x68   :  { %v1724_v49 = vor.u32 %v1723_v61, %v1722_v5  ;;  %v1733_v48 = vor.u32 %v9359_v44, %v9353_v37  ;;  %v1720_v58 = vor.u32 %v1719_v29, %v1718_v62  ;;  %v1736_v45 = vshrl.u32 %v8854_v19, 16  ;;  %7988 = vmatprep.subr.bf16.mxu1 %v9558_v54 }
  0x69   :  { %v1714_v43 = vsel %vm9416_vm10, %v1710_v33, %v1713_v50  ;;  %v1715_v13 = vrot.slane %v1713_v50, 4  ;;  %v1730_v63 = vrot.slane %v1728_v23, 4  ;;  %v1131_v55 = vrot.slane %v8891_v38, 5 }
  0x6a   :  { %v9572_v32 = vcombine.low %v1709_v34, %v1714_v43  ;;  %v7032_v52 = vrot.slane %v8896_v39, 9  ;;  %v1135_v35 = vrot.slane %v8904_v42, 5  ;;  %v1725_v28 = vrot.slane %v1724_v49, 4  ;;  %7885 = vmatmul.mubr.msk.bf16.gmra.mrb[12].mxu1 %vm412_vm4, %v9330_v0 }
  0x6b   :  { %v1721_v37 = vsel %vm9416_vm10, %v1715_v13, %v1720_v58  ;;  %v1734_v44 = vsel %vm9416_vm10, %v1730_v63, %v1733_v48  ;;  %v1735_v57 = vrot.slane %v1733_v48, 4  ;;  %v1738_v2 = vrot.slane %v1736_v45, 5  ;;  %7888 = vmatprep.mubr.msk.bf16.mxu1 %vm412_vm4, %v9339_v56  ;;  %v8605_v48 = vld [vmem:[%s11935_s1 + $0x38] sm:$0x3f]   ;;  %v9657_v45 = vld [vmem:[%s11935_s1 + $0x40] sm:$0xff]  }
  0x6c   :  { %v12172_v19 = vrot.slane %v8821_v4, 5  ;;  %v9588_v39 = vcombine.low %v9414_v27, %v9426_v47  ;;  %v1141_v42 = vrot.slane %v8977_v41, 5  ;;  %v1729_v60 = vsel %vm9416_vm10, %v1725_v28, %v1728_v23  ;;  %7873 = vmatmul.mubr.msk.bf16.gmra.mrb[20].mxu0 %vm412_vm4, %v9410_v31  ;;  %v8609_v47 = vld [vmem:[%s11935_s1 + $0x48] sm:$0x3f]  }
  0x6d   :  { %v1137_v53 = vrot.slane %v1135_v35, 4  ;;  %v12173_v29 = vrot.slane %v8948_v14, 5  ;;  %v9597_v5 = vcombine.low %v1721_v37, %v1729_v60  ;;  %v1740_v4 = vor.u32 %v9363_v26, %v1738_v2 }
  0x6e   :  { %v1130_v38 = vrot.slane %v12172_v19, 4  ;;  %7908 = vmatprep.mubr.msk.bf16.mxu0 %vm412_vm4, %v9588_v39  ;;  %v1136_v0 = vsel %vm9381_vm7, %v7032_v52, %v1135_v35  ;;  %v1145_v26 = vrot.slane %v9028_v46, 5  ;;  %v1148_v61 = vrot.slane %v9041_v20, 5  ;;  %v12176_v46 = vld [vmem:[#allocation12_spill] sm:$0xff] }
  0x6f   :  { %v1140_v36 = vrot.slane %v12173_v29, 4  ;;  %v1741_v41 = vsel %vm9416_vm10, %v1735_v57, %v1740_v4  ;;  %v12175_v56 = vmov %v12173_v29  ;;  %v7033_v62 = vrot.slane %v9017_v51, 9 }
  0x70   :  { %v1132_v27 = vsel %vm9381_vm7, %v1130_v38, %v1131_v55  ;;  %v9613_v3 = vcombine.low %v1734_v44, %v1741_v41  ;;  %v1139_v33 = vsel %vm9381_vm7, %v1137_v53, %v12175_v56  ;;  %v1147_v23 = vrot.slane %v1145_v26, 4  ;;  %v9692_v38 = vld [vmem:[%s11936_s0 + $0x54] sm:$0xf]  ;;  %v12178_v56 = vld [vmem:[#allocation3_spill] sm:$0xff] }
  0x71   :  { %v1142_v50 = vsel %vm9381_vm7, %v1140_v36, %v1141_v42  ;;  %v9621_v6 = vcombine.low %v1132_v27, %v1136_v0  ;;  %v1150_v43 = vrot.slane %v1148_v61, 4  ;;  %v1151_v14 = vrot.slane %v9091_v40, 5  ;;  %v9702_v27 = vld [vmem:[%s11936_s0 + $0x5c] sm:$0x3] }
  0x72   :  { %v9624_v34 = vcombine.low %v1139_v33, %v1142_v50  ;;  %7889 = vmatmul.mubr.msk.bf16.gmra.mrb[16].mxu1 %vm412_vm4, %v12176_v46  ;;  %v7034_v13 = vrot.slane %v9096_v22, 9  ;;  %v1155_v49 = vrot.slane %v9128_v21, 5  ;;  %v1146_v51 = vsel %vm9381_vm7, %v7033_v62, %v1145_v26  ;;  %v12177_v22 = vld [vmem:[#allocation11_spill] sm:$0xff] }
  0x73   :  { %7892 = vmatprep.mubr.msk.bf16.mxu1 %vm412_vm4, %v9390_v1  ;;  %v1149_v20 = vsel %vm9381_vm7, %v1147_v23, %v1148_v61  ;;  %v1158_v40 = vrot.slane %v9138_v12, 5  ;;  %v1152_v21 = vsel %vm9381_vm7, %v1150_v43, %v1151_v14  ;;  %v1165_v58 = vrot.slane %v9176_v18, 5  ;;  %v9722_v43 = vld [vmem:[%s11936_s0 + $0x60] sm:$0xf] }
  0x74   :  { %7909 = vmatmul.mubr.msk.bf16.vlgmr.msra.gmra.mrb[0].mxu0 %vm412_vm4, %v9621_v6  ;;  %v1156_v1 = vsel %vm9381_vm7, %v7034_v13, %v1155_v49  ;;  %v1871_v63 = vsel %vm449_vm2, %v8605_v48, 0  ;;  %v9659_v12 = vcombine.low %v1146_v51, %v1149_v20  ;;  %v1157_v52 = vrot.slane %v1155_v49, 4  ;;  %v12181_v20 = vld [vmem:[#allocation6_spill] sm:$0xff] }
  0x75   :  { %7912 = vmatprep.mubr.msk.bf16.mxu0 %vm412_vm4, %v9624_v34  ;;  %7961 = vmatpush3.bf16.msra.mxu0 %v12177_v22  ;;  %v9661_v55 = vcombine.low %v1152_v21, %v1156_v1  ;;  %v1160_v35 = vrot.slane %v1158_v40, 4  ;;  %v1161_v28 = vrot.slane %v12161_v25, 5  ;;  %v7035_v37 = vrot.slane %v9165_v15, 9  ;;  %v12182_v22 = vld [vmem:[#allocation7_spill] sm:$0xff] }
  0x76   :  { %8559 = vmatprep.subr.msk.bf16.mxu0 %vm449_vm2, %v8605_v48  ;;  %v1167_v44 = vrot.slane %v1165_v58, 4  ;;  %v1168_v57 = vrot.slane %v9187_v30, 5  ;;  %v1159_v25 = vsel %vm9381_vm7, %v1157_v52, %v1158_v40  ;;  %v1175_v42 = vrot.slane %v9692_v38, 5  ;;  %v12180_v48 = vld [vmem:[#allocation5_spill] sm:$0xff] }
  0x77   :  { %v1162_v15 = vsel %vm9381_vm7, %v1160_v35, %v1161_v28  ;;  %v1166_v30 = vsel %vm9381_vm7, %v7035_v37, %v1165_v58  ;;  %v1171_v29 = vrot.slane %v9212_v59, 5  ;;  %v7036_v36 = vrot.slane %v9217_v10, 9  ;;  %v12183_v58 = vld [vmem:[#allocation8_spill] sm:$0xff] }
  0x78   :  { %v7048_v19 = vcombine.low %v1159_v25, %v1162_v15  ;;  %v1170_v53 = vrot.slane %v1168_v57, 4  ;;  %v1177_v4 = vrot.slane %v1175_v42, 4  ;;  %v1181_v0 = vrot.slane %v9702_v27, 5  ;;  %v12184_v25 = vld [vmem:[#allocation9_spill] sm:$0xff] }
  0x79   :  { %7963 = vmatpush3.bf16.msra.mxu0 %v1871_v63  ;;  %v1185_v33 = vrot.slane %v12178_v56, 5  ;;  %v7037_v14 = vrot.slane %v9722_v43, 9  ;;  %v1191_v51 = vrot.slane %v12180_v48, 5  ;;  %v7038_v40 = vrot.slane %v12181_v20, 9 }
  0x7a   :  { %7893 = vmatmul.mubr.msk.bf16.gmra.mrb[20].mxu1 %vm412_vm4, %v9394_v16  ;;  %8016 = vmatprep.subr.bf16.mxu0 %v9657_v45  ;;  %v1169_v16 = vsel %vm9381_vm7, %v1167_v44, %v1168_v57  ;;  %v1172_v26 = vsel %vm9381_vm7, %v1170_v53, %v1171_v29  ;;  %v1195_v21 = vrot.slane %v12182_v22, 5  ;;  %v1198_v63 = vrot.slane %v12183_v58, 5 }
  0x7b   :  { %7896 = vmatprep.mubr.msk.bf16.mxu1 %vm412_vm4, %v9398_v8  ;;  %v9686_v8 = vld [vmem:[%s11936_s0 + $0x58] sm:$0xf]  ;;  %v7049_v60 = vcombine.low %v1166_v30, %v1169_v16  ;;  %v1187_v13 = vrot.slane %v1185_v33, 4  ;;  %v1186_v1 = vsel %vm9381_vm7, %v7037_v14, %v1185_v33  ;;  %v1201_v15 = vrot.slane %v12184_v25, 5  ;;  %v9758_v16 = vld [vmem:[%s11937_s2 + $0x40] sm:$0xff]  }
  0x7c   :  { %7913 = vmatmul.mubr.msk.bf16.gmra.mrb[4].mxu0 %vm412_vm4, %v9659_v12  ;;  %v1178_v2 = vrot.slane %v9686_v8, 5  ;;  %v1196_v35 = vsel %vm9381_vm7, %v7038_v40, %v1195_v21  ;;  %v1197_v44 = vrot.slane %v1195_v21, 4  ;;  %v1200_v57 = vrot.slane %v1198_v63, 4 }
  0x7d   :  { %7916 = vmatprep.mubr.msk.bf16.mxu0 %vm412_vm4, %v9661_v55  ;;  %v12198_v40 = vshll.u32 %v12180_v48, 16  ;;  %v1776_v48 = vshrl.u32 %v12184_v25, 16 }
  0x7e   :  { %v1180_v41 = vrot.slane %v1178_v2, 4  ;;  %v1179_v50 = vsel %vm9381_vm7, %v1177_v4, %v1178_v2  ;;  %v12185_v2 = vld [vmem:[#allocation14_spill] sm:$0xff]  ;;  %v12192_v4 = vshrl.u32 %v12178_v56, 16 }
  0x80   :  { %v1182_v61 = vsel %vm9381_vm7, %v1180_v41, %v1181_v0  ;;  %v1746_v41 = vrot.slane %v12192_v4, 5  ;;  %v12193_v0 = vshll.u32 %v12178_v56, 16 }
  0x81   :  { %v7051_v46 = vcombine.low %v1179_v50, %v1182_v61  ;;  %v12194_v50 = vshrl.u32 %v12181_v20, 16 }
  0x82   :  { %7897 = vmatmul.mubr.msk.bf16.gmra.mrb[24].mxu1 %vm412_vm4, %v9402_v11  ;;  %v1176_v11 = vsel %vm9381_vm7, %v7036_v36, %v1175_v42  ;;  %v12186_v42 = vld [vmem:[#allocation15_spill] sm:$0xff] }
  0x83   :  { %7900 = vmatprep.mubr.msk.bf16.mxu1 %vm412_vm4, %v9406_v7  ;;  %v7050_v62 = vcombine.low %v1172_v26, %v1176_v11  ;;  %v12179_v7 = vld [vmem:[#allocation4_spill] sm:$0xff]  ;;  %v1747_v26 = vrot.slane %v12193_v0, 6  ;;  %v9803_v11 = vld [vmem:[%s11936_s0 + $0x6c] sm:$0x3]  ;;  %v1762_v61 = vrot.slane %v12194_v50, 5 }
  0x84   :  { %7917 = vmatmul.mubr.msk.bf16.gmra.mrb[8].mxu0 %vm412_vm4, %v7048_v19  ;;  %v1188_v23 = vrot.slane %v12179_v7, 5  ;;  %v1756_v33 = vshrl.u32 %v9803_v11, 16  ;;  %v8703_v50 = vld [vmem:[%s11936_s0] sm:$0xf] }
  0x85   :  { %7920 = vmatprep.mubr.msk.bf16.mxu0 %vm412_vm4, %v7049_v60 }
  0x86   :  { %v1190_v49 = vrot.slane %v1188_v23, 4  ;;  %v1758_v21 = vrot.slane %v1756_v33, 5 }
  0x88   :  { %v1192_v52 = vsel %vm9381_vm7, %v1190_v49, %v1191_v51  ;;  %v1748_v51 = vor.u32 %v1747_v26, %v1746_v41 }
  0x89   :  { %v7053_v37 = vcombine.low %v1192_v52, %v1196_v35  ;;  %v12200_v52 = vshll.u32 %v12182_v22, 16 }
  0x8a   :  { %7901 = vmatmul.mubr.msk.bf16.gmra.mrb[28].mxu1 %vm412_vm4, %v9410_v31  ;;  %v1189_v31 = vsel %vm9381_vm7, %v1187_v13, %v1188_v23  ;;  %v12197_v13 = vshll.u32 %v12179_v7, 16 }
  0x8b   :  { %7936 = vmatprep.mubr.msk.bf16.mxu1 %vm412_vm4, %v9588_v39  ;;  %v7052_v28 = vcombine.low %v1186_v1, %v1189_v31  ;;  %v8606_v39 = vld [vmem:[%s11937_s2 + $0x38] sm:$0x3f]   ;;  %v12199_v31 = vshrl.u32 %v12182_v22, 16  ;;  %v1767_v35 = vrot.slane %v12200_v52, 6  ;;  %v8708_v52 = vld [vmem:[%s11936_s0 + $0x10] sm:$0xf] }
  0x8c   :  { %7921 = vmatmul.mubr.msk.bf16.gmra.mrb[12].mxu0 %vm412_vm4, %v7050_v62  ;;  %v2019_v30 = vsel %vm449_vm2, %v8606_v39, 0  ;;  %v1752_v49 = vrot.slane %v12197_v13, 6 }
  0x8d   :  { %7924 = vmatprep.mubr.msk.bf16.mxu0 %vm412_vm4, %v7051_v46 }
  0x92   :  { %7937 = vmatmul.mubr.msk.bf16.vlgmr.msra.gmra.mrb[8].mxu1 %vm412_vm4, %v9621_v6  ;;  %v1199_v6 = vsel %vm9381_vm7, %v1197_v44, %v1198_v63  ;;  %v1766_v63 = vrot.slane %v12199_v31, 5  ;;  %v8707_v31 = vld [vmem:[%s11936_s0 + $0xc] sm:$0x3] }
  0x93   :  { %7989 = vmatpush3.bf16.msra.mxu1 %v9558_v54  ;;  %7940 = vmatprep.mubr.msk.bf16.mxu1 %vm412_vm4, %v9624_v34  ;;  %v1202_v54 = vsel %vm9381_vm7, %v1200_v57, %v1201_v15  ;;  %v12202_v57 = vshll.u32 %v12183_v58, 16  ;;  %vm6515_vm7 = vcmask 523264  }
  0x94   :  { %7925 = vmatmul.mubr.msk.bf16.gmra.mrb[16].mxu0 %vm412_vm4, %v7052_v28  ;;  %8560 = vmatprep.subr.msk.bf16.mxu1 %vm449_vm2, %v8606_v39  ;;  %v7054_v34 = vcombine.low %v1199_v6, %v1202_v54 }
  0x95   :  { %7928 = vmatprep.mubr.msk.bf16.mxu0 %vm412_vm4, %v7053_v37  ;;  %v1772_v15 = vrot.slane %v12202_v57, 6  ;;  %v8710_v57 = vld [vmem:[%s11936_s0 + $0x24] sm:$0xf] }
  0x97   :  { %7991 = vmatpush3.bf16.msra.mxu1 %v2019_v30 }
  0x98   :  { %8044 = vmatprep.subr.bf16.mxu1 %v9758_v16 }
  0x9a   :  { %7941 = vmatmul.mubr.msk.bf16.gmra.mrb[12].mxu1 %vm412_vm4, %v9659_v12  ;;  %v12187_v12 = vld [vmem:[#allocation16_spill] sm:$0xff] }
  0x9b   :  { %7944 = vmatprep.mubr.msk.bf16.mxu1 %vm412_vm4, %v9661_v55  ;;  %v2370_v55 = vsel %vm449_vm2, %v8609_v47, 0 }
  0x9c   :  { %7929 = vmatmul.mubr.msk.bf16.gmra.mrb[20].mxu0 %vm412_vm4, %v7054_v34 }
  0x9d   :  { %7964 = vmatprep.mubr.msk.bf16.mxu0 %vm412_vm4, %v12185_v2 }
  0xa2   :  { %7945 = vmatmul.mubr.msk.bf16.gmra.mrb[16].mxu1 %vm412_vm4, %v7048_v19  ;;  %v12188_v19 = vld [vmem:[#allocation17_spill] sm:$0xff] }
  0xa3   :  { %7948 = vmatprep.mubr.msk.bf16.mxu1 %vm412_vm4, %v7049_v60  ;;  %v12189_v60 = vld [vmem:[#allocation2_spill] sm:$0xff] }
  0xa4   :  { %7965 = vmatmul.mubr.msk.bf16.vlgmr.msra.gmra.mrb[0].mxu0 %vm412_vm4, %v12186_v42  ;;  %v12190_v53 = vshrl.u32 %v12189_v60, 16 }
  0xa5   :  { %7968 = vmatprep.mubr.msk.bf16.mxu0 %vm412_vm4, %v12187_v12  ;;  %8017 = vmatpush3.bf16.msra.mxu0 %v9657_v45  ;;  %v12191_v45 = vshll.u32 %v12189_v60, 16  ;;  %v12203_v60 = vshll.u32 %v12184_v25, 16  ;;  %v8610_v25 = vld [vmem:[%s11937_s2 + $0x48] sm:$0x3f]  }
  0xa6   :  { %8561 = vmatprep.subr.msk.bf16.mxu0 %vm449_vm2, %v8609_v47  ;;  %v1742_v29 = vrot.slane %v12190_v53, 5  ;;  %v1768_v47 = vor.u32 %v1767_v35, %v1766_v63  ;;  %v2209_v63 = vrot.slane %v8707_v31, 6  ;;  %v7136_v35 = vrot.slane %v8708_v52, 10 }
  0xa7   :  { %v1743_v36 = vrot.slane %v12191_v45, 6  ;;  %v1779_v53 = vrot.slane %v12203_v60, 6  ;;  %v8702_v45 = vld [vmem:[%s11936_s0 + $0x4] sm:$0xf]  ;;  %v8713_v60 = vld [vmem:[%s11936_s0 + $0x2c] sm:$0x3] }
  0xa8   :  { %v1770_v0 = vrot.slane %v1768_v47, 4  ;;  %v2253_v31 = vrot.slane %v9692_v38, 6 }
  0xa9   :  { %8019 = vmatpush3.bf16.msra.mxu0 %v2370_v55  ;;  %v1744_v56 = vor.u32 %v1743_v36, %v1742_v29  ;;  %v1778_v55 = vrot.slane %v1776_v48, 5  ;;  %v2203_v36 = vrot.slane %v8702_v45, 6  ;;  %v8715_v45 = vld [vmem:[%s11936_s0 + $0x34] sm:$0xf] }
  0xaa   :  { %7949 = vmatmul.mubr.msk.bf16.gmra.mrb[20].mxu1 %vm412_vm4, %v7050_v62  ;;  %v12195_v62 = vshll.u32 %v12181_v20, 16  ;;  %v1759_v20 = vrot.slane %v12198_v40, 6 }
  0xab   :  { %7952 = vmatprep.mubr.msk.bf16.mxu1 %vm412_vm4, %v7051_v46  ;;  %v12196_v46 = vshrl.u32 %v12179_v7, 16  ;;  %v12201_v7 = vshrl.u32 %v12183_v58, 16  ;;  %v1780_v33 = vor.u32 %v1779_v53, %v1778_v55  ;;  %v2229_v53 = vrot.slane %v8713_v60, 6 }
  0xac   :  { %7969 = vmatmul.mubr.msk.bf16.gmra.mrb[4].mxu0 %vm412_vm4, %v12188_v19  ;;  %v1763_v23 = vrot.slane %v12195_v62, 6  ;;  %v1760_v6 = vor.u32 %v1759_v20, %v1758_v21  ;;  %v2205_v62 = vrot.slane %v2203_v36, 4  ;;  %v8706_v20 = vld [vmem:[%s11936_s0 + $0x14] sm:$0xf] }
  0xad   :  { %7972 = vmatprep.mubr.msk.bf16.mxu0 %vm412_vm4, %v9533_v17  ;;  %v1751_v14 = vrot.slane %v12196_v46, 5  ;;  %v1771_v44 = vrot.slane %v12201_v7, 5  ;;  %v2213_v9 = vrot.slane %v8706_v20, 6  ;;  %v8611_v46 = vld [vmem:[%s11938_s4 + $0x24] sm:$0xff]  }
  0xae   :  { %v1764_v1 = vor.u32 %v1763_v23, %v1762_v61  ;;  %v7135_v61 = vrot.slane %v8703_v50, 10  ;;  %v8704_v23 = vld [vmem:[%s11936_s0 + $0x8] sm:$0xf]  ;;  %v2243_v50 = vrot.slane %v9176_v18, 6  ;;  %8072 = vmatprep.subr.bf16.mxu0 %v8611_v46 }
  0xaf   :  { %v1753_v39 = vor.u32 %v1752_v49, %v1751_v14  ;;  %v8705_v49 = vld [vmem:[%s11936_s0 + $0x18] sm:$0xf] }
  0xb0   :  { %v1765_v54 = vrot.slane %v1764_v1, 4  ;;  %v2204_v14 = vsel %vm9869_vm13, %v7135_v61, %v2203_v36  ;;  %v2233_v36 = vrot.slane %v8715_v45, 6  ;;  %v2245_v18 = vrot.slane %v2243_v50, 4 }
  0xb1   :  { %v1755_v30 = vrot.slane %v1753_v39, 4 }
  0xb2   :  { %7953 = vmatmul.mubr.msk.bf16.gmra.mrb[24].mxu1 %vm412_vm4, %v7052_v28  ;;  %v1745_v28 = vrot.slane %v1744_v56, 4  ;;  %v1769_v29 = vsel %vm9416_vm10, %v1765_v54, %v1768_v47  ;;  %v2206_v56 = vrot.slane %v8704_v23, 6  ;;  %v2235_v23 = vrot.slane %v2233_v36, 4 }
  0xb3   :  { %7956 = vmatprep.mubr.msk.bf16.mxu1 %vm412_vm4, %v7053_v37  ;;  %v1750_v37 = vrot.slane %v1748_v51, 4 }
  0xb4   :  { %7973 = vmatmul.mubr.msk.bf16.gmra.mrb[8].mxu0 %vm412_vm4, %v9560_v24  ;;  %v1749_v22 = vsel %vm9416_vm10, %v1745_v28, %v1748_v51  ;;  %v2207_v13 = vsel %vm9869_vm13, %v2205_v62, %v2206_v56  ;;  %v2216_v51 = vrot.slane %v8705_v49, 6  ;;  %v2208_v21 = vrot.slane %v2206_v56, 4 }
  0xb5   :  { %7976 = vmatprep.mubr.msk.bf16.mxu0 %vm412_vm4, %v9572_v32  ;;  %v1754_v58 = vsel %vm9416_vm10, %v1750_v37, %v1753_v39  ;;  %v9895_v1 = vcombine.low %v2204_v14, %v2207_v13  ;;  %v2215_v28 = vrot.slane %v2213_v9, 4  ;;  %v8709_v37 = vld [vmem:[%s11936_s0 + $0x1c] sm:$0x3]  ;;  %v8719_v13 = vld [vmem:[%s11936_s0 + $0x48] sm:$0xf] }
  0xb6   :  { %v9850_v4 = vcombine.low %v1749_v22, %v1754_v58  ;;  %v2218_v39 = vrot.slane %v2216_v51, 4  ;;  %v2219_v7 = vrot.slane %v8709_v37, 6  ;;  %v8712_v22 = vld [vmem:[%s11936_s0 + $0x20] sm:$0xf]  ;;  %v2246_v49 = vrot.slane %v8719_v13, 6 }
  0xb7   :  { %v7137_v58 = vrot.slane %v8712_v22, 10 }
  0xb8   :  { %v2220_v48 = vsel %vm9869_vm13, %v2218_v39, %v2219_v7  ;;  %v2248_v52 = vrot.slane %v2246_v49, 4  ;;  %v2255_v39 = vrot.slane %v2253_v31, 4  ;;  %v2259_v7 = vrot.slane %v9702_v27, 6 }
  0xba   :  { %7957 = vmatmul.mubr.msk.bf16.gmra.mrb[28].mxu1 %vm412_vm4, %v7054_v34  ;;  %v1773_v34 = vor.u32 %v1772_v15, %v1771_v44  ;;  %v2210_v44 = vsel %vm9869_vm13, %v2208_v21, %v2209_v63  ;;  %v2223_v15 = vrot.slane %v8710_v57, 6 }
  0xbb   :  { %7992 = vmatprep.mubr.msk.bf16.mxu1 %vm412_vm4, %v12185_v2  ;;  %v1761_v2 = vsel %vm9416_vm10, %v1755_v30, %v1760_v6  ;;  %v8711_v6 = vld [vmem:[%s11936_s0 + $0x28] sm:$0xf] }
  0xbc   :  { %7977 = vmatmul.mubr.msk.bf16.gmra.mrb[12].mxu0 %vm412_vm4, %v9597_v5  ;;  %v9855_v41 = vcombine.low %v1761_v2, %v1769_v29  ;;  %v1775_v26 = vrot.slane %v1773_v34, 4  ;;  %v2226_v54 = vrot.slane %v8711_v6, 6  ;;  %v8714_v2 = vld [vmem:[%s11936_s0 + $0x30] sm:$0xf]  ;;  %v2269_v6 = vrot.slane %v9803_v11, 6 }
  0xbd   :  { %7980 = vmatprep.mubr.msk.bf16.mxu0 %vm412_vm4, %v9613_v3  ;;  %v7138_v29 = vrot.slane %v8714_v2, 10 }
  0xbe   :  { %v2228_v55 = vrot.slane %v2226_v54, 4 }
  0xc2   :  { %7993 = vmatmul.mubr.msk.bf16.vlgmr.msra.gmra.mrb[8].mxu1 %vm412_vm4, %v12186_v42  ;;  %v2518_v42 = vsel %vm449_vm2, %v8610_v25, 0 }
  0xc3   :  { %8045 = vmatpush3.bf16.msra.mxu1 %v9758_v16  ;;  %7996 = vmatprep.mubr.msk.bf16.mxu1 %vm412_vm4, %v12187_v12  ;;  %v1774_v16 = vsel %vm9416_vm10, %v1770_v0, %v1773_v34  ;;  %v1781_v12 = vsel %vm9416_vm10, %v1775_v26, %v1780_v33  ;;  %v2225_v34 = vrot.slane %v2223_v15, 4  ;;  %v8716_v0 = vld [vmem:[%s11936_s0 + $0x38] sm:$0xf]  ;;  %v2234_v33 = vsel %vm9869_vm13, %v7138_v29, %v2233_v36 }
  0xc4   :  { %7981 = vmatmul.mubr.msk.bf16.gmra.mrb[16].mxu0 %vm412_vm4, %v9850_v4  ;;  %8562 = vmatprep.subr.msk.bf16.mxu1 %vm449_vm2, %v8610_v25  ;;  %v9890_v40 = vcombine.low %v1774_v16, %v1781_v12  ;;  %v2236_v26 = vrot.slane %v8716_v0, 6  ;;  %v8718_v12 = vld [vmem:[%s11936_s0 + $0x40] sm:$0xf]  ;;  %vm4125_vm2 = vcmask 1045509  }
  0xc5   :  { %7984 = vmatprep.mubr.msk.bf16.mxu0 %vm412_vm4, %v9855_v41  ;;  %v2227_v25 = vsel %vm9869_vm13, %v2225_v34, %v2226_v54  ;;  %v7139_v14 = vrot.slane %v8718_v12, 10  ;;  %v8722_v54 = vld [vmem:[%s11936_s0 + $0x70] sm:$0xf] }
  0xc6   :  { %v2238_v56 = vrot.slane %v2236_v26, 4  ;;  %v7142_v22 = vrot.slane %v8722_v54, 10 }
  0xc7   :  { %8047 = vmatpush3.bf16.msra.mxu1 %v2518_v42  ;;  %v8717_v42 = vld [vmem:[%s11936_s0 + $0x3c] sm:$0x3]  ;;  %v2244_v20 = vsel %vm9869_vm13, %v7139_v14, %v2243_v50 }
  0xc8   :  { %v2239_v16 = vrot.slane %v8717_v42, 6 }
  0xca   :  { %7997 = vmatmul.mubr.msk.bf16.gmra.mrb[12].mxu1 %vm412_vm4, %v12188_v19  ;;  %v2214_v19 = vsel %vm9869_vm13, %v7136_v35, %v2213_v9  ;;  %v2247_v9 = vsel %vm9869_vm13, %v2245_v18, %v2246_v49  ;;  %v2249_v35 = vrot.slane %v9212_v59, 6 }
  0xcb   :  { %8000 = vmatprep.mubr.msk.bf16.mxu1 %vm412_vm4, %v9533_v17  ;;  %v2217_v17 = vsel %vm9869_vm13, %v2215_v28, %v2216_v51  ;;  %v9925_v30 = vcombine.low %v2210_v44, %v2214_v19  ;;  %v2240_v51 = vsel %vm9869_vm13, %v2238_v56, %v2239_v16  ;;  %v9997_v63 = vcombine.low %v2244_v20, %v2247_v9  ;;  %v8721_v44 = vld [vmem:[%s11936_s0 + $0x68] sm:$0xf] }
  0xcc   :  { %7985 = vmatmul.mubr.msk.bf16.gmra.mrb[20].mxu0 %vm412_vm4, %v9890_v40  ;;  %v9930_v47 = vcombine.low %v2217_v17, %v2220_v48  ;;  %v7140_v28 = vrot.slane %v9217_v10, 10  ;;  %v2250_v59 = vsel %vm9869_vm13, %v2248_v52, %v2249_v35  ;;  %v2266_v19 = vrot.slane %v8721_v44, 6 }
  0xcd   :  { %8020 = vmatprep.mubr.msk.bf16.mxu0 %vm412_vm4, %v9895_v1  ;;  %v12027_v9 = vlaneseq }
  0xce   :  { %v2254_v10 = vsel %vm9869_vm13, %v7140_v28, %v2253_v31  ;;  %v2268_v48 = vrot.slane %v2266_v19, 4  ;;  %v7287_v28 = vld [vmem:[%s11940_s3] ss:$0 sm:$0xff]  ;;  %s8730_s3 = smov 64  }
  0xcf   :  { %v10113_v52 = vshrl.u32 %v12027_v9, 7  ;;  %v3639_v54 = vcombine.high %v7287_v28, %v7287_v28 }
  0xd1   :  { %12206 = vst [vmem:[#allocation10_spill] sm:$0xff] %v10113_v52 }
  0xd2   :  { %8001 = vmatmul.mubr.msk.bf16.gmra.mrb[16].mxu1 %vm412_vm4, %v9560_v24  ;;  %v2224_v24 = vsel %vm9869_vm13, %v7137_v58, %v2223_v15  ;;  %v7141_v15 = vrot.slane %v9722_v43, 10  ;;  %v8723_v58 = vld [vmem:[%s11936_s0 + $0x74] sm:$0xf] }
  0xd3   :  { %8004 = vmatprep.mubr.msk.bf16.mxu1 %vm412_vm4, %v9572_v32  ;;  %v2230_v32 = vsel %vm9869_vm13, %v2228_v55, %v2229_v53  ;;  %v9964_v61 = vcombine.low %v2224_v24, %v2227_v25  ;;  %v2273_v34 = vrot.slane %v8723_v58, 6 }
  0xd4   :  { %8021 = vmatmul.mubr.msk.bf16.vlgmr.msra.gmra.mrb[0].mxu0 %vm412_vm4, %v9925_v30  ;;  %v9966_v62 = vcombine.low %v2230_v32, %v2234_v33 }
  0xd5   :  { %8024 = vmatprep.mubr.msk.bf16.mxu0 %vm412_vm4, %v9930_v47  ;;  %v2274_v53 = vsel %vm9869_vm13, %v7142_v22, %v2273_v34  ;;  %v2275_v25 = vrot.slane %v2273_v34, 4  ;;  %8073 = vmatpush3.bf16.msra.mxu0 %v8611_v46 }
  0xda   :  { %8005 = vmatmul.mubr.msk.bf16.gmra.mrb[20].mxu1 %vm412_vm4, %v9597_v5  ;;  %v2237_v5 = vsel %vm9869_vm13, %v2235_v23, %v2236_v26  ;;  %v8725_v26 = vld [vmem:[%s11936_s0 + $0x7c] sm:$0x3] }
  0xdb   :  { %8008 = vmatprep.mubr.msk.bf16.mxu1 %vm412_vm4, %v9613_v3  ;;  %v2256_v3 = vrot.slane %v9686_v8, 6  ;;  %v9994_v21 = vcombine.low %v2237_v5, %v2240_v51  ;;  %v8720_v8 = vld [vmem:[%s11936_s0 + $0x64] sm:$0xf]  ;;  %v2279_v32 = vrot.slane %v8725_v26, 6  ;;  %v8726_v51 = vmov 1983009808  }
  0xdc   :  { %8025 = vmatmul.mubr.msk.bf16.gmra.mrb[4].mxu0 %vm412_vm4, %v9964_v61  ;;  %v2263_v38 = vrot.slane %v8720_v8, 6  ;;  %v2747_v20 = vunpack.c.l.s4 %v8726_v51 }
  0xdd   :  { %8028 = vmatprep.mubr.msk.bf16.mxu0 %vm412_vm4, %v9966_v62  ;;  %v2258_v37 = vrot.slane %v2256_v3, 4  ;;  %v2257_v27 = vsel %vm9869_vm13, %v2255_v39, %v2256_v3 }
  0xde   :  { %v2265_v17 = vrot.slane %v2263_v38, 4  ;;  %v2264_v43 = vsel %vm9869_vm13, %v7141_v15, %v2263_v38 }
  0xe0   :  { %v2267_v11 = vsel %vm9869_vm13, %v2265_v17, %v2266_v19 }
  0xe1   :  { %v7156_v29 = vcombine.low %v2264_v43, %v2267_v11 }
  0xe2   :  { %8009 = vmatmul.mubr.msk.bf16.gmra.mrb[24].mxu1 %vm412_vm4, %v9850_v4  ;;  %v2260_v4 = vsel %vm9869_vm13, %v2258_v37, %v2259_v7  ;;  %v8613_v37 = vld [vmem:[%s11938_s4 + $0x2c] sm:$0xff]  }
  0xe3   :  { %8012 = vmatprep.mubr.msk.bf16.mxu1 %vm412_vm4, %v9855_v41  ;;  %v7154_v41 = vcombine.low %v2250_v59, %v2254_v10  ;;  %v7155_v57 = vcombine.low %v2257_v27, %v2260_v4  ;;  %v8614_v7 = vld [vmem:[%s11939_s5 + $0x2c] sm:$0xff]   ;;  %8074 = vmatprep.subr.bf16.mxu0 %v8613_v37 }
  0xe4   :  { %8029 = vmatmul.mubr.msk.bf16.gmra.mrb[8].mxu0 %vm412_vm4, %v9994_v21 }
  0xe5   :  { %8032 = vmatprep.mubr.msk.bf16.mxu0 %vm412_vm4, %v9997_v63  ;;  %8075 = vmatpush3.bf16.msra.mxu0 %v8613_v37 }
  0xea   :  { %8013 = vmatmul.mubr.msk.bf16.gmra.mrb[28].mxu1 %vm412_vm4, %v9890_v40  ;;  %v8724_v40 = vld [vmem:[%s11936_s0 + $0x78] sm:$0xf] }
  0xeb   :  { %8048 = vmatprep.mubr.msk.bf16.mxu1 %vm412_vm4, %v9895_v1  ;;  %v2276_v55 = vrot.slane %v8724_v40, 6  ;;  %v2270_v1 = vsel %vm9869_vm13, %v2268_v48, %v2269_v6 }
  0xec   :  { %8033 = vmatmul.mubr.msk.bf16.gmra.mrb[12].mxu0 %vm412_vm4, %v7154_v41  ;;  %v7157_v24 = vcombine.low %v2270_v1, %v2274_v53 }
  0xed   :  { %8036 = vmatprep.mubr.msk.bf16.mxu0 %vm412_vm4, %v7155_v57  ;;  %v2278_v0 = vrot.slane %v2276_v55, 4  ;;  %v2277_v33 = vsel %vm9869_vm13, %v2275_v25, %v2276_v55 }
  0xee   :  { %v10045_v60 = vpop.f32.mrb[0].mxu1 }
  0xef   :  { %v10051_v2 = vpop.f32.mrb[1].mxu1  ;;  %v2280_v50 = vsel %vm9869_vm13, %v2278_v0, %v2279_v32 }
  0xf0   :  { %v10053_v45 = vpop.f32.mrb[2].mxu1  ;;  %v7158_v23 = vcombine.low %v2277_v33, %v2280_v50 }
  0xf1   :  { %v10055_v36 = vpop.f32.mrb[3].mxu1 }
  0xf2   :  { %8049 = vmatmul.mubr.msk.bf16.vlgmr.msra.gmra.mrb[8].mxu1 %vm412_vm4, %v9925_v30 }
  0xf3   :  { %8052 = vmatprep.mubr.msk.bf16.mxu1 %vm412_vm4, %v9930_v47 }
  0xf4   :  { %8037 = vmatmul.mubr.msk.bf16.gmra.mrb[16].mxu0 %vm412_vm4, %v7156_v29 }
  0xf5   :  { %8040 = vmatprep.mubr.msk.bf16.mxu0 %vm412_vm4, %v7157_v24 }
  0xfa   :  { %8053 = vmatmul.mubr.msk.bf16.gmra.mrb[12].mxu1 %vm412_vm4, %v9964_v61  ;;  %v8612_v61 = vld [vmem:[%s11939_s5 + $0x24] sm:$0xff]  }
  0xfb   :  { %8056 = vmatprep.mubr.msk.bf16.mxu1 %vm412_vm4, %v9966_v62  ;;  %8090 = vmatprep.subr.bf16.mxu1 %v8612_v61 }
  0xfc   :  { %8041 = vmatmul.mubr.msk.bf16.gmra.mrb[20].mxu0 %vm412_vm4, %v7158_v23  ;;  %8091 = vmatpush3.bf16.msra.mxu1 %v8612_v61 }
  0xfd   :  { %v10075_v30 = vpop.f32.mrb[4].mxu1  ;;  %8092 = vmatprep.subr.bf16.mxu1 %v8614_v7 }
  0xfe   :  { %v10077_v47 = vpop.f32.mrb[5].mxu1 }
  0xff   :  { %v10079_v56 = vpop.f32.mrb[6].mxu1 }
 0x100   :  { %v10081_v42 = vpop.f32.mrb[7].mxu1  ;;  %8093 = vmatpush3.bf16.msra.mxu1 %v8614_v7 }
 0x102   :  { %8057 = vmatmul.mubr.msk.bf16.gmra.mrb[16].mxu1 %vm412_vm4, %v9994_v21 }
 0x103   :  { %8060 = vmatprep.mubr.msk.bf16.mxu1 %vm412_vm4, %v9997_v63  ;;  %v2748_v63 = vunpack.c.0.s8 %v2747_v20 }
 0x105   :  { %v10121_v39 = vsub.s32 %v2748_v63, %v10113_v52 }
 0x107   :  { %12207 = vst [vmem:[#allocation13_spill] sm:$0xff] %v10121_v39  ;;  %v10132_v10 = vrot.slane %v7287_v28, %v10121_v39 }
 0x109   :  { %v10142_v4 = vcombine.high %v10132_v10, %v10132_v10  ;;  %v10145_v15 = vrot.slane %v10132_v10, 1 }
 0x10a   :  { %8061 = vmatmul.mubr.msk.bf16.gmra.mrb[20].mxu1 %vm412_vm4, %v7154_v41 }
 0x10b   :  { %8064 = vmatprep.mubr.msk.bf16.mxu1 %vm412_vm4, %v7155_v57  ;;  %v10148_v17 = vrot.slane %v10142_v4, 1 }
 0x112   :  { %8065 = vmatmul.mubr.msk.bf16.gmra.mrb[24].mxu1 %vm412_vm4, %v7156_v29 }
 0x113   :  { %8068 = vmatprep.mubr.msk.bf16.mxu1 %vm412_vm4, %v7157_v24 }
 0x11a   :  { %8069 = vmatmul.mubr.msk.bf16.gmra.mrb[28].mxu1 %vm412_vm4, %v7158_v23  ;;  %v10170_v23 = vrot.slane %v3639_v54, %v10121_v39  ;;  %vm4131_vm4 = vcmask 1047559  }
 0x1a7   :  { %v8022_v62 = vpop.f32.mrb[0].mxu0 }
 0x1a8   :  { %v2406_v16 = vpop.f32.mrb[1].mxu0 }
 0x1a9   :  { %v8023_v12 = vpop.f32.mrb[2].mxu0 }
 0x1aa   :  { %v2409_v14 = vpop.f32.mrb[3].mxu0 }
 0x1af   :  { %v10098_v18 = vpop.f32.mrb[4].mxu0 }
 0x1b0   :  { %v10100_v13 = vpop.f32.mrb[5].mxu0 }
 0x1b1   :  { %v10102_v49 = vpop.f32.mrb[6].mxu0 }
 0x1b2   :  { %v10104_v5 = vpop.f32.mrb[7].mxu0 }
 0x1b7   :  { %v10106_v3 = vpop.f32.mrb[8].mxu0 }
 0x1b8   :  { %v10108_v21 = vpop.f32.mrb[9].mxu0 }
 0x1b9   :  { %v10110_v31 = vpop.f32.mrb[10].mxu0 }
 0x1ba   :  { %v10115_v35 = vpop.f32.mrb[11].mxu0 }
 0x1bf   :  { %v10129_v59 = vpop.f32.mrb[12].mxu0 }
 0x1c0   :  { %v10134_v8 = vpop.f32.mrb[13].mxu0 }
 0x1c1   :  { %12208 = vst [vmem:[#allocation12_spill] sm:$0xff] %v10134_v8  ;;  %v10136_v38 = vpop.f32.mrb[14].mxu0 }
 0x1c2   :  { %12209 = vst [vmem:[#allocation11_spill] sm:$0xff] %v10136_v38  ;;  %v10138_v27 = vpop.f32.mrb[15].mxu0 }
 0x1c3   :  { %12210 = vst [vmem:[#allocation3_spill] sm:$0xff] %v10138_v27 }
 0x1c5   :  { %v8050_v41 = vpop.f32.mrb[8].mxu1 }
 0x1c6   :  { %v2699_v44 = vmax.f32 %v8022_v62, %v8050_v41  ;;  %v2554_v19 = vpop.f32.mrb[9].mxu1 }
 0x1c7   :  { %v8038_v57 = vpop.f32.mrb[16].mxu0  ;;  %v2697_v48 = vmax.f32 %v2406_v16, %v2554_v19  ;;  %v8051_v6 = vpop.f32.mrb[10].mxu1 }
 0x1c8   :  { %v10151_v22 = vadd.f32 %v8038_v57, %v10045_v60  ;;  %v2779_v58 = vcombine.high %v2699_v44, %v2699_v44  ;;  %v2786_v34 = vrot.slane %v2699_v44, %v10121_v39  ;;  %v2470_v43 = vpop.f32.mrb[17].mxu0  ;;  %v10154_v11 = vmax.f32 %v8023_v12, %v8051_v6  ;;  %v2557_v40 = vpop.f32.mrb[11].mxu1 }
 0x1c9   :  { %v10157_v55 = vadd.f32 %v2470_v43, %v10051_v2  ;;  %v2745_v1 = vcombine.high %v2697_v48, %v2697_v48  ;;  %v2752_v53 = vrot.slane %v2697_v48, %v10121_v39  ;;  %v8039_v29 = vpop.f32.mrb[18].mxu0  ;;  %v10160_v24 = vmax.f32 %v2409_v14, %v2557_v40 }
 0x1ca   :  { %12211 = vst [vmem:[#allocation4_spill] sm:$0xff] %v10151_v22  ;;  %v2793_v25 = vrot.slane %v2779_v58, %v10121_v39  ;;  %v2794_v60 = vcombine.high %v2786_v34, %v2786_v34  ;;  %v7199_v0 = vrot.slane %v2786_v34, 9  ;;  %v10164_v26 = vadd.f32 %v8039_v29, %v10053_v45  ;;  %v10166_v32 = vpop.f32.mrb[19].mxu0 }
 0x1cb   :  { %12212 = vst [vmem:[#allocation5_spill] sm:$0xff] %v10157_v55  ;;  %v2759_v33 = vrot.slane %v2745_v1, %v10121_v39  ;;  %v2760_v50 = vcombine.high %v2752_v53, %v2752_v53  ;;  %v7191_v2 = vrot.slane %v2752_v53, 9 }
 0x1cc   :  { %12213 = vst [vmem:[#allocation6_spill] sm:$0xff] %v10164_v26  ;;  %v2795_v46 = vcombine.high %v2793_v25, %v2793_v25  ;;  %v7200_v61 = vrot.slane %v2794_v60, 9  ;;  %v7201_v62 = vrot.slane %v2793_v25, 9  ;;  %v3545_v16 = vmax.f32 %v2786_v34, %v7199_v0 }
 0x1cd   :  { %v2761_v12 = vcombine.high %v2759_v33, %v2759_v33  ;;  %v7192_v14 = vrot.slane %v2760_v50, 9  ;;  %v7193_v51 = vrot.slane %v2759_v33, 9  ;;  %v3537_v20 = vmax.f32 %v2752_v53, %v7191_v2  ;;  %v10172_v63 = vpop.f32.mrb[12].mxu1 }
 0x1ce   :  { %v7202_v45 = vrot.slane %v2795_v46, 9  ;;  %v3546_v28 = vmax.f32 %v2794_v60, %v7200_v61  ;;  %v3547_v37 = vmax.f32 %v2793_v25, %v7201_v62  ;;  %v3676_v7 = vadd.f32 %v10132_v10, %v3545_v16  ;;  %v10175_v41 = vpop.f32.mrb[13].mxu1 }
 0x1cf   :  { %v7194_v44 = vrot.slane %v2761_v12, 9  ;;  %v3538_v19 = vmax.f32 %v2760_v50, %v7192_v14  ;;  %v3539_v57 = vmax.f32 %v2759_v33, %v7193_v51  ;;  %v3668_v48 = vadd.f32 %v10132_v10, %v3537_v20  ;;  %v10178_v6 = vpop.f32.mrb[20].mxu0  ;;  %v10180_v54 = vpop.f32.mrb[14].mxu1 }
 0x1d0   :  { %v3548_v58 = vmax.f32 %v2795_v46, %v7202_v45  ;;  %v3677_v34 = vadd.f32 %v10145_v15, %v3546_v28  ;;  %v3678_v43 = vadd.f32 %v10142_v4, %v3547_v37  ;;  %v3772_v40 = vmax.f32 %v3676_v7, 0.0  ;;  %v10184_v1 = vpop.f32.mrb[21].mxu0  ;;  %v10186_v53 = vpop.f32.mrb[15].mxu1 }
 0x1d1   :  { %v3540_v29 = vmax.f32 %v2761_v12, %v7194_v44  ;;  %v3669_v25 = vadd.f32 %v10145_v15, %v3538_v19  ;;  %v3670_v60 = vadd.f32 %v10142_v4, %v3539_v57  ;;  %v3764_v0 = vmax.f32 %v3668_v48, 0.0  ;;  %v10190_v33 = vpop.f32.mrb[22].mxu0 }
 0x1d2   :  { %v3773_v50 = vmax.f32 %v3677_v34, 0.0  ;;  %v3774_v2 = vmax.f32 %v3678_v43, 0.0  ;;  %v3868_v46 = vpack.c.bf16 %v3772_v40, %v3772_v40  ;;  %v10192_v61 = vpop.f32.mrb[23].mxu0  ;;  %v2796_v12 = vcombine.high %v10154_v11, %v10154_v11 }
 0x1d3   :  { %v3671_v62 = vadd.f32 %v10148_v17, %v3540_v29  ;;  %v3765_v16 = vmax.f32 %v3669_v25, 0.0  ;;  %v3766_v14 = vmax.f32 %v3670_v60, 0.0  ;;  %v10198_v51 = vadd.f32 %v10148_v17, %v3548_v58 }
 0x1d4   :  { %v3869_v20 = vpack.c.bf16 %v3773_v50, %v3773_v50  ;;  %v10200_v45 = vpack.c.bf16 %v3774_v2, %v3774_v2  ;;  %v10204_v28 = vcombine.high %v10170_v23, %v10170_v23  ;;  %v3860_v7 = vpack.c.bf16 %v3764_v0, %v3764_v0 }
 0x1d5   :  { %12214 = vst [vmem:[#allocation7_spill] sm:$0xff] %v10198_v51  ;;  %v3767_v37 = vmax.f32 %v3671_v62, 0.0  ;;  %v3861_v44 = vpack.c.bf16 %v3765_v16, %v3765_v16  ;;  %v3862_v19 = vpack.c.bf16 %v3766_v14, %v3766_v14  ;;  %v10206_v57 = vpop.f32.mrb[16].mxu1  ;;  %v10208_v48 = vunpack.c.l.b16 %v3868_v46 }
 0x1d6   :  { %12215 = vst [vmem:[#allocation8_spill] sm:$0xff] %v10200_v45  ;;  %v10210_v34 = vunpack.c.l.b16 %v3869_v20  ;;  %v2803_v43 = vrot.slane %v10154_v11, %v10121_v39  ;;  %v10215_v40 = vpop.f32.mrb[17].mxu1  ;;  %v2810_v0 = vrot.slane %v2796_v12, %v10121_v39  ;;  %v10223_v62 = vrot.slane %v10170_v23, 1 }
 0x1d7   :  { %12216 = vst [vmem:[#allocation9_spill] sm:$0xff] %v10208_v48  ;;  %v3863_v29 = vpack.c.bf16 %v3767_v37, %v3767_v37  ;;  %v4048_v25 = vunpack.c.l.b16 %v3861_v44  ;;  %v10217_v60 = vunpack.c.l.b16 %v3862_v19  ;;  %v10220_v50 = vpop.f32.mrb[18].mxu1  ;;  %v10226_v16 = vrot.slane %v10204_v28, 1 }
 0x1d8   :  { %12217 = vst [vmem:[#allocation14_spill] sm:$0xff] %v10210_v34  ;;  %v2811_v2 = vcombine.high %v2803_v43, %v2803_v43  ;;  %v7203_v46 = vrot.slane %v2803_v43, 9  ;;  %v10228_v14 = vpop.f32.mrb[19].mxu1  ;;  %v4457_v44 = vunpack.c.l.b16 %v3860_v7  ;;  %v2812_v12 = vcombine.high %v2810_v0, %v2810_v0 }
 0x1d9   :  { %v10231_v20 = vunpack.c.l.b16 %v3863_v29  ;;  %v4112_v37 = vrot.slane %v10217_v60, 7  ;;  %v7205_v9 = vrot.slane %v2810_v0, 9  ;;  %v12219_v55 = vunpack.c.l.b16 %v10200_v45 }
 0x1da   :  { %v7204_v19 = vrot.slane %v2811_v2, 9  ;;  %v3549_v58 = vmax.f32 %v2803_v43, %v7203_v46  ;;  %v4465_v27 = vrot.slane %v4048_v25, 7  ;;  %v4467_v11 = vrot.slane %v10217_v60, 6 }
 0x1db   :  { %12218 = vst [vmem:[#allocation15_spill] sm:$0xff] %v10231_v20  ;;  %v10238_v22 = vrot.slane %v12219_v55, 2  ;;  %v7206_v29 = vrot.slane %v2812_v12, 9  ;;  %v3551_v38 = vmax.f32 %v2810_v0, %v7205_v9  ;;  %v10242_v7 = vsel %vm4113_vm14, %v4112_v37, %v4048_v25 }
 0x1dc   :  { %v3550_v51 = vmax.f32 %v2811_v2, %v7204_v19  ;;  %v3680_v43 = vadd.f32 %v10132_v10, %v3549_v58  ;;  %v10248_v46 = vadd.f32 %v10166_v32, %v10055_v36  ;;  %v2762_v9 = vcombine.high %v10160_v24, %v10160_v24 }
 0x1dd   :  { %12220 = vst [vmem:[#allocation16_spill] sm:$0xff] %v10238_v22  ;;  %v10250_v55 = vpop.f32.mrb[20].mxu1  ;;  %v3552_v26 = vmax.f32 %v2812_v12, %v7206_v29  ;;  %v3682_v2 = vadd.f32 %v10142_v4, %v3551_v38  ;;  %v2769_v58 = vrot.slane %v10160_v24, %v10121_v39  ;;  %v10262_v36 = vadd.f32 %v10178_v6, %v10075_v30 }
 0x1de   :  { %12221 = vst [vmem:[#allocation17_spill] sm:$0xff] %v10248_v46  ;;  %v3681_v52 = vadd.f32 %v10145_v15, %v3550_v51  ;;  %v10256_v25 = vpop.f32.mrb[21].mxu1  ;;  %v3776_v0 = vmax.f32 %v3680_v43, 0.0  ;;  %v2703_v32 = vmax.f32 %v10098_v18, %v10172_v63  ;;  %v2776_v19 = vrot.slane %v2762_v9, %v10121_v39 }
 0x1df   :  { %12222 = vst [vmem:[#allocation2_spill] sm:$0xff] %v10256_v25  ;;  %12223 = vst [vmem:[#allocation18_spill] sm:$0xff] %v10262_v36  ;;  %v10266_v37 = vpop.f32.mrb[22].mxu1  ;;  %v3683_v38 = vadd.f32 %v10148_v17, %v3552_v26  ;;  %v3778_v12 = vmax.f32 %v3682_v2, 0.0  ;;  %v4466_v43 = vsel %vm4113_vm14, %v4465_v27, %v4457_v44  ;;  %v4809_v24 = vrot.slane %v10231_v20, 7 }
 0x1e0   :  { %12224 = vst [vmem:[#allocation19_spill] sm:$0xff] %v10266_v37  ;;  %v3777_v51 = vmax.f32 %v3681_v52, 0.0  ;;  %v10270_v29 = vpop.f32.mrb[23].mxu1  ;;  %v2777_v8 = vcombine.high %v2769_v58, %v2769_v58  ;;  %v7195_v30 = vrot.slane %v2769_v58, 9  ;;  %v2778_v18 = vcombine.high %v2776_v19, %v2776_v19 }
 0x1e1   :  { %12225 = vst [vmem:[#allocation20_spill] sm:$0xff] %v10270_v29  ;;  %v3779_v6 = vmax.f32 %v3683_v38, 0.0  ;;  %v3874_v45 = vpack.c.bf16 %v3778_v12, %v3778_v12  ;;  %v3872_v63 = vpack.c.bf16 %v3776_v0, %v3776_v0  ;;  %v7197_v36 = vrot.slane %v2776_v19, 9 }
 0x1e2   :  { %v3873_v22 = vpack.c.bf16 %v3777_v51, %v3777_v51  ;;  %v7196_v34 = vrot.slane %v2777_v8, 9  ;;  %v3541_v26 = vmax.f32 %v2769_v58, %v7195_v30  ;;  %v7198_v9 = vrot.slane %v2778_v18, 9 }
 0x1e3   :  { %v3875_v52 = vpack.c.bf16 %v3779_v6, %v3779_v6  ;;  %v4057_v48 = vunpack.c.l.b16 %v3874_v45  ;;  %v3543_v29 = vmax.f32 %v2776_v19, %v7197_v36  ;;  %v2847_v44 = vcombine.high %v2703_v32, %v2703_v32 }
 0x1e4   :  { %v4056_v2 = vunpack.c.l.b16 %v3873_v22  ;;  %v3542_v46 = vmax.f32 %v2777_v8, %v7196_v34  ;;  %v3672_v27 = vadd.f32 %v10170_v23, %v3541_v26  ;;  %v2854_v0 = vrot.slane %v2703_v32, %v10121_v39 }
 0x1e5   :  { %v10275_v37 = vpop.f32.mrb[24].mxu1  ;;  %v10277_v25 = vunpack.c.l.b16 %v3875_v52  ;;  %v4133_v38 = vrot.slane %v4057_v48, 7  ;;  %v3544_v58 = vmax.f32 %v2778_v18, %v7198_v9  ;;  %v3674_v45 = vadd.f32 %v10204_v28, %v3543_v29 }
 0x1e6   :  { %v4479_v51 = vrot.slane %v4056_v2, 7  ;;  %v10280_v12 = vpop.f32.mrb[25].mxu1  ;;  %v3673_v22 = vadd.f32 %v10223_v62, %v3542_v46  ;;  %v3768_v8 = vmax.f32 %v3672_v27, 0.0  ;;  %v10285_v34 = vsel %vm4116_vm15, %v4467_v11, %v4466_v43 }
 0x1e7   :  { %12226 = vst [vmem:[#allocation21_spill] sm:$0xff] %v10277_v25  ;;  %12227 = vst [vmem:[#allocation22_spill] sm:$0xff] %v10285_v34  ;;  %v4134_v36 = vsel %vm4113_vm14, %v4133_v38, %v4056_v2  ;;  %v4458_v19 = vunpack.c.l.b16 %v3872_v63  ;;  %v4481_v30 = vrot.slane %v4057_v48, 6  ;;  %v4135_v6 = vrot.slane %v10277_v25, 6 }
 0x1e8   :  { %v4823_v26 = vrot.slane %v10277_v25, 7  ;;  %v3675_v32 = vadd.f32 %v10226_v16, %v3544_v58  ;;  %v3769_v52 = vmax.f32 %v3673_v22, 0.0  ;;  %v3770_v46 = vmax.f32 %v3674_v45, 0.0 }
 0x1e9   :  { %v4480_v18 = vsel %vm4113_vm14, %v4479_v51, %v4458_v19  ;;  %v3864_v9 = vpack.c.bf16 %v3768_v8, %v3768_v8  ;;  %v2861_v29 = vrot.slane %v2847_v44, %v10121_v39  ;;  %v12228_v11 = vrot.slane %v10231_v20, 6 }
 0x1ea   :  { %v3771_v63 = vmax.f32 %v3675_v32, 0.0  ;;  %v3865_v2 = vpack.c.bf16 %v3769_v52, %v3769_v52  ;;  %v2862_v27 = vcombine.high %v2854_v0, %v2854_v0  ;;  %v10301_v38 = vsel %vm4113_vm14, %v4809_v24, %v10217_v60  ;;  %v10314_v60 = vpop.f32.mrb[26].mxu1 }
 0x1eb   :  { %v10297_v43 = vsel %vm4116_vm15, %v12228_v11, %v10242_v7  ;;  %12229 = vst [vmem:[#allocation23_spill] sm:$0xff] %v10301_v38  ;;  %v2863_v58 = vcombine.high %v2861_v29, %v2861_v29  ;;  %v7215_v22 = vrot.slane %v2854_v0, 9  ;;  %v7217_v51 = vrot.slane %v2861_v29, 9 }
 0x1ec   :  { %v10304_v45 = vsel %vm4116_vm15, %v4135_v6, %v4134_v36  ;;  %v10307_v44 = vsel %vm4116_vm15, %v4481_v30, %v4480_v18  ;;  %v10310_v8 = vsel %vm4113_vm14, %v4823_v26, %v4057_v48  ;;  %v7216_v7 = vrot.slane %v2862_v27, 9  ;;  %v8616_v18 = vld [vmem:[%s11939_s5 + $0x34] sm:$0xff]  }
 0x1ed   :  { %12230 = vst [vmem:[#allocation24_spill] sm:$0xff] %v10307_v44  ;;  %12231 = vst [vmem:[#allocation25_spill] sm:$0xff] %v10310_v8  ;;  %v3866_v19 = vpack.c.bf16 %v3770_v46, %v3770_v46  ;;  %v10312_v32 = vunpack.c.l.b16 %v3864_v9  ;;  %v7218_v52 = vrot.slane %v2863_v58, 9  ;;  %v3561_v11 = vmax.f32 %v2854_v0, %v7215_v22  ;;  %v8615_v0 = vld [vmem:[%s11938_s4 + $0x34] sm:$0xff]   ;;  %8094 = vmatprep.subr.bf16.mxu1 %v8616_v18 }
 0x1ee   :  { %v10316_v24 = vpack.c.bf16 %v3771_v63, %v3771_v63  ;;  %v10318_v38 = vunpack.c.l.b16 %v3865_v2  ;;  %v3562_v36 = vmax.f32 %v2862_v27, %v7216_v7  ;;  %v3563_v6 = vmax.f32 %v2861_v29, %v7217_v51  ;;  %8076 = vmatprep.subr.bf16.mxu0 %v8615_v0  ;;  %8095 = vmatpush3.bf16.msra.mxu1 %v8616_v18 }
 0x1ef   :  { %v3564_v25 = vmax.f32 %v2863_v58, %v7218_v52  ;;  %v3692_v30 = vadd.f32 %v10132_v10, %v3561_v11  ;;  %v10323_v48 = vadd.f32 %v10184_v1, %v10077_v47  ;;  %v2701_v26 = vmax.f32 %v10100_v13, %v10175_v41  ;;  %8077 = vmatpush3.bf16.msra.mxu0 %v8615_v0  ;;  %v10347_v11 = vpop.f32.mrb[27].mxu1 }
 0x1f0   :  { %v3693_v46 = vadd.f32 %v10145_v15, %v3562_v36  ;;  %v3694_v9 = vadd.f32 %v10142_v4, %v3563_v6  ;;  %v10337_v29 = vadd.f32 %v10190_v33, %v10079_v56  ;;  %v2704_v47 = vmax.f32 %v10102_v49, %v10180_v54 }
 0x1f1   :  { %12232 = vst [vmem:[#allocation26_spill] sm:$0xff] %v10323_v48  ;;  %v3695_v13 = vadd.f32 %v10148_v17, %v3564_v25  ;;  %v3788_v41 = vmax.f32 %v3692_v30, 0.0  ;;  %v2813_v1 = vcombine.high %v2701_v26, %v2701_v26  ;;  %v2820_v63 = vrot.slane %v2701_v26, %v10121_v39 }
 0x1f2   :  { %12233 = vst [vmem:[#allocation27_spill] sm:$0xff] %v10337_v29  ;;  %v10343_v2 = vunpack.c.l.b16 %v3866_v19  ;;  %v3789_v58 = vmax.f32 %v3693_v46, 0.0  ;;  %v3790_v22 = vmax.f32 %v3694_v9, 0.0  ;;  %v2864_v52 = vcombine.high %v2704_v47, %v2704_v47 }
 0x1f3   :  { %v3791_v56 = vmax.f32 %v3695_v13, 0.0  ;;  %v3884_v33 = vpack.c.bf16 %v3788_v41, %v3788_v41  ;;  %v2827_v49 = vrot.slane %v2813_v1, %v10121_v39  ;;  %v2828_v54 = vcombine.high %v2820_v63, %v2820_v63 }
 0x1f4   :  { %12234 = vst [vmem:[#allocation28_spill] sm:$0xff] %v10343_v2  ;;  %v3885_v25 = vpack.c.bf16 %v3789_v58, %v3789_v58  ;;  %v3886_v51 = vpack.c.bf16 %v3790_v22, %v3790_v22  ;;  %v7207_v7 = vrot.slane %v2820_v63, 9  ;;  %v2871_v30 = vrot.slane %v2704_v47, %v10121_v39 }
 0x1f5   :  { %v3887_v36 = vpack.c.bf16 %v3791_v56, %v3791_v56  ;;  %v2829_v19 = vcombine.high %v2827_v49, %v2827_v49  ;;  %v7208_v6 = vrot.slane %v2828_v54, 9  ;;  %v7209_v0 = vrot.slane %v2827_v49, 9 }
 0x1f6   :  { %v4064_v26 = vunpack.c.l.b16 %v3885_v25  ;;  %v4065_v46 = vunpack.c.l.b16 %v3886_v51  ;;  %v3553_v18 = vmax.f32 %v2820_v63, %v7207_v7  ;;  %v4459_v13 = vunpack.c.l.b16 %v3884_v33 }
 0x1f7   :  { %v10350_v9 = vunpack.c.l.b16 %v3887_v36  ;;  %v7210_v41 = vrot.slane %v2829_v19, 9  ;;  %v3554_v1 = vmax.f32 %v2828_v54, %v7208_v6  ;;  %v3555_v8 = vmax.f32 %v2827_v49, %v7209_v0 }
 0x1f8   :  { %v4147_v58 = vrot.slane %v4065_v46, 7  ;;  %v4493_v22 = vrot.slane %v4064_v26, 7  ;;  %v4495_v27 = vrot.slane %v4065_v46, 6  ;;  %v2878_v34 = vrot.slane %v2864_v52, %v10121_v39 }
 0x1f9   :  { %v3556_v44 = vmax.f32 %v2829_v19, %v7210_v41  ;;  %v2879_v47 = vcombine.high %v2871_v30, %v2871_v30  ;;  %v4149_v25 = vrot.slane %v10350_v9, 6  ;;  %v3684_v51 = vadd.f32 %v10170_v23, %v3553_v18 }
 0x1fa   :  { %v4494_v63 = vsel %vm4113_vm14, %v4493_v22, %v4459_v13  ;;  %v3685_v33 = vadd.f32 %v10223_v62, %v3554_v1  ;;  %v4148_v54 = vsel %vm4113_vm14, %v4147_v58, %v4064_v26  ;;  %v4497_v7 = vrot.slane %v10350_v9, 5 }
 0x1fb   :  { %v4837_v49 = vrot.slane %v10350_v9, 7  ;;  %v3686_v36 = vadd.f32 %v10204_v28, %v3555_v8  ;;  %v4496_v19 = vsel %vm4116_vm15, %v4495_v27, %v4494_v63  ;;  %v3687_v52 = vadd.f32 %v10226_v16, %v3556_v44 }
 0x1fc   :  { %v3780_v6 = vmax.f32 %v3684_v51, 0.0  ;;  %v3781_v0 = vmax.f32 %v3685_v33, 0.0  ;;  %v2880_v13 = vcombine.high %v2878_v34, %v2878_v34  ;;  %v7219_v22 = vrot.slane %v2871_v30, 9 }
 0x1fd   :  { %v3782_v41 = vmax.f32 %v3686_v36, 0.0  ;;  %v7220_v18 = vrot.slane %v2879_v47, 9  ;;  %v3783_v56 = vmax.f32 %v3687_v52, 0.0  ;;  %v7221_v26 = vrot.slane %v2878_v34, 9 }
 0x1fe   :  { %v3876_v1 = vpack.c.bf16 %v3780_v6, %v3780_v6  ;;  %v3877_v20 = vpack.c.bf16 %v3781_v0, %v3781_v0  ;;  %v10365_v58 = vunpack.c.l.b16 %v10316_v24  ;;  %v7222_v29 = vrot.slane %v2880_v13, 9 }
 0x1ff   :  { %v3565_v48 = vmax.f32 %v2871_v30, %v7219_v22  ;;  %v3566_v8 = vmax.f32 %v2879_v47, %v7220_v18  ;;  %v10369_v44 = vsel %vm4116_vm15, %v4149_v25, %v4148_v54  ;;  %v4838_v63 = vsel %vm4113_vm14, %v4837_v49, %v4065_v46 }
 0x200   :  { %12235 = vst [vmem:[#allocation29_spill] sm:$0xff] %v10365_v58  ;;  %12236 = vst [vmem:[#allocation30_spill] sm:$0xff] %v10369_v44  ;;  %v3567_v51 = vmax.f32 %v2878_v34, %v7221_v26  ;;  %v10373_v33 = vsel %vm4119_vm0, %v4497_v7, %v4496_v19  ;;  %v3568_v36 = vmax.f32 %v2880_v13, %v7222_v29  ;;  %v10377_v30 = vunpack.c.l.b16 %v3876_v1 }
 0x201   :  { %12237 = vst [vmem:[#allocation31_spill] sm:$0xff] %v10373_v33  ;;  %v3696_v52 = vadd.f32 %v10170_v23, %v3565_v48  ;;  %v3697_v24 = vadd.f32 %v10223_v62, %v3566_v8  ;;  %v3878_v6 = vpack.c.bf16 %v3782_v41, %v3782_v41  ;;  %v3879_v0 = vpack.c.bf16 %v3783_v56, %v3783_v56 }
 0x202   :  { %12238 = vst [vmem:[#allocation32_spill] sm:$0xff] %v10377_v30  ;;  %v10379_v47 = vunpack.c.l.b16 %v3877_v20  ;;  %v3698_v25 = vadd.f32 %v10204_v28, %v3567_v51  ;;  %v3699_v54 = vadd.f32 %v10226_v16, %v3568_v36  ;;  %v10385_v7 = vadd.f32 %v10192_v61, %v10081_v42 }
 0x203   :  { %v3792_v46 = vmax.f32 %v3696_v52, 0.0  ;;  %v3793_v34 = vmax.f32 %v3697_v24, 0.0  ;;  %v2702_v48 = vmax.f32 %v10104_v5, %v10186_v53  ;;  %v2707_v29 = vmax.f32 %v10106_v3, %v10206_v57 }
 0x204   :  { %12239 = vst [vmem:[#allocation33_spill] sm:$0xff] %v10379_v47  ;;  %12240 = vst [vmem:[#allocation34_spill] sm:$0xff] %v10385_v7  ;;  %v10393_v20 = vmax.f32 %v10108_v21, %v10215_v40  ;;  %v3794_v56 = vmax.f32 %v3698_v25, 0.0  ;;  %v3795_v49 = vmax.f32 %v3699_v54, 0.0  ;;  %v10395_v13 = vunpack.c.l.b16 %v3878_v6  ;;  %v10440_v25 = vpop.f32.mrb[28].mxu1 }
 0x205   :  { %v3888_v19 = vpack.c.bf16 %v3792_v46, %v3792_v46  ;;  %v3889_v41 = vpack.c.bf16 %v3793_v34, %v3793_v34  ;;  %v2830_v22 = vcombine.high %v2702_v48, %v2702_v48  ;;  %v2837_v42 = vrot.slane %v2702_v48, %v10121_v39 }
 0x206   :  { %12241 = vst [vmem:[#allocation35_spill] sm:$0xff] %v10395_v13  ;;  %v2915_v61 = vcombine.high %v2707_v29, %v2707_v29  ;;  %v3890_v18 = vpack.c.bf16 %v3794_v56, %v3794_v56  ;;  %v3891_v1 = vpack.c.bf16 %v3795_v49, %v3795_v49  ;;  %v10402_v3 = vunpack.c.l.b16 %v3879_v0 }
 0x207   :  { %v10398_v5 = vunpack.c.l.b16 %v3888_v19  ;;  %v10400_v53 = vunpack.c.l.b16 %v3889_v41  ;;  %v2844_v8 = vrot.slane %v2830_v22, %v10121_v39  ;;  %v2845_v51 = vcombine.high %v2837_v42, %v2837_v42 }
 0x208   :  { %12244 = vst [vmem:[#allocation38_spill] sm:$0xff] %v10402_v3  ;;  %v10407_v26 = vunpack.c.l.b16 %v3890_v18  ;;  %v2922_v36 = vrot.slane %v2707_v29, %v10121_v39  ;;  %v10411_v52 = vunpack.c.l.b16 %v3891_v1  ;;  %v7211_v6 = vrot.slane %v2837_v42, 9 }
 0x209   :  { %12242 = vst [vmem:[#allocation36_spill] sm:$0xff] %v10398_v5  ;;  %12243 = vst [vmem:[#allocation37_spill] sm:$0xff] %v10400_v53  ;;  %v4839_v24 = vrot.slane %v10398_v5, 6  ;;  %v2929_v0 = vrot.slane %v2915_v61, %v10121_v39  ;;  %v5207_v56 = vrot.slane %v10398_v5, 7  ;;  %v5209_v49 = vrot.slane %v10400_v53, 6 }
 0x20a   :  { %12245 = vst [vmem:[#allocation39_spill] sm:$0xff] %v10407_v26  ;;  %12246 = vst [vmem:[#allocation40_spill] sm:$0xff] %v10411_v52  ;;  %v5577_v22 = vrot.slane %v10400_v53, 7  ;;  %v5579_v61 = vrot.slane %v10407_v26, 6  ;;  %v2846_v1 = vcombine.high %v2844_v8, %v2844_v8  ;;  %v3557_v57 = vmax.f32 %v2837_v42, %v7211_v6 }
 0x20b   :  { %v10420_v48 = vsel %vm4116_vm15, %v4839_v24, %v4838_v63  ;;  %v5208_v18 = vsel %vm4113_vm14, %v5207_v56, %v10350_v9  ;;  %v7212_v63 = vrot.slane %v2845_v51, 9  ;;  %v7213_v24 = vrot.slane %v2844_v8, 9 }
 0x20c   :  { %12247 = vst [vmem:[#allocation41_spill] sm:$0xff] %v10420_v48  ;;  %v10432_v40 = vsel %vm4116_vm15, %v5209_v49, %v5208_v18  ;;  %v5578_v27 = vsel %vm4113_vm14, %v5577_v22, %v10398_v5  ;;  %v2930_v29 = vcombine.high %v2922_v36, %v2922_v36  ;;  %v7214_v41 = vrot.slane %v2846_v1, 9 }
 0x20d   :  { %12248 = vst [vmem:[#allocation42_spill] sm:$0xff] %v10432_v40  ;;  %v10437_v21 = vsel %vm4116_vm15, %v5579_v61, %v5578_v27  ;;  %v3558_v34 = vmax.f32 %v2845_v51, %v7212_v63  ;;  %v3559_v46 = vmax.f32 %v2844_v8, %v7213_v24  ;;  %v3688_v19 = vadd.f32 %v10132_v10, %v3557_v57 }
 0x20e   :  { %v2931_v9 = vcombine.high %v2929_v0, %v2929_v0  ;;  %v7231_v56 = vrot.slane %v2922_v36, 9  ;;  %v7232_v54 = vrot.slane %v2930_v29, 9  ;;  %v3560_v49 = vmax.f32 %v2846_v1, %v7214_v41 }
 0x20f   :  { %v3689_v18 = vadd.f32 %v10145_v15, %v3558_v34  ;;  %v3690_v22 = vadd.f32 %v10142_v4, %v3559_v46  ;;  %v7233_v42 = vrot.slane %v2929_v0, 9  ;;  %v3784_v6 = vmax.f32 %v3688_v19, 0.0 }
 0x210   :  { %v7234_v40 = vrot.slane %v2931_v9, 9  ;;  %v3577_v27 = vmax.f32 %v2922_v36, %v7231_v56  ;;  %v3578_v61 = vmax.f32 %v2930_v29, %v7232_v54  ;;  %v10452_v36 = vadd.f32 %v10148_v17, %v3560_v49 }
 0x211   :  { %v3785_v8 = vmax.f32 %v3689_v18, 0.0  ;;  %v3786_v63 = vmax.f32 %v3690_v22, 0.0  ;;  %v3579_v57 = vmax.f32 %v2929_v0, %v7233_v42  ;;  %v3880_v24 = vpack.c.bf16 %v3784_v6, %v3784_v6 }
 0x212   :  { %v3580_v48 = vmax.f32 %v2931_v9, %v7234_v40  ;;  %v3708_v33 = vadd.f32 %v10170_v23, %v3577_v27  ;;  %v3709_v41 = vadd.f32 %v10223_v62, %v3578_v61  ;;  %12250 = vst [vmem:[#allocation44_spill] sm:$0xff] %v10452_v36  ;;  %v2881_v27 = vcombine.high %v10393_v20, %v10393_v20 }
 0x213   :  { %v3881_v1 = vpack.c.bf16 %v3785_v8, %v3785_v8  ;;  %v10448_v46 = vpack.c.bf16 %v3786_v63, %v3786_v63  ;;  %v3710_v19 = vadd.f32 %v10204_v28, %v3579_v57  ;;  %v10455_v56 = vunpack.c.l.b16 %v3880_v24 }
 0x214   :  { %v3711_v54 = vadd.f32 %v10226_v16, %v3580_v48  ;;  %v3804_v29 = vmax.f32 %v3708_v33, 0.0  ;;  %v3805_v0 = vmax.f32 %v3709_v41, 0.0  ;;  %v5581_v61 = vrot.slane %v10411_v52, 5 }
 0x215   :  { %12249 = vst [vmem:[#allocation43_spill] sm:$0xff] %v10448_v46  ;;  %12251 = vst [vmem:[#allocation45_spill] sm:$0xff] %v10455_v56  ;;  %v10457_v40 = vunpack.c.l.b16 %v3881_v1  ;;  %v12039_v9 = vunpack.c.l.b16 %v10448_v46  ;;  %v3806_v18 = vmax.f32 %v3710_v19, 0.0  ;;  %v2888_v33 = vrot.slane %v10393_v20, %v10121_v39  ;;  %v10495_v1 = vpop.f32.mrb[29].mxu1 }
 0x216   :  { %v3807_v22 = vmax.f32 %v3711_v54, 0.0  ;;  %v3900_v42 = vpack.c.bf16 %v3804_v29, %v3804_v29  ;;  %v3901_v6 = vpack.c.bf16 %v3805_v0, %v3805_v0  ;;  %v2895_v0 = vrot.slane %v2881_v27, %v10121_v39 }
 0x217   :  { %12252 = vst [vmem:[#allocation46_spill] sm:$0xff] %v10457_v40  ;;  %v3902_v48 = vpack.c.bf16 %v3806_v18, %v3806_v18  ;;  %v10478_v29 = vrot.slane %v12039_v9, 2  ;;  %v2896_v18 = vcombine.high %v2888_v33, %v2888_v33  ;;  %v7223_v19 = vrot.slane %v2888_v33, 9  ;;  %v10501_v9 = vpop.f32.mrb[30].mxu1 }
 0x218   :  { %v3903_v63 = vpack.c.bf16 %v3807_v22, %v3807_v22  ;;  %v10467_v57 = vunpack.c.l.b16 %v3900_v42  ;;  %v10469_v24 = vunpack.c.l.b16 %v3901_v6  ;;  %v8617_v22 = vld [vmem:[%s11938_s4 + $0x3c] sm:$0xff]   ;;  %v2897_v27 = vcombine.high %v2895_v0, %v2895_v0 }
 0x219   :  { %v10474_v54 = vunpack.c.l.b16 %v3902_v48  ;;  %12254 = vst [vmem:[#allocation48_spill] sm:$0xff] %v10478_v29  ;;  %v8618_v42 = vld [vmem:[%s11939_s5 + $0x3c] sm:$0xff]   ;;  %8078 = vmatprep.subr.bf16.mxu0 %v8617_v22  ;;  %v10507_v48 = vpop.f32.mrb[31].mxu1  ;;  %v7224_v41 = vrot.slane %v2896_v18, 9  ;;  %v7225_v34 = vrot.slane %v2895_v0, 9  ;;  %v3569_v29 = vmax.f32 %v2888_v33, %v7223_v19 }
 0x21a   :  { %12253 = vst [vmem:[#allocation47_spill] sm:$0xff] %v10469_v24  ;;  %v10480_v20 = vunpack.c.l.b16 %v3903_v63  ;;  %v10493_v63 = vsel %vm4119_vm0, %v5581_v61, %v10437_v21  ;;  %8096 = vmatprep.subr.bf16.mxu1 %v8618_v42  ;;  %v5591_v61 = vrot.slane %v10469_v24, 7  ;;  %12256 = vst [vmem:[#allocation50_spill] sm:$0xff] %v10507_v48  ;;  %8079 = vmatpush3.bf16.msra.mxu0 %v8617_v22  ;;  %v7226_v36 = vrot.slane %v2897_v27, 9 }
 0x21b   :  { %8097 = vmatpush3.bf16.msra.mxu1 %v8618_v42  ;;  %v5593_v49 = vrot.slane %v10474_v54, 6  ;;  %v2708_v21 = vmax.f32 %v10110_v31, %v10220_v50  ;;  %v3570_v46 = vmax.f32 %v2896_v18, %v7224_v41  ;;  %v2706_v22 = vmax.f32 %v10115_v35, %v10228_v14 }
 0x21c   :  { %12255 = vst [vmem:[#allocation49_spill] sm:$0xff] %v10480_v20  ;;  %v5592_v6 = vsel %vm4113_vm14, %v5591_v61, %v10467_v57  ;;  %v3571_v42 = vmax.f32 %v2895_v0, %v7225_v34  ;;  %v3700_v8 = vadd.f32 %v10132_v10, %v3569_v29  ;;  %v3572_v19 = vmax.f32 %v2897_v27, %v7226_v36 }
 0x21d   :  { %v5594_v51 = vsel %vm4116_vm15, %v5593_v49, %v5592_v6  ;;  %v2932_v40 = vcombine.high %v2708_v21, %v2708_v21  ;;  %v2939_v52 = vrot.slane %v2708_v21, %v10121_v39  ;;  %v3701_v31 = vadd.f32 %v10145_v15, %v3570_v46 }
 0x21e   :  { %v3702_v50 = vadd.f32 %v10142_v4, %v3571_v42  ;;  %v3796_v49 = vmax.f32 %v3700_v8, 0.0  ;;  %v5595_v14 = vrot.slane %v10480_v20, 5  ;;  %v3703_v34 = vadd.f32 %v10148_v17, %v3572_v19 }
 0x21f   :  { %v2946_v41 = vrot.slane %v2932_v40, %v10121_v39  ;;  %v2947_v35 = vcombine.high %v2939_v52, %v2939_v52  ;;  %v3797_v29 = vmax.f32 %v3701_v31, 0.0  ;;  %v7235_v0 = vrot.slane %v2939_v52, 9 }
 0x220   :  { %v3798_v18 = vmax.f32 %v3702_v50, 0.0  ;;  %v3892_v6 = vpack.c.bf16 %v3796_v49, %v3796_v49  ;;  %v3799_v46 = vmax.f32 %v3703_v34, 0.0  ;;  %v2898_v34 = vcombine.high %v2706_v22, %v2706_v22 }
 0x221   :  { %v2948_v36 = vcombine.high %v2946_v41, %v2946_v41  ;;  %v7236_v27 = vrot.slane %v2947_v35, 9  ;;  %v3893_v21 = vpack.c.bf16 %v3797_v29, %v3797_v29  ;;  %v7237_v42 = vrot.slane %v2946_v41, 9 }
 0x222   :  { %v3581_v8 = vmax.f32 %v2939_v52, %v7235_v0  ;;  %v3894_v40 = vpack.c.bf16 %v3798_v18, %v3798_v18  ;;  %v10528_v61 = vunpack.c.l.b16 %v3892_v6  ;;  %v3895_v53 = vpack.c.bf16 %v3799_v46, %v3799_v46 }
 0x223   :  { %v7238_v26 = vrot.slane %v2948_v36, 9  ;;  %v10530_v19 = vunpack.c.l.b16 %v3893_v21  ;;  %v3582_v31 = vmax.f32 %v2947_v35, %v7236_v27  ;;  %v3583_v5 = vmax.f32 %v2946_v41, %v7237_v42 }
 0x224   :  { %12257 = vst [vmem:[#allocation51_spill] sm:$0xff] %v10528_v61  ;;  %v5173_v49 = vunpack.c.l.b16 %v3894_v40  ;;  %v3712_v44 = vadd.f32 %v10132_v10, %v3581_v8  ;;  %v5583_v52 = vrot.slane %v10528_v61, 4  ;;  %v5596_v0 = vsel %vm4119_vm0, %v5595_v14, %v5594_v51 }
 0x225   :  { %12258 = vst [vmem:[#allocation52_spill] sm:$0xff] %v10530_v19  ;;  %v2905_v18 = vrot.slane %v2706_v22, %v10121_v39  ;;  %v5585_v46 = vrot.slane %v10530_v19, 3  ;;  %v3584_v41 = vmax.f32 %v2948_v36, %v7238_v26  ;;  %v5543_v27 = vunpack.c.l.b16 %v3895_v53 }
 0x226   :  { %v5587_v35 = vrot.slane %v5173_v49, 2  ;;  %v5584_v21 = vsel %vm4122_vm1, %v5583_v52, %v10493_v63  ;;  %v3713_v42 = vadd.f32 %v10145_v15, %v3582_v31  ;;  %v3714_v8 = vadd.f32 %v10142_v4, %v3583_v5 }
 0x227   :  { %v5586_v40 = vsel %vm4125_vm2, %v5585_v46, %v5584_v21  ;;  %v3715_v51 = vadd.f32 %v10148_v17, %v3584_v41  ;;  %v3808_v14 = vmax.f32 %v3712_v44, 0.0  ;;  %v2912_v22 = vrot.slane %v2898_v34, %v10121_v39 }
 0x228   :  { %v10548_v50 = vsel %vm4128_vm3, %v5587_v35, %v5586_v40  ;;  %v3809_v6 = vmax.f32 %v3713_v42, 0.0  ;;  %v3810_v26 = vmax.f32 %v3714_v8, 0.0  ;;  %v2913_v53 = vcombine.high %v2905_v18, %v2905_v18 }
 0x229   :  { %12259 = vst [vmem:[#allocation53_spill] sm:$0xff] %v10548_v50  ;;  %v3811_v36 = vmax.f32 %v3715_v51, 0.0  ;;  %v3904_v29 = vpack.c.bf16 %v3808_v14, %v3808_v14  ;;  %v2914_v63 = vcombine.high %v2912_v22, %v2912_v22  ;;  %v7227_v52 = vrot.slane %v2905_v18, 9  ;;  %v12264_v51 = vld [vmem:[#allocation2_spill] sm:$0xff] }
 0x22a   :  { %v3905_v31 = vpack.c.bf16 %v3809_v6, %v3809_v6  ;;  %v10550_v33 = vpack.c.bf16 %v3810_v26, %v3810_v26  ;;  %v7228_v5 = vrot.slane %v2913_v53, 9  ;;  %v7229_v46 = vrot.slane %v2912_v22, 9 }
 0x22b   :  { %v10553_v44 = vunpack.c.l.b16 %v3904_v29  ;;  %v7230_v34 = vrot.slane %v2914_v63, 9  ;;  %v3573_v21 = vmax.f32 %v2905_v18, %v7227_v52  ;;  %v10560_v14 = vrot.slane %v5173_v49, 1  ;;  %v12265_v18 = vld [vmem:[#allocation12_spill] sm:$0xff] }
 0x22c   :  { %v10555_v35 = vunpack.c.l.b16 %v3905_v31  ;;  %v12052_v42 = vunpack.c.l.b16 %v10550_v33  ;;  %v3574_v8 = vmax.f32 %v2913_v53, %v7228_v5  ;;  %v3575_v40 = vmax.f32 %v2912_v22, %v7229_v46 }
 0x22d   :  { %12260 = vst [vmem:[#allocation54_spill] sm:$0xff] %v10553_v44  ;;  %12262 = vst [vmem:[#allocation56_spill] sm:$0xff] %v10560_v14  ;;  %v10562_v26 = vrot.slane %v5543_v27, 1  ;;  %v10564_v50 = vpack.c.bf16 %v3811_v36, %v3811_v36  ;;  %v5597_v52 = vrot.slane %v10553_v44, 4  ;;  %v3576_v5 = vmax.f32 %v2914_v63, %v7230_v34 }
 0x22e   :  { %12261 = vst [vmem:[#allocation55_spill] sm:$0xff] %v10555_v35  ;;  %v5599_v22 = vrot.slane %v10555_v35, 3  ;;  %v5601_v53 = vrot.slane %v12052_v42, 2  ;;  %v3704_v27 = vadd.f32 %v10132_v10, %v3573_v21  ;;  %v3705_v36 = vadd.f32 %v10145_v15, %v3574_v8 }
 0x22f   :  { %12263 = vst [vmem:[#allocation57_spill] sm:$0xff] %v10562_v26  ;;  %v5598_v49 = vsel %vm4122_vm1, %v5597_v52, %v5596_v0  ;;  %v3706_v46 = vadd.f32 %v10142_v4, %v3575_v40  ;;  %v3707_v41 = vadd.f32 %v10148_v17, %v3576_v5  ;;  %v2711_v31 = vmax.f32 %v10129_v59, %v10250_v55 }
 0x230   :  { %v5600_v6 = vsel %vm4125_vm2, %v5599_v22, %v5598_v49  ;;  %v2709_v29 = vmax.f32 %v12265_v18, %v12264_v51  ;;  %v3800_v0 = vmax.f32 %v3704_v27, 0.0  ;;  %v3801_v34 = vmax.f32 %v3705_v36, 0.0 }
 0x231   :  { %v10584_v63 = vsel %vm4128_vm3, %v5601_v53, %v5600_v6  ;;  %v3802_v21 = vmax.f32 %v3706_v46, 0.0  ;;  %v3803_v52 = vmax.f32 %v3707_v41, 0.0  ;;  %v2983_v8 = vcombine.high %v2711_v31, %v2711_v31 }
 0x232   :  { %12266 = vst [vmem:[#allocation2_spill] sm:$0xff] %v10584_v63  ;;  %v2990_v40 = vrot.slane %v2711_v31, %v10121_v39  ;;  %v2949_v42 = vcombine.high %v2709_v29, %v2709_v29  ;;  %v3896_v5 = vpack.c.bf16 %v3800_v0, %v3800_v0  ;;  %v3897_v49 = vpack.c.bf16 %v3801_v34, %v3801_v34 }
 0x233   :  { %v3898_v26 = vpack.c.bf16 %v3802_v21, %v3802_v21  ;;  %v3899_v59 = vpack.c.bf16 %v3803_v52, %v3803_v52  ;;  %v2997_v55 = vrot.slane %v2983_v8, %v10121_v39  ;;  %v2956_v6 = vrot.slane %v2709_v29, %v10121_v39 }
 0x234   :  { %v2998_v51 = vcombine.high %v2990_v40, %v2990_v40  ;;  %v4072_v18 = vunpack.c.l.b16 %v3897_v49  ;;  %v4460_v27 = vunpack.c.l.b16 %v3896_v5  ;;  %v7247_v36 = vrot.slane %v2990_v40, 9 }
 0x235   :  { %v4073_v53 = vunpack.c.l.b16 %v3898_v26  ;;  %v4074_v41 = vunpack.c.l.b16 %v3899_v59  ;;  %v2999_v46 = vcombine.high %v2997_v55, %v2997_v55  ;;  %v2963_v31 = vrot.slane %v2949_v42, %v10121_v39 }
 0x236   :  { %v7248_v63 = vrot.slane %v2998_v51, 9  ;;  %v4507_v22 = vrot.slane %v4072_v18, 7  ;;  %v7249_v34 = vrot.slane %v2997_v55, 9  ;;  %v12267_v8 = vrot.slane %v10467_v57, 7 }
 0x237   :  { %v4161_v14 = vrot.slane %v4073_v53, 7  ;;  %v4509_v0 = vrot.slane %v4073_v53, 6  ;;  %v4163_v21 = vrot.slane %v4074_v41, 6  ;;  %v4511_v52 = vrot.slane %v4074_v41, 5 }
 0x238   :  { %v4851_v19 = vrot.slane %v4074_v41, 7  ;;  %v5222_v29 = vsel %vm4113_vm14, %v12267_v8, %v4074_v41  ;;  %v4508_v5 = vsel %vm4113_vm14, %v4507_v22, %v4460_v27  ;;  %v12268_v49 = vrot.slane %v10469_v24, 6 }
 0x239   :  { %v4162_v26 = vsel %vm4113_vm14, %v4161_v14, %v4072_v18  ;;  %v3593_v42 = vmax.f32 %v2990_v40, %v7247_v36  ;;  %v4510_v61 = vsel %vm4116_vm15, %v4509_v0, %v4508_v5  ;;  %v12269_v7 = vrot.slane %v10474_v54, 5 }
 0x23a   :  { %v5224_v59 = vsel %vm4116_vm15, %v12268_v49, %v5222_v29  ;;  %v4164_v44 = vsel %vm4116_vm15, %v4163_v21, %v4162_v26  ;;  %v4852_v20 = vsel %vm4113_vm14, %v4851_v19, %v4073_v53  ;;  %v12271_v14 = vrot.slane %v10467_v57, 5 }
 0x23b   :  { %v10605_v48 = vsel %vm4119_vm0, %v12269_v7, %v5224_v59  ;;  %v4512_v18 = vsel %vm4119_vm0, %v4511_v52, %v4510_v61  ;;  %v12272_v27 = vrot.slane %v10467_v57, 6  ;;  %v3594_v36 = vmax.f32 %v2998_v51, %v7248_v63 }
 0x23c   :  { %12270 = vst [vmem:[#allocation12_spill] sm:$0xff] %v10605_v48  ;;  %v4166_v22 = vsel %vm4119_vm0, %v12271_v14, %v4164_v44  ;;  %v12273_v41 = vrot.slane %v10469_v24, 4  ;;  %v12274_v53 = vrot.slane %v10467_v57, 4  ;;  %v12276_v0 = vrot.slane %v10469_v24, 5 }
 0x23d   :  { %v4854_v40 = vsel %vm4116_vm15, %v12272_v27, %v4852_v20  ;;  %v3595_v61 = vmax.f32 %v2997_v55, %v7249_v34  ;;  %v12277_v21 = vrot.slane %v10474_v54, 4  ;;  %v7250_v63 = vrot.slane %v2999_v46, 9 }
 0x23e   :  { %v10617_v19 = vsel %vm4122_vm1, %v12273_v41, %v4166_v22  ;;  %v10622_v7 = vsel %vm4122_vm1, %v12274_v53, %v4512_v18  ;;  %v4856_v44 = vsel %vm4119_vm0, %v12276_v0, %v4854_v40  ;;  %v3724_v51 = vadd.f32 %v10132_v10, %v3593_v42 }
 0x23f   :  { %12275 = vst [vmem:[#allocation58_spill] sm:$0xff] %v10622_v7  ;;  %v10630_v20 = vsel %vm4122_vm1, %v12277_v21, %v4856_v44  ;;  %v3725_v52 = vadd.f32 %v10145_v15, %v3594_v36  ;;  %v3726_v57 = vadd.f32 %v10142_v4, %v3595_v61  ;;  %v2964_v8 = vcombine.high %v2956_v6, %v2956_v6 }
 0x240   :  { %12278 = vst [vmem:[#allocation59_spill] sm:$0xff] %v10630_v20  ;;  %v2965_v29 = vcombine.high %v2963_v31, %v2963_v31  ;;  %v7239_v26 = vrot.slane %v2956_v6, 9  ;;  %v3820_v49 = vmax.f32 %v3724_v51, 0.0  ;;  %v7241_v55 = vrot.slane %v2963_v31, 9 }
 0x241   :  { %v3821_v59 = vmax.f32 %v3725_v52, 0.0  ;;  %v3822_v34 = vmax.f32 %v3726_v57, 0.0  ;;  %v7240_v14 = vrot.slane %v2964_v8, 9  ;;  %v3596_v27 = vmax.f32 %v2999_v46, %v7250_v63  ;;  %v12282_v57 = vld [vmem:[#allocation19_spill] sm:$0xff] }
 0x242   :  { %v7242_v22 = vrot.slane %v2965_v29, 9  ;;  %v3585_v18 = vmax.f32 %v2956_v6, %v7239_v26  ;;  %v3916_v40 = vpack.c.bf16 %v3820_v49, %v3820_v49  ;;  %v3587_v42 = vmax.f32 %v2963_v31, %v7241_v55  ;;  %v12283_v6 = vld [vmem:[#allocation11_spill] sm:$0xff] }
 0x243   :  { %v3917_v41 = vpack.c.bf16 %v3821_v59, %v3821_v59  ;;  %v10636_v53 = vpack.c.bf16 %v3822_v34, %v3822_v34  ;;  %v3586_v36 = vmax.f32 %v2964_v8, %v7240_v14  ;;  %v12280_v21 = vunpack.c.l.b16 %v10550_v33 }
 0x244   :  { %v3588_v0 = vmax.f32 %v2965_v29, %v7242_v22  ;;  %v3716_v44 = vadd.f32 %v10132_v10, %v3585_v18  ;;  %v3718_v52 = vadd.f32 %v10142_v4, %v3587_v42  ;;  %v2712_v46 = vmax.f32 %v12283_v6, %v12282_v57 }
 0x245   :  { %12279 = vst [vmem:[#allocation60_spill] sm:$0xff] %v10636_v53  ;;  %v10642_v51 = vrot.slane %v12280_v21, 1  ;;  %v12284_v63 = vunpack.c.l.b16 %v10564_v50  ;;  %v3717_v8 = vadd.f32 %v10145_v15, %v3586_v36  ;;  %v10654_v49 = vadd.f32 %v10148_v17, %v3596_v27 }
 0x246   :  { %v3719_v29 = vadd.f32 %v10148_v17, %v3588_v0  ;;  %v3812_v26 = vmax.f32 %v3716_v44, 0.0  ;;  %v10656_v33 = vunpack.c.l.b16 %v3916_v40  ;;  %v3814_v59 = vmax.f32 %v3718_v52, 0.0  ;;  %v12289_v0 = vld [vmem:[#allocation20_spill] sm:$0xff]  ;;  %v12290_v44 = vld [vmem:[#allocation3_spill] sm:$0xff] }
 0x247   :  { %12281 = vst [vmem:[#allocation61_spill] sm:$0xff] %v10642_v51  ;;  %v10649_v31 = vrot.slane %v12284_v63, 1  ;;  %12286 = vst [vmem:[#allocation11_spill] sm:$0xff] %v10654_v49  ;;  %v3000_v55 = vcombine.high %v2712_v46, %v2712_v46  ;;  %v10658_v34 = vunpack.c.l.b16 %v3917_v41  ;;  %v12062_v14 = vunpack.c.l.b16 %v10636_v53  ;;  %v12291_v52 = vld [vmem:[#allocation4_spill] sm:$0xff] }
 0x248   :  { %12287 = vst [vmem:[#allocation62_spill] sm:$0xff] %v10656_v33  ;;  %v3813_v22 = vmax.f32 %v3717_v8, 0.0  ;;  %v3815_v50 = vmax.f32 %v3719_v29, 0.0  ;;  %v3910_v18 = vpack.c.bf16 %v3814_v59, %v3814_v59  ;;  %v3007_v42 = vrot.slane %v2712_v46, %v10121_v39 }
 0x249   :  { %12285 = vst [vmem:[#allocation19_spill] sm:$0xff] %v10649_v31  ;;  %12288 = vst [vmem:[#allocation63_spill] sm:$0xff] %v10658_v34  ;;  %v3014_v36 = vrot.slane %v3000_v55, %v10121_v39  ;;  %v2710_v21 = vmax.f32 %v12290_v44, %v12289_v0  ;;  %v3908_v27 = vpack.c.bf16 %v3812_v26, %v3812_v26 }
 0x24a   :  { %v3909_v57 = vpack.c.bf16 %v3813_v22, %v3813_v22  ;;  %v3911_v40 = vpack.c.bf16 %v3815_v50, %v3815_v50  ;;  %v2715_v6 = vmax.f32 %v12291_v52, %v10275_v37  ;;  %v10667_v41 = vunpack.c.l.b16 %v3910_v18 }
 0x24b   :  { %v3015_v63 = vcombine.high %v3007_v42, %v3007_v42  ;;  %v3016_v61 = vcombine.high %v3014_v36, %v3014_v36  ;;  %v7251_v8 = vrot.slane %v3007_v42, 9  ;;  %v7253_v55 = vrot.slane %v3014_v36, 9 }
 0x24c   :  { %v4080_v59 = vunpack.c.l.b16 %v3909_v57  ;;  %v10670_v46 = vunpack.c.l.b16 %v3911_v40  ;;  %v10676_v37 = vrot.slane %v12062_v14, 2  ;;  %v4175_v18 = vrot.slane %v10667_v41, 7 }
 0x24d   :  { %v7252_v22 = vrot.slane %v3015_v63, 9  ;;  %v7254_v50 = vrot.slane %v3016_v61, 9  ;;  %v3597_v0 = vmax.f32 %v3007_v42, %v7251_v8  ;;  %v2966_v44 = vcombine.high %v2710_v21, %v2710_v21 }
 0x24e   :  { %12292 = vst [vmem:[#allocation20_spill] sm:$0xff] %v10670_v46  ;;  %12293 = vst [vmem:[#allocation3_spill] sm:$0xff] %v10676_v37  ;;  %v4461_v52 = vunpack.c.l.b16 %v3908_v27  ;;  %v3599_v57 = vmax.f32 %v3014_v36, %v7253_v55  ;;  %v4177_v49 = vrot.slane %v10670_v46, 6  ;;  %v4521_v31 = vrot.slane %v4080_v59, 7 }
 0x24f   :  { %v3598_v29 = vmax.f32 %v3015_v63, %v7252_v22  ;;  %v3600_v40 = vmax.f32 %v3016_v61, %v7254_v50  ;;  %v4523_v5 = vrot.slane %v10667_v41, 6  ;;  %v3728_v26 = vadd.f32 %v10132_v10, %v3597_v0 }
 0x250   :  { %v4865_v51 = vrot.slane %v10670_v46, 7  ;;  %v3730_v37 = vadd.f32 %v10142_v4, %v3599_v57  ;;  %v4176_v27 = vsel %vm4113_vm14, %v4175_v18, %v4080_v59  ;;  %v2973_v61 = vrot.slane %v2710_v21, %v10121_v39 }
 0x251   :  { %v3729_v14 = vadd.f32 %v10145_v15, %v3598_v29  ;;  %v3731_v42 = vadd.f32 %v10148_v17, %v3600_v40  ;;  %v3824_v63 = vmax.f32 %v3728_v26, 0.0  ;;  %v2980_v36 = vrot.slane %v2966_v44, %v10121_v39 }
 0x252   :  { %v3826_v55 = vmax.f32 %v3730_v37, 0.0  ;;  %v3051_v50 = vcombine.high %v2715_v6, %v2715_v6  ;;  %v2981_v0 = vcombine.high %v2973_v61, %v2973_v61  ;;  %v7243_v48 = vrot.slane %v2973_v61, 9 }
 0x253   :  { %v3825_v8 = vmax.f32 %v3729_v14, 0.0  ;;  %v3827_v22 = vmax.f32 %v3731_v42, 0.0  ;;  %v2982_v53 = vcombine.high %v2980_v36, %v2980_v36  ;;  %v3058_v29 = vrot.slane %v2715_v6, %v10121_v39 }
 0x254   :  { %v3922_v57 = vpack.c.bf16 %v3826_v55, %v3826_v55  ;;  %v7245_v40 = vrot.slane %v2980_v36, 9  ;;  %v3920_v20 = vpack.c.bf16 %v3824_v63, %v3824_v63  ;;  %v7244_v59 = vrot.slane %v2981_v0, 9 }
 0x255   :  { %v3921_v34 = vpack.c.bf16 %v3825_v8, %v3825_v8  ;;  %v3923_v35 = vpack.c.bf16 %v3827_v22, %v3827_v22  ;;  %v7246_v26 = vrot.slane %v2982_v53, 9  ;;  %v3589_v18 = vmax.f32 %v2973_v61, %v7243_v48 }
 0x256   :  { %v4089_v46 = vunpack.c.l.b16 %v3922_v57  ;;  %v3591_v14 = vmax.f32 %v2980_v36, %v7245_v40  ;;  %v10693_v37 = vsel %vm4116_vm15, %v4177_v49, %v4176_v27  ;;  %v3590_v42 = vmax.f32 %v2981_v0, %v7244_v59 }
 0x257   :  { %v4088_v21 = vunpack.c.l.b16 %v3921_v34  ;;  %v10690_v44 = vunpack.c.l.b16 %v3923_v35  ;;  %v3592_v24 = vmax.f32 %v2982_v53, %v7246_v26  ;;  %v3720_v6 = vadd.f32 %v10170_v23, %v3589_v18 }
 0x258   :  { %v4522_v8 = vsel %vm4113_vm14, %v4521_v31, %v4461_v52  ;;  %v4189_v55 = vrot.slane %v4089_v46, 7  ;;  %v3065_v63 = vrot.slane %v3051_v50, %v10121_v39  ;;  %v4462_v7 = vunpack.c.l.b16 %v3920_v20 }
 0x259   :  { %12294 = vst [vmem:[#allocation4_spill] sm:$0xff] %v10690_v44  ;;  %v4535_v22 = vrot.slane %v4088_v21, 7  ;;  %v3721_v48 = vadd.f32 %v10223_v62, %v3590_v42  ;;  %v3722_v35 = vadd.f32 %v10204_v28, %v3591_v14  ;;  %v3723_v34 = vadd.f32 %v10226_v16, %v3592_v24 }
 0x25a   :  { %v4191_v49 = vrot.slane %v10690_v44, 6  ;;  %v4537_v27 = vrot.slane %v4089_v46, 6  ;;  %v3816_v61 = vmax.f32 %v3720_v6, 0.0  ;;  %v3066_v53 = vcombine.high %v3058_v29, %v3058_v29 }
 0x25b   :  { %v4190_v36 = vsel %vm4113_vm14, %v4189_v55, %v4088_v21  ;;  %v4536_v31 = vsel %vm4113_vm14, %v4535_v22, %v4462_v7  ;;  %v4879_v52 = vrot.slane %v10690_v44, 7  ;;  %v3817_v0 = vmax.f32 %v3721_v48, 0.0 }
 0x25c   :  { %v3818_v50 = vmax.f32 %v3722_v35, 0.0  ;;  %v3819_v20 = vmax.f32 %v3723_v34, 0.0  ;;  %v3912_v57 = vpack.c.bf16 %v3816_v61, %v3816_v61  ;;  %v3067_v40 = vcombine.high %v3065_v63, %v3065_v63 }
 0x25d   :  { %v3913_v59 = vpack.c.bf16 %v3817_v0, %v3817_v0  ;;  %v7263_v26 = vrot.slane %v3058_v29, 9  ;;  %v7264_v18 = vrot.slane %v3066_v53, 9  ;;  %v7265_v24 = vrot.slane %v3065_v63, 9 }
 0x25e   :  { %v10706_v14 = vsel %vm4116_vm15, %v4523_v5, %v4522_v8  ;;  %v10710_v42 = vsel %vm4113_vm14, %v4865_v51, %v10667_v41  ;;  %v10713_v7 = vsel %vm4116_vm15, %v4191_v49, %v4190_v36  ;;  %v7266_v21 = vrot.slane %v3067_v40, 9 }
 0x25f   :  { %12295 = vst [vmem:[#allocation64_spill] sm:$0xff] %v10706_v14  ;;  %12296 = vst [vmem:[#allocation65_spill] sm:$0xff] %v10710_v42  ;;  %v3914_v6 = vpack.c.bf16 %v3818_v50, %v3818_v50  ;;  %v3609_v55 = vmax.f32 %v3058_v29, %v7263_v26  ;;  %v3610_v22 = vmax.f32 %v3066_v53, %v7264_v18  ;;  %v10721_v8 = vunpack.c.l.b16 %v3912_v57 }
 0x260   :  { %12297 = vst [vmem:[#allocation66_spill] sm:$0xff] %v10713_v7  ;;  %v3611_v48 = vmax.f32 %v3065_v63, %v7265_v24  ;;  %v10716_v35 = vsel %vm4116_vm15, %v4537_v27, %v4536_v31  ;;  %v10719_v34 = vsel %vm4113_vm14, %v4879_v52, %v4089_v46  ;;  %v3915_v5 = vpack.c.bf16 %v3819_v20, %v3819_v20  ;;  %v12300_v63 = vld [vmem:[#allocation5_spill] sm:$0xff]  ;;  %v12301_v27 = vld [vmem:[#allocation6_spill] sm:$0xff] }
 0x261   :  { %12298 = vst [vmem:[#allocation67_spill] sm:$0xff] %v10716_v35  ;;  %12299 = vst [vmem:[#allocation68_spill] sm:$0xff] %v10719_v34  ;;  %v10723_v61 = vunpack.c.l.b16 %v3913_v59  ;;  %v3612_v51 = vmax.f32 %v3067_v40, %v7266_v21  ;;  %v3740_v41 = vadd.f32 %v10132_v10, %v3609_v55  ;;  %v3741_v49 = vadd.f32 %v10145_v15, %v3610_v22  ;;  %v12302_v46 = vld [vmem:[#allocation17_spill] sm:$0xff] }
 0x262   :  { %v3742_v29 = vadd.f32 %v10142_v4, %v3611_v48  ;;  %v2713_v53 = vmax.f32 %v12300_v63, %v10280_v12  ;;  %v2716_v36 = vmax.f32 %v12301_v27, %v10314_v60  ;;  %v10734_v31 = vmax.f32 %v12302_v46, %v10347_v11 }
 0x263   :  { %v10736_v52 = vunpack.c.l.b16 %v3914_v6  ;;  %v3743_v0 = vadd.f32 %v10148_v17, %v3612_v51  ;;  %v3836_v50 = vmax.f32 %v3740_v41, 0.0  ;;  %v3837_v20 = vmax.f32 %v3741_v49, 0.0 }
 0x264   :  { %v10739_v57 = vunpack.c.l.b16 %v3915_v5  ;;  %v3838_v40 = vmax.f32 %v3742_v29, 0.0  ;;  %v3017_v59 = vcombine.high %v2713_v53, %v2713_v53  ;;  %v3024_v26 = vrot.slane %v2713_v53, %v10121_v39 }
 0x265   :  { %v3839_v18 = vmax.f32 %v3743_v0, 0.0  ;;  %v3933_v60 = vpack.c.bf16 %v3837_v20, %v3837_v20  ;;  %v3068_v24 = vcombine.high %v2716_v36, %v2716_v36  ;;  %v3932_v22 = vpack.c.bf16 %v3836_v50, %v3836_v50 }
 0x266   :  { %v3934_v21 = vpack.c.bf16 %v3838_v40, %v3838_v40  ;;  %v3031_v11 = vrot.slane %v3017_v59, %v10121_v39  ;;  %v3032_v6 = vcombine.high %v3024_v26, %v3024_v26  ;;  %v7255_v55 = vrot.slane %v3024_v26, 9 }
 0x267   :  { %v3935_v48 = vpack.c.bf16 %v3839_v18, %v3839_v18  ;;  %v4096_v51 = vunpack.c.l.b16 %v3933_v60  ;;  %v3075_v5 = vrot.slane %v2716_v36, %v10121_v39  ;;  %v3082_v50 = vrot.slane %v3068_v24, %v10121_v39 }
 0x268   :  { %v4097_v41 = vunpack.c.l.b16 %v3934_v21  ;;  %v3033_v49 = vcombine.high %v3031_v11, %v3031_v11  ;;  %v7256_v29 = vrot.slane %v3032_v6, 9  ;;  %v7257_v63 = vrot.slane %v3031_v11, 9 }
 0x269   :  { %v10746_v27 = vunpack.c.l.b16 %v3935_v48  ;;  %v4549_v46 = vrot.slane %v4096_v51, 7  ;;  %v3601_v0 = vmax.f32 %v3024_v26, %v7255_v55  ;;  %v4463_v60 = vunpack.c.l.b16 %v3932_v22 }
 0x26a   :  { %v7258_v40 = vrot.slane %v3033_v49, 9  ;;  %v3602_v59 = vmax.f32 %v3032_v6, %v7256_v29  ;;  %v4203_v18 = vrot.slane %v4097_v41, 7  ;;  %v3603_v12 = vmax.f32 %v3031_v11, %v7257_v63 }
 0x26b   :  { %12303 = vst [vmem:[#allocation5_spill] sm:$0xff] %v10746_v27  ;;  %v3083_v36 = vcombine.high %v3075_v5, %v3075_v5  ;;  %v4205_v21 = vrot.slane %v10746_v27, 6  ;;  %v4551_v34 = vrot.slane %v4097_v41, 6  ;;  %v3732_v53 = vadd.f32 %v10170_v23, %v3601_v0 }
 0x26c   :  { %v3604_v42 = vmax.f32 %v3033_v49, %v7258_v40  ;;  %v4550_v48 = vsel %vm4113_vm14, %v4549_v46, %v4463_v60  ;;  %v4893_v26 = vrot.slane %v10746_v27, 7  ;;  %v3733_v55 = vadd.f32 %v10223_v62, %v3602_v59 }
 0x26d   :  { %v3734_v6 = vadd.f32 %v10204_v28, %v3603_v12  ;;  %v3828_v29 = vmax.f32 %v3732_v53, 0.0  ;;  %v3084_v22 = vcombine.high %v3082_v50, %v3082_v50  ;;  %v7267_v11 = vrot.slane %v3075_v5, 9 }
 0x26e   :  { %v3735_v24 = vadd.f32 %v10226_v16, %v3604_v42  ;;  %v3829_v63 = vmax.f32 %v3733_v55, 0.0  ;;  %v7268_v35 = vrot.slane %v3083_v36, 9  ;;  %v7269_v44 = vrot.slane %v3082_v50, 9 }
 0x26f   :  { %v3830_v20 = vmax.f32 %v3734_v6, 0.0  ;;  %v3924_v40 = vpack.c.bf16 %v3828_v29, %v3828_v29  ;;  %v7270_v0 = vrot.slane %v3084_v22, 9  ;;  %v3613_v14 = vmax.f32 %v3075_v5, %v7267_v11 }
 0x270   :  { %v3831_v49 = vmax.f32 %v3735_v24, 0.0  ;;  %v4204_v46 = vsel %vm4113_vm14, %v4203_v18, %v4096_v51  ;;  %v3925_v60 = vpack.c.bf16 %v3829_v63, %v3829_v63  ;;  %v3614_v27 = vmax.f32 %v3083_v36, %v7268_v35 }
 0x271   :  { %v3615_v59 = vmax.f32 %v3082_v50, %v7269_v44  ;;  %v3926_v7 = vpack.c.bf16 %v3830_v20, %v3830_v20  ;;  %v3616_v12 = vmax.f32 %v3084_v22, %v7270_v0  ;;  %v3744_v42 = vadd.f32 %v10170_v23, %v3613_v14 }
 0x272   :  { %v4118_v53 = vrot.slane %v10312_v32, 5  ;;  %v3927_v33 = vpack.c.bf16 %v3831_v49, %v3831_v49  ;;  %v10760_v55 = vunpack.c.l.b16 %v3924_v40  ;;  %v3745_v6 = vadd.f32 %v10223_v62, %v3614_v27 }
 0x273   :  { %v3746_v24 = vadd.f32 %v10204_v28, %v3615_v59  ;;  %v10765_v5 = vsel %vm4116_vm15, %v4205_v21, %v4204_v46  ;;  %v10768_v51 = vsel %vm4116_vm15, %v4551_v34, %v4550_v48  ;;  %v10771_v44 = vsel %vm4113_vm14, %v4893_v26, %v4097_v41 }
 0x274   :  { %12304 = vst [vmem:[#allocation6_spill] sm:$0xff] %v10768_v51  ;;  %12305 = vst [vmem:[#allocation17_spill] sm:$0xff] %v10771_v44  ;;  %v3747_v14 = vadd.f32 %v10226_v16, %v3616_v12  ;;  %v10774_v35 = vunpack.c.l.b16 %v3925_v60  ;;  %v3840_v20 = vmax.f32 %v3744_v42, 0.0  ;;  %v3841_v50 = vmax.f32 %v3745_v6, 0.0 }
 0x275   :  { %v3842_v18 = vmax.f32 %v3746_v24, 0.0  ;;  %v10776_v36 = vunpack.c.l.b16 %v3926_v7  ;;  %v3034_v21 = vcombine.high %v10734_v31, %v10734_v31  ;;  %v3041_v34 = vrot.slane %v10734_v31, %v10121_v39 }
 0x276   :  { %v3843_v27 = vmax.f32 %v3747_v14, 0.0  ;;  %v10782_v48 = vunpack.c.l.b16 %v3927_v33  ;;  %v3936_v26 = vpack.c.bf16 %v3840_v20, %v3840_v20  ;;  %v3937_v29 = vpack.c.bf16 %v3841_v50, %v3841_v50 }
 0x277   :  { %v3048_v22 = vrot.slane %v3034_v21, %v10121_v39  ;;  %v3049_v11 = vcombine.high %v3041_v34, %v3041_v34  ;;  %v7259_v63 = vrot.slane %v3041_v34, 9  ;;  %v4120_v7 = vsel %vm4119_vm0, %v4118_v53, %v10297_v43 }
 0x278   :  { %v3938_v49 = vpack.c.bf16 %v3842_v18, %v3842_v18  ;;  %v3939_v40 = vpack.c.bf16 %v3843_v27, %v3843_v27  ;;  %v10788_v0 = vunpack.c.l.b16 %v3936_v26  ;;  %v4121_v46 = vrot.slane %v10318_v38, 4 }
 0x279   :  { %v3050_v31 = vcombine.high %v3048_v22, %v3048_v22  ;;  %v7260_v60 = vrot.slane %v3049_v11, 9  ;;  %v7261_v59 = vrot.slane %v3048_v22, 9  ;;  %v10793_v42 = vunpack.c.l.b16 %v3937_v29 }
 0x27a   :  { %v3605_v6 = vmax.f32 %v3041_v34, %v7259_v63  ;;  %v4123_v24 = vsel %vm4122_vm1, %v4121_v46, %v4120_v7  ;;  %v4124_v20 = vrot.slane %v10343_v2, 3  ;;  %v10797_v50 = vunpack.c.l.b16 %v3938_v49 }
 0x27b   :  { %v7262_v14 = vrot.slane %v3050_v31, 9  ;;  %v3606_v43 = vmax.f32 %v3049_v11, %v7260_v60  ;;  %v3607_v53 = vmax.f32 %v3048_v22, %v7261_v59  ;;  %v10799_v18 = vunpack.c.l.b16 %v3939_v40 }
 0x27c   :  { %v3736_v21 = vadd.f32 %v10132_v10, %v3605_v6  ;;  %v4126_v63 = vsel %vm4125_vm2, %v4124_v20, %v4123_v24  ;;  %v4127_v22 = vrot.slane %v10365_v58, 2  ;;  %v4137_v7 = vrot.slane %v10377_v30, 5 }
 0x27d   :  { %v3737_v29 = vadd.f32 %v10145_v15, %v3606_v43  ;;  %v3738_v34 = vadd.f32 %v10142_v4, %v3607_v53  ;;  %v4139_v49 = vrot.slane %v10379_v47, 4  ;;  %v3608_v40 = vmax.f32 %v3050_v31, %v7262_v14 }
 0x27e   :  { %v3832_v11 = vmax.f32 %v3736_v21, 0.0  ;;  %v4129_v59 = vsel %vm4128_vm3, %v4127_v22, %v4126_v63  ;;  %v4138_v6 = vsel %vm4119_vm0, %v4137_v7, %v10304_v45  ;;  %v4141_v43 = vrot.slane %v10395_v13, 3  ;;  %v12306_v21 = vld [vmem:[#allocation9_spill] sm:$0xff]  ;;  %v12309_v22 = vld [vmem:[#allocation18_spill] sm:$0xff] }
 0x27f   :  { %v3833_v46 = vmax.f32 %v3737_v29, 0.0  ;;  %v3834_v60 = vmax.f32 %v3738_v34, 0.0  ;;  %v4143_v24 = vrot.slane %v10402_v3, 2  ;;  %v4130_v12 = vrot.slane %v12306_v21, 1 }
 0x280   :  { %v3928_v53 = vpack.c.bf16 %v3832_v11, %v3832_v11  ;;  %v4140_v26 = vsel %vm4122_vm1, %v4139_v49, %v4138_v6  ;;  %v4145_v34 = vrot.slane %v10455_v56, 1  ;;  %v10823_v45 = vadd.f32 %v10148_v17, %v3608_v40  ;;  %v10839_v40 = vld [vmem:[%s11938_s4 + $0x44] ss:$0 sps:$4 sm:$0xff]  }
 0x281   :  { %v3929_v20 = vpack.c.bf16 %v3833_v46, %v3833_v46  ;;  %v10818_v14 = vpack.c.bf16 %v3834_v60, %v3834_v60  ;;  %v4142_v29 = vsel %vm4125_vm2, %v4141_v43, %v4140_v26  ;;  %v4132_v63 = vsel %vm4131_vm4, %v4130_v12, %v4129_v59  ;;  %v12310_v46 = vld [vmem:[#allocation26_spill] sm:$0xff]  ;;  %v12311_v26 = vld [vmem:[#allocation27_spill] sm:$0xff]  ;;  %8563 = vmatprep.subr.msk.bf16.mxu0 %vm4275_vm6, %v10839_v40 }
 0x282   :  { %12308 = vst [vmem:[#allocation70_spill] sm:$0xff] %v10823_v45  ;;  %v4144_v11 = vsel %vm4128_vm3, %v4143_v24, %v4142_v29  ;;  %v2719_v7 = vmax.f32 %v12309_v22, %v10440_v25  ;;  %v2717_v60 = vmax.f32 %v12310_v46, %v10495_v1  ;;  %v10834_v6 = vmax.f32 %v12311_v26, %v10501_v9  ;;  %v10844_v12 = vld [vmem:[%s11939_s5 + $0x44] ss:$0 sps:$4 sm:$0xff]  }
 0x283   :  { %12307 = vst [vmem:[#allocation69_spill] sm:$0xff] %v10818_v14  ;;  %v4146_v49 = vsel %vm4131_vm4, %v4145_v34, %v4144_v11  ;;  %v10846_v25 = vunpack.c.l.b16 %v3928_v53  ;;  %v10848_v59 = vunpack.c.l.b16 %v3929_v20  ;;  %v12312_v20 = vld [vmem:[#allocation50_spill] sm:$0xff]  ;;  %8564 = vmatprep.subr.msk.bf16.mxu1 %vm4275_vm6, %v10844_v12 }
 0x284   :  { %v4231_v43 = vpack.c.b16 %v4146_v49, %v4132_v63  ;;  %v3119_v1 = vcombine.high %v2719_v7, %v2719_v7  ;;  %v3126_v9 = vrot.slane %v2719_v7, %v10121_v39  ;;  %v3085_v29 = vcombine.high %v2717_v60, %v2717_v60  ;;  %v12313_v22 = vld [vmem:[#allocation34_spill] sm:$0xff] }
 0x285   :  { %v3092_v34 = vrot.slane %v2717_v60, %v10121_v39  ;;  %v3136_v53 = vcombine.high %v10834_v6, %v10834_v6  ;;  %v10860_v63 = vmax.f32 %v12313_v22, %v12312_v20  ;;  %v3143_v31 = vrot.slane %v10834_v6, %v10121_v39 }
 0x286   :  { %8082 = vmatprep.mubr.msk.bf16.mxu0 %vm4262_vm5, %v4231_v43  ;;  %8100 = vmatprep.mubr.msk.bf16.mxu1 %vm4262_vm5, %v4231_v43  ;;  %v3133_v11 = vrot.slane %v3119_v1, %v10121_v39  ;;  %v3134_v49 = vcombine.high %v3126_v9, %v3126_v9  ;;  %v7279_v46 = vrot.slane %v3126_v9, 9  ;;  %v3099_v7 = vrot.slane %v3085_v29, %v10121_v39 }
 0x287   :  { %v3100_v26 = vcombine.high %v3092_v34, %v3092_v34  ;;  %v7271_v1 = vrot.slane %v3092_v34, 9 }
 0x288   :  { %v3135_v60 = vcombine.high %v3133_v11, %v3133_v11  ;;  %v7281_v43 = vrot.slane %v3133_v11, 9  ;;  %v7280_v20 = vrot.slane %v3134_v49, 9  ;;  %v3625_v22 = vmax.f32 %v3126_v9, %v7279_v46 }
 0x289   :  { %v3101_v33 = vcombine.high %v3099_v7, %v3099_v7  ;;  %v7272_v27 = vrot.slane %v3100_v26, 9  ;;  %v7273_v29 = vrot.slane %v3099_v7, 9  ;;  %v3617_v44 = vmax.f32 %v3092_v34, %v7271_v1 }
 0x28a   :  { %v7282_v41 = vrot.slane %v3135_v60, 9  ;;  %v3627_v24 = vmax.f32 %v3133_v11, %v7281_v43  ;;  %v3626_v56 = vmax.f32 %v3134_v49, %v7280_v20  ;;  %v3756_v21 = vadd.f32 %v10170_v23, %v3625_v22 }
 0x28b   :  { %v7274_v51 = vrot.slane %v3101_v33, 9  ;;  %v3618_v3 = vmax.f32 %v3100_v26, %v7272_v27  ;;  %v3619_v30 = vmax.f32 %v3099_v7, %v7273_v29  ;;  %v3748_v58 = vadd.f32 %v10132_v10, %v3617_v44 }
 0x28c   :  { %v3628_v13 = vmax.f32 %v3135_v60, %v7282_v41  ;;  %v3758_v47 = vadd.f32 %v10204_v28, %v3627_v24  ;;  %v3757_v6 = vadd.f32 %v10223_v62, %v3626_v56  ;;  %v3852_v9 = vmax.f32 %v3756_v21, 0.0 }
 0x28d   :  { %v3620_v46 = vmax.f32 %v3101_v33, %v7274_v51  ;;  %v3749_v2 = vadd.f32 %v10145_v15, %v3618_v3  ;;  %v3750_v49 = vadd.f32 %v10142_v4, %v3619_v30  ;;  %v3844_v23 = vmax.f32 %v3748_v58, 0.0 }
 0x28e   :  { %v3759_v11 = vadd.f32 %v10226_v16, %v3628_v13  ;;  %v3854_v34 = vmax.f32 %v3758_v47, 0.0  ;;  %v3853_v43 = vmax.f32 %v3757_v6, 0.0  ;;  %v3948_v27 = vpack.c.bf16 %v3852_v9, %v3852_v9 }
 0x28f   :  { %v10877_v41 = vadd.f32 %v10148_v17, %v3620_v46  ;;  %v3845_v28 = vmax.f32 %v3749_v2, 0.0  ;;  %v3846_v7 = vmax.f32 %v3750_v49, 0.0  ;;  %v3940_v62 = vpack.c.bf16 %v3844_v23, %v3844_v23 }
 0x290   :  { %v3855_v24 = vmax.f32 %v3759_v11, 0.0  ;;  %v3950_v44 = vpack.c.bf16 %v3854_v34, %v3854_v34  ;;  %v3949_v56 = vpack.c.bf16 %v3853_v43, %v3853_v43  ;;  %v10879_v51 = vunpack.c.l.b16 %v3948_v27  ;;  %v10905_v11 = vld [vmem:[%s11938_s4] sm:$0xff]  }
 0x291   :  { %12314 = vst [vmem:[#allocation18_spill] sm:$0xff] %v10877_v41  ;;  %v3941_v3 = vpack.c.bf16 %v3845_v28, %v3845_v28  ;;  %v3150_v16 = vrot.slane %v3136_v53, %v10121_v39  ;;  %v12316_v33 = vunpack.c.l.b16 %v10818_v14  ;;  %v10892_v60 = vpack.c.bf16 %v3846_v7, %v3846_v7  ;;  %v10914_v27 = vld [vmem:[%s11939_s5] sm:$0xff]   ;;  %v12347_v14 = vld [vmem:[#allocation35_spill] sm:$0xff] }
 0x292   :  { %12315 = vst [vmem:[#allocation26_spill] sm:$0xff] %v10879_v51  ;;  %v3951_v13 = vpack.c.bf16 %v3855_v24, %v3855_v24  ;;  %v10889_v21 = vunpack.c.l.b16 %v3950_v44  ;;  %v10894_v1 = vunpack.c.l.b16 %v3949_v56  ;;  %v10897_v20 = vunpack.c.l.b16 %v3940_v62  ;;  %v12335_v53 = vld [vmem:[#allocation54_spill] sm:$0xff] }
 0x293   :  { %v10887_v2 = vrot.slane %v12316_v33, 2  ;;  %12318 = vst [vmem:[#allocation50_spill] sm:$0xff] %v10892_v60  ;;  %v3151_v22 = vcombine.high %v3143_v31, %v3143_v31  ;;  %v10900_v6 = vunpack.c.l.b16 %v3941_v3  ;;  %v3152_v9 = vcombine.high %v3150_v16, %v3150_v16 }
 0x294   :  { %v7283_v46 = vrot.slane %v3143_v31, 9  ;;  %v10907_v34 = vunpack.c.l.b16 %v3951_v13  ;;  %v7285_v23 = vrot.slane %v3150_v16, 9  ;;  %v3102_v43 = vcombine.high %v10860_v63, %v10860_v63 }
 0x295   :  { %12317 = vst [vmem:[#allocation27_spill] sm:$0xff] %v10887_v2  ;;  %v7284_v49 = vrot.slane %v3151_v22, 9  ;;  %v7286_v28 = vrot.slane %v3152_v9, 9  ;;  %v3109_v44 = vrot.slane %v10860_v63, %v10121_v39  ;;  %v4277_v7 = vsel %vm4275_vm6, %v10839_v40, 0 }
 0x296   :  { %v3629_v24 = vmax.f32 %v3143_v31, %v7283_v46  ;;  %v3631_v56 = vmax.f32 %v3150_v16, %v7285_v23  ;;  %v3116_v3 = vrot.slane %v3102_v43, %v10121_v39  ;;  %8081 = vmatpush3.bf16.msra.mxu0 %v4277_v7  ;;  %v4382_v13 = vsel %vm4275_vm6, %v10844_v12, 0 }
 0x297   :  { %v3630_v62 = vmax.f32 %v3151_v22, %v7284_v49  ;;  %v3632_v33 = vmax.f32 %v3152_v9, %v7286_v28  ;;  %v3117_v58 = vcombine.high %v3109_v44, %v3109_v44  ;;  %v7275_v26 = vrot.slane %v3109_v44, 9  ;;  %8099 = vmatpush3.bf16.msra.mxu1 %v4382_v13  ;;  %8108 = vmatprep.subr.bf16.mxu0 %v10905_v11 }
 0x298   :  { %v3760_v30 = vadd.f32 %v10132_v10, %v3629_v24  ;;  %v3762_v40 = vadd.f32 %v10142_v4, %v3631_v56  ;;  %v3118_v63 = vcombine.high %v3116_v3, %v3116_v3  ;;  %v7277_v16 = vrot.slane %v3116_v3, 9  ;;  %8126 = vmatprep.subr.bf16.mxu1 %v10914_v27 }
 0x299   :  { %v3761_v31 = vadd.f32 %v10145_v15, %v3630_v62  ;;  %v10929_v22 = vadd.f32 %v10148_v17, %v3632_v33  ;;  %v7276_v9 = vrot.slane %v3117_v58, 9  ;;  %v3621_v46 = vmax.f32 %v3109_v44, %v7275_v26 }
 0x29a   :  { %v3856_v12 = vmax.f32 %v3760_v30, 0.0  ;;  %v3858_v23 = vmax.f32 %v3762_v40, 0.0  ;;  %v7278_v43 = vrot.slane %v3118_v63, 9  ;;  %v3623_v28 = vmax.f32 %v3116_v3, %v7277_v16  ;;  %v12322_v40 = vld [vmem:[#allocation36_spill] sm:$0xff]  ;;  %v12327_v30 = vld [vmem:[#allocation39_spill] sm:$0xff] }
 0x29b   :  { %12319 = vst [vmem:[#allocation34_spill] sm:$0xff] %v10929_v22  ;;  %v3857_v49 = vmax.f32 %v3761_v31, 0.0  ;;  %v3622_v62 = vmax.f32 %v3117_v58, %v7276_v9  ;;  %v3752_v56 = vadd.f32 %v10132_v10, %v3621_v46  ;;  %v12321_v31 = vld [vmem:[#allocation30_spill] sm:$0xff]  ;;  %v12323_v3 = vrot.slane %v12322_v40, 5 }
 0x29c   :  { %v3952_v7 = vpack.c.bf16 %v3856_v12, %v3856_v12  ;;  %v10933_v47 = vpack.c.bf16 %v3858_v23, %v3858_v23  ;;  %v3624_v29 = vmax.f32 %v3118_v63, %v7278_v43  ;;  %v3754_v33 = vadd.f32 %v10142_v4, %v3623_v28 }
 0x29d   :  { %v3953_v13 = vpack.c.bf16 %v3857_v49, %v3857_v49  ;;  %v3753_v26 = vadd.f32 %v10145_v15, %v3622_v62  ;;  %v3848_v44 = vmax.f32 %v3752_v56, 0.0  ;;  %v4152_v16 = vsel %vm4119_vm0, %v12323_v3, %v12321_v31  ;;  %v12324_v49 = vld [vmem:[#allocation37_spill] sm:$0xff] }
 0x29e   :  { %12320 = vst [vmem:[#allocation71_spill] sm:$0xff] %v10933_v47  ;;  %v3755_v12 = vadd.f32 %v10148_v17, %v3624_v29  ;;  %v3850_v9 = vmax.f32 %v3754_v33, 0.0  ;;  %v10945_v63 = vunpack.c.l.b16 %v3952_v7  ;;  %v12325_v23 = vrot.slane %v12324_v49, 4  ;;  %v12329_v29 = vld [vmem:[#allocation40_spill] sm:$0xff]  ;;  %v12346_v47 = vld [vmem:[#allocation33_spill] sm:$0xff] }
 0x29f   :  { %v3849_v4 = vmax.f32 %v3753_v26, 0.0  ;;  %v3944_v46 = vpack.c.bf16 %v3848_v44, %v3848_v44  ;;  %v10950_v43 = vunpack.c.l.b16 %v3953_v13  ;;  %v12328_v58 = vrot.slane %v12327_v30, 3 }
 0x2a0   :  { %v4154_v15 = vsel %vm4122_vm1, %v12325_v23, %v4152_v16  ;;  %v3851_v62 = vmax.f32 %v3755_v12, 0.0  ;;  %v3946_v56 = vpack.c.bf16 %v3850_v9, %v3850_v9  ;;  %v4157_v7 = vrot.slane %v12329_v29, 2  ;;  %v12331_v16 = vld [vmem:[#allocation49_spill] sm:$0xff] }
 0x2a1   :  { %12326 = vst [vmem:[#allocation30_spill] sm:$0xff] %v10950_v43  ;;  %v3945_v31 = vpack.c.bf16 %v3849_v4, %v3849_v4  ;;  %v4464_v3 = vunpack.c.l.b16 %v3944_v46  ;;  %v4156_v17 = vsel %vm4125_vm2, %v12328_v58, %v4154_v15  ;;  %v12330_v44 = vrot.slane %v10474_v54, 3 }
 0x2a2   :  { %v3947_v33 = vpack.c.bf16 %v3851_v62, %v3851_v62  ;;  %v4105_v26 = vunpack.c.l.b16 %v3946_v56  ;;  %v4171_v23 = vrot.slane %v12331_v16, 2  ;;  %v4158_v12 = vsel %vm4128_vm3, %v4157_v7, %v4156_v17  ;;  %v12333_v62 = vld [vmem:[#allocation51_spill] sm:$0xff] }
 0x2a3   :  { %v4170_v13 = vsel %vm4125_vm2, %v12330_v44, %v10617_v19  ;;  %v4104_v10 = vunpack.c.l.b16 %v3945_v31  ;;  %v4179_v9 = vrot.slane %v10721_v8, 5  ;;  %v4181_v4 = vrot.slane %v10723_v61, 4 }
 0x2a4   :  { %v10965_v46 = vunpack.c.l.b16 %v3947_v33  ;;  %v4217_v58 = vrot.slane %v4105_v26, 7  ;;  %v4565_v15 = vrot.slane %v4105_v26, 6  ;;  %v12334_v56 = vrot.slane %v12333_v62, 1 }
 0x2a5   :  { %v4563_v24 = vrot.slane %v4104_v10, 7  ;;  %v4172_v19 = vsel %vm4128_vm3, %v4171_v23, %v4170_v13  ;;  %v4180_v31 = vsel %vm4119_vm0, %v4179_v9, %v10693_v37  ;;  %v4183_v17 = vrot.slane %v10736_v52, 3  ;;  %v8623_v37 = vld [vmem:[%s11938_s4 + $0x8] sm:$0xff]  }
 0x2a6   :  { %12332 = vst [vmem:[#allocation36_spill] sm:$0xff] %v10965_v46  ;;  %v4160_v28 = vsel %vm4131_vm4, %v12334_v56, %v4158_v12  ;;  %v4218_v7 = vsel %vm4113_vm14, %v4217_v58, %v4104_v10  ;;  %v4219_v44 = vrot.slane %v10965_v46, 6  ;;  %v4907_v33 = vrot.slane %v10965_v46, 7  ;;  %v8624_v10 = vld [vmem:[%s11939_s5 + $0x8] sm:$0xff]  }
 0x2a7   :  { %v12336_v39 = vrot.slane %v12335_v53, 1  ;;  %v4564_v12 = vsel %vm4113_vm14, %v4563_v24, %v4464_v3  ;;  %v4182_v13 = vsel %vm4122_vm1, %v4181_v4, %v4180_v31  ;;  %v4185_v23 = vrot.slane %v10739_v57, 2  ;;  %v12338_v4 = vld [vmem:[#allocation62_spill] sm:$0xff] }
 0x2a8   :  { %v4220_v9 = vsel %vm4116_vm15, %v4219_v44, %v4218_v7  ;;  %v10991_v58 = vsel %vm4116_vm15, %v4565_v15, %v4564_v12  ;;  %v12337_v24 = vrot.slane %v10879_v51, 6  ;;  %v4193_v15 = vrot.slane %v10760_v55, 5 }
 0x2a9   :  { %v4174_v2 = vsel %vm4131_vm4, %v12336_v39, %v4172_v19  ;;  %v4908_v39 = vsel %vm4113_vm14, %v4907_v33, %v4105_v26  ;;  %v4187_v19 = vrot.slane %v12338_v4, 1  ;;  %v4195_v31 = vrot.slane %v10774_v35, 4  ;;  %v12339_v33 = vld [vmem:[#allocation66_spill] sm:$0xff] }
 0x2aa   :  { %v4232_v56 = vpack.c.b16 %v4174_v2, %v4160_v28  ;;  %v4184_v2 = vsel %vm4125_vm2, %v4183_v17, %v4182_v13  ;;  %v10998_v28 = vsel %vm4116_vm15, %v12337_v24, %v4908_v39  ;;  %v4197_v26 = vrot.slane %v10776_v36, 3  ;;  %v8626_v13 = vld [vmem:[%s11939_s5 + $0x10] sm:$0xff]  }
 0x2ab   :  { %v4186_v3 = vsel %vm4128_vm3, %v4185_v23, %v4184_v2  ;;  %v4199_v17 = vrot.slane %v10782_v48, 2  ;;  %v4201_v7 = vrot.slane %v10846_v25, 1  ;;  %v4194_v12 = vsel %vm4119_vm0, %v4193_v15, %v12339_v33 }
 0x2ac   :  { %8083 = vmatmul.mubr.msk.bf16.vlgmr.msra.gmra.mrb[24].mxu0 %vm4262_vm5, %v4232_v56  ;;  %8101 = vmatmul.mubr.msk.bf16.vlgmr.msra.gmra.mrb[32].mxu1 %vm4262_vm5, %v4232_v56  ;;  %v4188_v44 = vsel %vm4131_vm4, %v4187_v19, %v4186_v3  ;;  %v8625_v56 = vld [vmem:[%s11938_s4 + $0x10] sm:$0xff]   ;;  %v4207_v23 = vrot.slane %v10788_v0, 5  ;;  %v4211_v39 = vrot.slane %v10797_v50, 3  ;;  %v4213_v2 = vrot.slane %v10799_v18, 2 }
 0x2ad   :  { %8109 = vmatpush3.bf16.msra.mxu0 %v10905_v11  ;;  %8127 = vmatpush3.bf16.msra.mxu1 %v10914_v27  ;;  %v4209_v11 = vrot.slane %v10793_v42, 4  ;;  %v4196_v27 = vsel %vm4122_vm1, %v4195_v31, %v4194_v12  ;;  %v4215_v24 = vrot.slane %v10897_v20, 1  ;;  %v4221_v15 = vrot.slane %v10879_v51, 5 }
 0x2ae   :  { %8110 = vmatprep.subr.bf16.mxu0 %v8623_v37  ;;  %8128 = vmatprep.subr.bf16.mxu1 %v8624_v10  ;;  %v4198_v3 = vsel %vm4125_vm2, %v4197_v26, %v4196_v27  ;;  %v4208_v19 = vsel %vm4119_vm0, %v4207_v23, %v10765_v5  ;;  %v4223_v33 = vrot.slane %v10894_v1, 4  ;;  %v4225_v12 = vrot.slane %v10889_v21, 3 }
 0x2af   :  { %v4200_v22 = vsel %vm4128_vm3, %v4199_v17, %v4198_v3  ;;  %v4210_v31 = vsel %vm4122_vm1, %v4209_v11, %v4208_v19  ;;  %v4227_v41 = vrot.slane %v10907_v34, 2  ;;  %v4222_v26 = vsel %vm4119_vm0, %v4221_v15, %v4220_v9  ;;  %v8629_v3 = vld [vmem:[%s11938_s4 + $0x20] ss:$0 sps:$4 sm:$0xff]  }
 0x2b0   :  { %v4202_v45 = vsel %vm4131_vm4, %v4201_v7, %v4200_v22  ;;  %v4212_v5 = vsel %vm4125_vm2, %v4211_v39, %v4210_v31  ;;  %v4229_v23 = vrot.slane %v10945_v63, 1  ;;  %v4224_v22 = vsel %vm4122_vm1, %v4223_v33, %v4222_v26  ;;  %v12340_v7 = vld [vmem:[#allocation15_spill] sm:$0xff]  ;;  %v12341_v19 = vld [vmem:[#allocation22_spill] sm:$0xff]  ;;  %v12343_v31 = vld [vmem:[#allocation29_spill] sm:$0xff] }
 0x2b1   :  { %8111 = vmatpush3.bf16.msra.mxu0 %v8623_v37  ;;  %8129 = vmatpush3.bf16.msra.mxu1 %v8624_v10  ;;  %v4233_v27 = vpack.c.b16 %v4202_v45, %v4188_v44  ;;  %v8627_v37 = vld [vmem:[%s11938_s4 + $0x18] sm:$0xff]   ;;  %v4214_v17 = vsel %vm4128_vm3, %v4213_v2, %v4212_v5  ;;  %v4469_v11 = vrot.slane %v12340_v7, 5  ;;  %v4226_v9 = vsel %vm4125_vm2, %v4225_v12, %v4224_v22  ;;  %v8630_v5 = vld [vmem:[%s11939_s5 + $0x20] ss:$0 sps:$4 sm:$0xff]  }
 0x2b2   :  { %8112 = vmatprep.subr.bf16.mxu0 %v8625_v56  ;;  %8130 = vmatprep.subr.bf16.mxu1 %v8626_v13  ;;  %v8628_v10 = vld [vmem:[%s11939_s5 + $0x18] sm:$0xff]   ;;  %v4216_v39 = vsel %vm4131_vm4, %v4215_v24, %v4214_v17  ;;  %v4471_v45 = vrot.slane %v10312_v32, 4  ;;  %v4473_v44 = vrot.slane %v10318_v38, 3  ;;  %v4228_v2 = vsel %vm4128_vm3, %v4227_v41, %v4226_v9  ;;  %v12342_v24 = vld [vmem:[#allocation28_spill] sm:$0xff] }
 0x2b3   :  { %8086 = vmatprep.mubr.msk.bf16.mxu0 %vm4262_vm5, %v4233_v27  ;;  %8104 = vmatprep.mubr.msk.bf16.mxu1 %vm4262_vm5, %v4233_v27  ;;  %v4470_v15 = vsel %vm4119_vm0, %v4469_v11, %v12341_v19  ;;  %v4475_v33 = vrot.slane %v12342_v24, 2  ;;  %v4477_v12 = vrot.slane %v12343_v31, 1  ;;  %v4230_v26 = vsel %vm4131_vm4, %v4229_v23, %v4228_v2  ;;  %v12344_v27 = vld [vmem:[#allocation21_spill] sm:$0xff]  ;;  %v12345_v41 = vld [vmem:[#allocation32_spill] sm:$0xff]  ;;  %v12349_v2 = vld [vmem:[#allocation38_spill] sm:$0xff] }
 0x2b4   :  { %v4472_v17 = vsel %vm4122_vm1, %v4471_v45, %v4470_v15  ;;  %v4483_v22 = vrot.slane %v12344_v27, 5  ;;  %v4485_v9 = vrot.slane %v12345_v41, 4  ;;  %v4234_v11 = vpack.c.b16 %v4230_v26, %v4216_v39 }
 0x2b5   :  { %8113 = vmatpush3.bf16.msra.mxu0 %v8625_v56  ;;  %8131 = vmatpush3.bf16.msra.mxu1 %v8626_v13  ;;  %v4474_v19 = vsel %vm4125_vm2, %v4473_v44, %v4472_v17  ;;  %v4487_v60 = vrot.slane %v12346_v47, 3  ;;  %v4489_v7 = vrot.slane %v12347_v14, 2  ;;  %v12348_v13 = vld [vmem:[#allocation24_spill] sm:$0xff]  ;;  %v4491_v45 = vrot.slane %v12349_v2, 1  ;;  %v12350_v17 = vld [vmem:[#allocation31_spill] sm:$0xff] }
 0x2b6   :  { %8114 = vmatprep.subr.bf16.mxu0 %v8627_v37  ;;  %8132 = vmatprep.subr.bf16.mxu1 %v8628_v10  ;;  %v4476_v56 = vsel %vm4128_vm3, %v4475_v33, %v4474_v19  ;;  %v4484_v23 = vsel %vm4119_vm0, %v4483_v22, %v12348_v13  ;;  %v4621_v15 = vsel %vm4275_vm6, %v8629_v3, 0  ;;  %v4716_v26 = vsel %vm4275_vm6, %v8630_v5, 0 }
 0x2b7   :  { %8087 = vmatmul.mubr.msk.bf16.gmra.mrb[28].mxu0 %vm4262_vm5, %v4234_v11  ;;  %8105 = vmatmul.mubr.msk.bf16.gmra.mrb[36].mxu1 %vm4262_vm5, %v4234_v11  ;;  %v4478_v39 = vsel %vm4131_vm4, %v4477_v12, %v4476_v56  ;;  %v4486_v44 = vsel %vm4122_vm1, %v4485_v9, %v4484_v23  ;;  %v12351_v33 = vrot.slane %v12322_v40, 4  ;;  %v12352_v13 = vrot.slane %v12324_v49, 3  ;;  %v12353_v12 = vld [vmem:[#allocation58_spill] sm:$0xff]  ;;  %v12354_v56 = vld [vmem:[#allocation47_spill] sm:$0xff] }
 0x2b8   :  { %v4488_v22 = vsel %vm4125_vm2, %v4487_v60, %v4486_v44  ;;  %v4505_v11 = vrot.slane %v12329_v29, 1  ;;  %v12355_v9 = vrot.slane %v12354_v56, 3  ;;  %v12356_v40 = vrot.slane %v12327_v30, 2 }
 0x2b9   :  { %v4500_v19 = vsel %vm4122_vm1, %v12351_v33, %v12350_v17  ;;  %8115 = vmatpush3.bf16.msra.mxu0 %v8627_v37  ;;  %8133 = vmatpush3.bf16.msra.mxu1 %v8628_v10  ;;  %v4490_v43 = vsel %vm4128_vm3, %v4489_v7, %v4488_v22  ;;  %v12357_v37 = vrot.slane %v10474_v54, 2  ;;  %v4519_v44 = vrot.slane %v12331_v16, 1  ;;  %v8631_v7 = vld [vmem:[%s11938_s4 + $0x48] sm:$0xff]   ;;  %v12358_v33 = vld [vmem:[#allocation20_spill] sm:$0xff] }
 0x2ba   :  { %v4502_v27 = vsel %vm4125_vm2, %v12352_v13, %v4500_v19  ;;  %v4516_v23 = vsel %vm4125_vm2, %v12355_v9, %v12353_v12  ;;  %8565 = vmatprep.subr.msk.bf16.mxu0 %vm4275_vm6, %v8629_v3  ;;  %8566 = vmatprep.subr.msk.bf16.mxu1 %vm4275_vm6, %v8630_v5  ;;  %v4492_v17 = vsel %vm4131_vm4, %v4491_v45, %v4490_v43  ;;  %v8632_v3 = vld [vmem:[%s11939_s5 + $0x48] sm:$0xff]   ;;  %v4527_v54 = vrot.slane %v10721_v8, 4  ;;  %v12359_v12 = vld [vmem:[#allocation64_spill] sm:$0xff] }
 0x2bb   :  { %v4504_v60 = vsel %vm4128_vm3, %v12356_v40, %v4502_v27  ;;  %v4518_v10 = vsel %vm4128_vm3, %v12357_v37, %v4516_v23  ;;  %v4525_v27 = vrot.slane %v12358_v33, 5  ;;  %v4577_v19 = vpack.c.b16 %v4492_v17, %v4478_v39  ;;  %v8634_v37 = vld [vmem:[%s11939_s5 + $0x50] sm:$0xff]  }
 0x2bc   :  { %v4506_v5 = vsel %vm4131_vm4, %v4505_v11, %v4504_v60  ;;  %v4520_v22 = vsel %vm4131_vm4, %v4519_v44, %v4518_v10  ;;  %v4529_v13 = vrot.slane %v10723_v61, 3  ;;  %v4531_v43 = vrot.slane %v10736_v52, 2  ;;  %v12360_v11 = vld [vmem:[#allocation4_spill] sm:$0xff]  ;;  %v12361_v44 = vld [vmem:[#allocation67_spill] sm:$0xff] }
 0x2bd   :  { %8117 = vmatpush3.bf16.msra.mxu0 %v4621_v15  ;;  %8135 = vmatpush3.bf16.msra.mxu1 %v4716_v26  ;;  %v4578_v45 = vpack.c.b16 %v4520_v22, %v4506_v5  ;;  %v4526_v56 = vsel %vm4119_vm0, %v4525_v27, %v12359_v12  ;;  %v4533_v9 = vrot.slane %v10739_v57, 1  ;;  %v4539_v23 = vrot.slane %v12360_v11, 5  ;;  %v8633_v26 = vld [vmem:[%s11938_s4 + $0x50] sm:$0xff]   ;;  %v12362_v27 = vld [vmem:[#allocation5_spill] sm:$0xff] }
 0x2be   :  { %8118 = vmatprep.mubr.msk.bf16.mxu0 %vm4262_vm5, %v4577_v19  ;;  %8136 = vmatprep.mubr.msk.bf16.mxu1 %vm4262_vm5, %v4577_v19  ;;  %v4528_v39 = vsel %vm4122_vm1, %v4527_v54, %v4526_v56  ;;  %v4541_v40 = vrot.slane %v10760_v55, 4  ;;  %v4543_v60 = vrot.slane %v10774_v35, 3  ;;  %v4545_v15 = vrot.slane %v10776_v36, 2 }
 0x2bf   :  { %8144 = vmatprep.subr.bf16.mxu0 %v8631_v7  ;;  %8162 = vmatprep.subr.bf16.mxu1 %v8632_v3  ;;  %v4530_v10 = vsel %vm4125_vm2, %v4529_v13, %v4528_v39  ;;  %v4540_v17 = vsel %vm4119_vm0, %v4539_v23, %v12361_v44  ;;  %v4547_v5 = vrot.slane %v10782_v48, 1  ;;  %v4553_v54 = vrot.slane %v12362_v27, 5  ;;  %v12363_v39 = vld [vmem:[#allocation6_spill] sm:$0xff] }
 0x2c0   :  { %8119 = vmatmul.mubr.msk.bf16.vlgmr.msra.gmra.mrb[24].mxu0 %vm4262_vm5, %v4578_v45  ;;  %8137 = vmatmul.mubr.msk.bf16.vlgmr.msra.gmra.mrb[32].mxu1 %vm4262_vm5, %v4578_v45  ;;  %v4532_v19 = vsel %vm4128_vm3, %v4531_v43, %v4530_v10  ;;  %v4542_v22 = vsel %vm4122_vm1, %v4541_v40, %v4540_v17  ;;  %v4555_v12 = vrot.slane %v10788_v0, 4  ;;  %v4557_v56 = vrot.slane %v10793_v42, 3 }
 0x2c1   :  { %8145 = vmatpush3.bf16.msra.mxu0 %v8631_v7  ;;  %8163 = vmatpush3.bf16.msra.mxu1 %v8632_v3  ;;  %v4534_v13 = vsel %vm4131_vm4, %v4533_v9, %v4532_v19  ;;  %v4544_v23 = vsel %vm4125_vm2, %v4543_v60, %v4542_v22  ;;  %v4554_v44 = vsel %vm4119_vm0, %v4553_v54, %v12363_v39  ;;  %v4559_v27 = vrot.slane %v10797_v50, 2  ;;  %v8635_v9 = vld [vmem:[%s11938_s4 + $0x58] sm:$0xff]   ;;  %v12364_v39 = vld [vmem:[#allocation23_spill] sm:$0xff] }
 0x2c2   :  { %v4546_v45 = vsel %vm4128_vm3, %v4545_v15, %v4544_v23  ;;  %8146 = vmatprep.subr.bf16.mxu0 %v8633_v26  ;;  %8164 = vmatprep.subr.bf16.mxu1 %v8634_v37  ;;  %v4556_v43 = vsel %vm4122_vm1, %v4555_v12, %v4554_v44  ;;  %v4561_v40 = vrot.slane %v10799_v18, 1  ;;  %v4567_v7 = vrot.slane %v10965_v46, 5  ;;  %v8636_v60 = vld [vmem:[%s11939_s5 + $0x58] sm:$0xff]  }
 0x2c3   :  { %v4548_v3 = vsel %vm4131_vm4, %v4547_v5, %v4546_v45  ;;  %v4558_v15 = vsel %vm4125_vm2, %v4557_v56, %v4556_v43  ;;  %v4569_v10 = vrot.slane %v10879_v51, 4  ;;  %v4571_v17 = vrot.slane %v10894_v1, 3  ;;  %v8638_v43 = vld [vmem:[%s11939_s5 + $0x60] sm:$0xff]  }
 0x2c4   :  { %v4579_v54 = vpack.c.b16 %v4548_v3, %v4534_v13  ;;  %v4560_v19 = vsel %vm4128_vm3, %v4559_v27, %v4558_v15  ;;  %v4568_v5 = vsel %vm4119_vm0, %v4567_v7, %v10991_v58  ;;  %v4573_v22 = vrot.slane %v10889_v21, 2  ;;  %v8637_v27 = vld [vmem:[%s11938_s4 + $0x60] sm:$0xff]   ;;  %v12366_v3 = vld [vmem:[#allocation9_spill] sm:$0xff] }
 0x2c5   :  { %8147 = vmatpush3.bf16.msra.mxu0 %v8633_v26  ;;  %8165 = vmatpush3.bf16.msra.mxu1 %v8634_v37  ;;  %v4562_v12 = vsel %vm4131_vm4, %v4561_v40, %v4560_v19  ;;  %v4570_v23 = vsel %vm4122_vm1, %v4569_v10, %v4568_v5  ;;  %v4575_v56 = vrot.slane %v10907_v34, 1  ;;  %v12365_v44 = vrot.slane %v10312_v32, 6  ;;  %v8639_v40 = vld [vmem:[%s11938_s4 + $0x68] ss:$0 sps:$4 sm:$0xff]   ;;  %v12367_v10 = vld [vmem:[#allocation14_spill] sm:$0xff] }
 0x2c6   :  { %8122 = vmatprep.mubr.msk.bf16.mxu0 %vm4262_vm5, %v4579_v54  ;;  %8140 = vmatprep.mubr.msk.bf16.mxu1 %vm4262_vm5, %v4579_v54  ;;  %v4572_v58 = vsel %vm4125_vm2, %v4571_v17, %v4570_v23  ;;  %v4813_v26 = vrot.slane %v10318_v38, 5  ;;  %v4815_v37 = vrot.slane %v12342_v24, 4  ;;  %v4817_v45 = vrot.slane %v12343_v31, 3  ;;  %v12368_v54 = vld [vmem:[#allocation25_spill] sm:$0xff]  ;;  %v8640_v23 = vld [vmem:[%s11939_s5 + $0x68] ss:$0 sps:$4 sm:$0xff]  }
 0x2c7   :  { %v4812_v13 = vsel %vm4116_vm15, %v12365_v44, %v12364_v39  ;;  %8148 = vmatprep.subr.bf16.mxu0 %v8635_v9  ;;  %8166 = vmatprep.subr.bf16.mxu1 %v8636_v60  ;;  %v4574_v7 = vsel %vm4128_vm3, %v4573_v22, %v4572_v58  ;;  %v4819_v15 = vrot.slane %v12366_v3, 2  ;;  %v4821_v17 = vrot.slane %v12367_v10, 1 }
 0x2c8   :  { %v12369_v19 = vrot.slane %v12345_v41, 6  ;;  %v4576_v39 = vsel %vm4131_vm4, %v4575_v56, %v4574_v7  ;;  %v4814_v44 = vsel %vm4119_vm0, %v4813_v26, %v4812_v13  ;;  %v4827_v51 = vrot.slane %v12346_v47, 5  ;;  %v12371_v56 = vld [vmem:[#allocation46_spill] sm:$0xff]  ;;  %v12372_v26 = vld [vmem:[#allocation41_spill] sm:$0xff] }
 0x2c9   :  { %v4829_v22 = vrot.slane %v12347_v14, 4  ;;  %v4580_v58 = vpack.c.b16 %v4576_v39, %v4562_v12  ;;  %8149 = vmatpush3.bf16.msra.mxu0 %v8635_v9  ;;  %8167 = vmatpush3.bf16.msra.mxu1 %v8636_v60  ;;  %v4816_v46 = vsel %vm4122_vm1, %v4815_v37, %v4814_v44  ;;  %v4831_v11 = vrot.slane %v12349_v2, 3  ;;  %v12375_v44 = vld [vmem:[#allocation59_spill] sm:$0xff] }
 0x2ca   :  { %v4826_v5 = vsel %vm4116_vm15, %v12369_v19, %v12368_v54  ;;  %v12370_v54 = vld [vmem:[#allocation45_spill] sm:$0xff]  ;;  %v4818_v33 = vsel %vm4125_vm2, %v4817_v45, %v4816_v46  ;;  %v4835_v7 = vrot.slane %v12371_v56, 1  ;;  %8150 = vmatprep.subr.bf16.mxu0 %v8637_v27  ;;  %8168 = vmatprep.subr.bf16.mxu1 %v8638_v43  ;;  %v4965_v13 = vsel %vm4275_vm6, %v8639_v40, 0 }
 0x2cb   :  { %v4833_v19 = vrot.slane %v12370_v54, 2  ;;  %v4828_v41 = vsel %vm4119_vm0, %v4827_v51, %v4826_v5  ;;  %8123 = vmatmul.mubr.msk.bf16.gmra.mrb[28].mxu0 %vm4262_vm5, %v4580_v58  ;;  %8141 = vmatmul.mubr.msk.bf16.gmra.mrb[36].mxu1 %vm4262_vm5, %v4580_v58  ;;  %v4820_v9 = vsel %vm4128_vm3, %v4819_v15, %v4818_v33  ;;  %v5070_v12 = vsel %vm4275_vm6, %v8640_v23, 0 }
 0x2cc   :  { %v4830_v60 = vsel %vm4122_vm1, %v4829_v22, %v4828_v41  ;;  %v12373_v46 = vrot.slane %v12324_v49, 5  ;;  %v4822_v37 = vsel %vm4131_vm4, %v4821_v17, %v4820_v9  ;;  %v12374_v5 = vrot.slane %v12327_v30, 4 }
 0x2cd   :  { %v4832_v45 = vsel %vm4125_vm2, %v4831_v11, %v4830_v60  ;;  %v12376_v33 = vrot.slane %v12331_v16, 3  ;;  %8151 = vmatpush3.bf16.msra.mxu0 %v8637_v27  ;;  %8169 = vmatpush3.bf16.msra.mxu1 %v8638_v43  ;;  %v12377_v49 = vrot.slane %v12329_v29, 3  ;;  %v12378_v17 = vrot.slane %v12335_v53, 2  ;;  %v12380_v43 = vld [vmem:[#allocation55_spill] sm:$0xff] }
 0x2ce   :  { %v4842_v51 = vsel %vm4119_vm0, %v12373_v46, %v12372_v26  ;;  %v4834_v15 = vsel %vm4128_vm3, %v4833_v19, %v4832_v45  ;;  %v4869_v58 = vrot.slane %v10723_v61, 5  ;;  %8567 = vmatprep.subr.msk.bf16.mxu0 %vm4275_vm6, %v8639_v40  ;;  %8568 = vmatprep.subr.msk.bf16.mxu1 %vm4275_vm6, %v8640_v23  ;;  %v12379_v19 = vrot.slane %v12333_v62, 2  ;;  %v12382_v45 = vld [vmem:[#allocation52_spill] sm:$0xff] }
 0x2cf   :  { %v4844_v39 = vsel %vm4122_vm1, %v12374_v5, %v4842_v51  ;;  %v4860_v41 = vsel %vm4125_vm2, %v12376_v33, %v12375_v44  ;;  %v4836_v9 = vsel %vm4131_vm4, %v4835_v7, %v4834_v15  ;;  %v12381_v60 = vrot.slane %v12380_v43, 1  ;;  %v8641_v40 = vld [vmem:[%s11938_s4 + $0x6c] sm:$0xff]   ;;  %v12384_v7 = vld [vmem:[#allocation65_spill] sm:$0xff] }
 0x2d0   :  { %v4846_v22 = vsel %vm4125_vm2, %v12377_v49, %v4844_v39  ;;  %v4862_v11 = vsel %vm4128_vm3, %v12378_v17, %v4860_v41  ;;  %v4871_v46 = vrot.slane %v10736_v52, 4  ;;  %v4921_v51 = vpack.c.b16 %v4836_v9, %v4822_v37  ;;  %v8642_v23 = vld [vmem:[%s11939_s5 + $0x6c] sm:$0xff]  }
 0x2d1   :  { %v4848_v27 = vsel %vm4128_vm3, %v12379_v19, %v4846_v22  ;;  %v4864_v26 = vsel %vm4131_vm4, %v12381_v60, %v4862_v11  ;;  %v12383_v5 = vrot.slane %v12382_v45, 1  ;;  %v12385_v44 = vrot.slane %v10721_v8, 6  ;;  %v12386_v22 = vld [vmem:[#allocation63_spill] sm:$0xff]  ;;  %v12387_v9 = vld [vmem:[#allocation68_spill] sm:$0xff]  ;;  %8153 = vmatpush3.bf16.msra.mxu0 %v4965_v13  ;;  %8171 = vmatpush3.bf16.msra.mxu1 %v5070_v12  ;;  %v12389_v12 = vld [vmem:[#allocation17_spill] sm:$0xff] }
 0x2d2   :  { %v4873_v41 = vrot.slane %v10739_v57, 3  ;;  %v4875_v49 = vrot.slane %v12338_v4, 2  ;;  %v4877_v17 = vrot.slane %v12386_v22, 1  ;;  %8154 = vmatprep.mubr.msk.bf16.mxu0 %vm4262_vm5, %v4921_v51  ;;  %8172 = vmatprep.mubr.msk.bf16.mxu1 %vm4262_vm5, %v4921_v51  ;;  %v12388_v19 = vrot.slane %v10760_v55, 6  ;;  %v8644_v13 = vld [vmem:[%s11939_s5 + $0x74] sm:$0xff]  }
 0x2d3   :  { %v4850_v39 = vsel %vm4131_vm4, %v12383_v5, %v4848_v27  ;;  %v4868_v33 = vsel %vm4116_vm15, %v12385_v44, %v12384_v7  ;;  %v4883_v60 = vrot.slane %v10774_v35, 5  ;;  %v4887_v5 = vrot.slane %v10782_v48, 3  ;;  %8180 = vmatprep.subr.bf16.mxu0 %v8641_v40  ;;  %8198 = vmatprep.subr.bf16.mxu1 %v8642_v23  ;;  %v8643_v44 = vld [vmem:[%s11938_s4 + $0x74] sm:$0xff]  }
 0x2d4   :  { %v4922_v37 = vpack.c.b16 %v4864_v26, %v4850_v39  ;;  %v4870_v15 = vsel %vm4119_vm0, %v4869_v58, %v4868_v33  ;;  %v4882_v27 = vsel %vm4116_vm15, %v12388_v19, %v12387_v9  ;;  %v4885_v26 = vrot.slane %v10776_v36, 4 }
 0x2d5   :  { %v4872_v11 = vsel %vm4122_vm1, %v4871_v46, %v4870_v15  ;;  %v4889_v39 = vrot.slane %v10846_v25, 2  ;;  %v4891_v51 = vrot.slane %v10848_v59, 1  ;;  %v4884_v7 = vsel %vm4119_vm0, %v4883_v60, %v4882_v27 }
 0x2d6   :  { %v4874_v58 = vsel %vm4125_vm2, %v4873_v41, %v4872_v11  ;;  %v12390_v33 = vrot.slane %v10788_v0, 6  ;;  %v4897_v15 = vrot.slane %v10793_v42, 5  ;;  %v4899_v9 = vrot.slane %v10797_v50, 4  ;;  %8155 = vmatmul.mubr.msk.bf16.vlgmr.msra.gmra.mrb[24].mxu0 %vm4262_vm5, %v4922_v37  ;;  %8173 = vmatmul.mubr.msk.bf16.vlgmr.msra.gmra.mrb[32].mxu1 %vm4262_vm5, %v4922_v37 }
 0x2d7   :  { %v4876_v46 = vsel %vm4128_vm3, %v4875_v49, %v4874_v58  ;;  %v4886_v49 = vsel %vm4122_vm1, %v4885_v26, %v4884_v7  ;;  %v4901_v19 = vrot.slane %v10799_v18, 3  ;;  %v4903_v58 = vrot.slane %v10897_v20, 2  ;;  %8181 = vmatpush3.bf16.msra.mxu0 %v8641_v40  ;;  %8199 = vmatpush3.bf16.msra.mxu1 %v8642_v23 }
 0x2d8   :  { %v4896_v41 = vsel %vm4116_vm15, %v12390_v33, %v12389_v12  ;;  %v4878_v11 = vsel %vm4131_vm4, %v4877_v17, %v4876_v46  ;;  %v4888_v27 = vsel %vm4125_vm2, %v4887_v5, %v4886_v49  ;;  %v4905_v12 = vrot.slane %v10900_v6, 1  ;;  %8182 = vmatprep.subr.bf16.mxu0 %v8643_v44  ;;  %8200 = vmatprep.subr.bf16.mxu1 %v8644_v13 }
 0x2d9   :  { %v4898_v60 = vsel %vm4119_vm0, %v4897_v15, %v4896_v41  ;;  %v4890_v17 = vsel %vm4128_vm3, %v4889_v39, %v4888_v27  ;;  %v4911_v46 = vrot.slane %v10894_v1, 5  ;;  %v4913_v7 = vrot.slane %v10889_v21, 4  ;;  %v12391_v39 = vld [vmem:[#allocation30_spill] sm:$0xff] }
 0x2da   :  { %v4900_v26 = vsel %vm4122_vm1, %v4899_v9, %v4898_v60  ;;  %v4892_v37 = vsel %vm4131_vm4, %v4891_v51, %v4890_v17  ;;  %v4915_v33 = vrot.slane %v10907_v34, 3  ;;  %v4917_v41 = vrot.slane %v10945_v63, 2  ;;  %v8645_v51 = vld [vmem:[%s11938_s4 + $0x7c] sm:$0xff]  }
 0x2db   :  { %v4902_v5 = vsel %vm4125_vm2, %v4901_v19, %v4900_v26  ;;  %v4923_v15 = vpack.c.b16 %v4892_v37, %v4878_v11  ;;  %v4912_v23 = vsel %vm4119_vm0, %v4911_v46, %v10998_v28  ;;  %v4919_v49 = vrot.slane %v12391_v39, 1  ;;  %v8646_v9 = vld [vmem:[%s11939_s5 + $0x7c] sm:$0xff]   ;;  %v12392_v11 = vld [vmem:[#allocation15_spill] sm:$0xff]  ;;  %8183 = vmatpush3.bf16.msra.mxu0 %v8643_v44  ;;  %8201 = vmatpush3.bf16.msra.mxu1 %v8644_v13 }
 0x2dc   :  { %v4904_v40 = vsel %vm4128_vm3, %v4903_v58, %v4902_v5  ;;  %v4914_v27 = vsel %vm4122_vm1, %v4913_v7, %v4912_v23  ;;  %v12393_v60 = vrot.slane %v10312_v32, 7  ;;  %v5181_v28 = vrot.slane %v10318_v38, 6  ;;  %8184 = vmatprep.subr.bf16.mxu0 %v8645_v51  ;;  %8202 = vmatprep.subr.bf16.mxu1 %v8646_v9  ;;  %v12396_v13 = vld [vmem:[#allocation21_spill] sm:$0xff] }
 0x2dd   :  { %v4906_v19 = vsel %vm4131_vm4, %v4905_v12, %v4904_v40  ;;  %8158 = vmatprep.mubr.msk.bf16.mxu0 %vm4262_vm5, %v4923_v15  ;;  %8176 = vmatprep.mubr.msk.bf16.mxu1 %vm4262_vm5, %v4923_v15  ;;  %v4916_v17 = vsel %vm4125_vm2, %v4915_v33, %v4914_v27  ;;  %v5183_v26 = vrot.slane %v12342_v24, 5  ;;  %v5185_v46 = vrot.slane %v12343_v31, 4  ;;  %v12394_v40 = vld [vmem:[#allocation8_spill] sm:$0xff]  ;;  %v8649_v33 = vld [vmem:[%s11938_s4 + $0x8c] ss:$0 sps:$4 sm:$0xff]  }
 0x2de   :  { %v5180_v58 = vsel %vm4113_vm14, %v12393_v60, %v12392_v11  ;;  %v5187_v12 = vrot.slane %v12366_v3, 3  ;;  %v4918_v7 = vsel %vm4128_vm3, %v4917_v41, %v4916_v17  ;;  %v5189_v5 = vrot.slane %v12367_v10, 2  ;;  %v12397_v27 = vld [vmem:[#allocation32_spill] sm:$0xff] }
 0x2df   :  { %v5182_v37 = vsel %vm4116_vm15, %v5181_v28, %v5180_v58  ;;  %v12395_v23 = vunpack.c.l.b16 %v12394_v40  ;;  %v4920_v15 = vsel %vm4131_vm4, %v4919_v49, %v4918_v7  ;;  %v12398_v41 = vrot.slane %v12397_v27, 7  ;;  %v8650_v28 = vld [vmem:[%s11939_s5 + $0x8c] ss:$0 sps:$4 sm:$0xff]   ;;  %8185 = vmatpush3.bf16.msra.mxu0 %v8645_v51  ;;  %8203 = vmatpush3.bf16.msra.mxu1 %v8646_v9 }
 0x2e0   :  { %v5184_v44 = vsel %vm4119_vm0, %v5183_v26, %v5182_v37  ;;  %v5195_v58 = vrot.slane %v12346_v47, 6  ;;  %v4924_v17 = vpack.c.b16 %v4920_v15, %v4906_v19  ;;  %v5197_v49 = vrot.slane %v12347_v14, 5  ;;  %v8647_v26 = vld [vmem:[%s11938_s4 + $0x84] sm:$0xff]  }
 0x2e1   :  { %v5191_v11 = vrot.slane %v12395_v23, 1  ;;  %v5194_v60 = vsel %vm4113_vm14, %v12398_v41, %v12396_v13  ;;  %v5186_v40 = vsel %vm4122_vm1, %v5185_v46, %v5184_v44  ;;  %v5199_v7 = vrot.slane %v12349_v2, 4  ;;  %v8648_v37 = vld [vmem:[%s11939_s5 + $0x84] sm:$0xff]   ;;  %8186 = vmatprep.subr.bf16.mxu0 %v8647_v26 }
 0x2e2   :  { %v5188_v23 = vsel %vm4125_vm2, %v5187_v12, %v5186_v40  ;;  %v5196_v13 = vsel %vm4116_vm15, %v5195_v58, %v5194_v60  ;;  %v5201_v19 = vrot.slane %v12370_v54, 3  ;;  %v5203_v46 = vrot.slane %v12371_v56, 2  ;;  %8159 = vmatmul.mubr.msk.bf16.gmra.mrb[28].mxu0 %vm4262_vm5, %v4924_v17  ;;  %8177 = vmatmul.mubr.msk.bf16.gmra.mrb[36].mxu1 %vm4262_vm5, %v4924_v17  ;;  %v12399_v41 = vld [vmem:[#allocation43_spill] sm:$0xff]  ;;  %v12401_v40 = vld [vmem:[#allocation42_spill] sm:$0xff] }
 0x2e3   :  { %v5190_v15 = vsel %vm4128_vm3, %v5189_v5, %v5188_v23  ;;  %v5198_v44 = vsel %vm4119_vm0, %v5197_v49, %v5196_v13  ;;  %v12400_v10 = vunpack.c.l.b16 %v12399_v41  ;;  %v5335_v3 = vsel %vm4275_vm6, %v8649_v33, 0  ;;  %8204 = vmatprep.subr.bf16.mxu1 %v8648_v37  ;;  %v12404_v23 = vld [vmem:[#allocation12_spill] sm:$0xff]  ;;  %8187 = vmatpush3.bf16.msra.mxu0 %v8647_v26 }
 0x2e4   :  { %v5192_v12 = vsel %vm4131_vm4, %v5191_v11, %v5190_v15  ;;  %v5200_v60 = vsel %vm4122_vm1, %v5199_v7, %v5198_v44  ;;  %v5440_v58 = vsel %vm4275_vm6, %v8650_v28, 0  ;;  %v12402_v17 = vrot.slane %v12327_v30, 5  ;;  %8205 = vmatpush3.bf16.msra.mxu1 %v8648_v37  ;;  %8569 = vmatprep.subr.msk.bf16.mxu0 %vm4275_vm6, %v8649_v33  ;;  %v8652_v26 = vld [vmem:[%s11939_s5 + $0x90] sm:$0xff]  }
 0x2e5   :  { %v5205_v2 = vrot.slane %v12400_v10, 1  ;;  %v5202_v49 = vsel %vm4125_vm2, %v5201_v19, %v5200_v60  ;;  %v12403_v10 = vrot.slane %v12329_v29, 4  ;;  %v12405_v11 = vrot.slane %v12331_v16, 4  ;;  %v12408_v29 = vld [vmem:[#allocation20_spill] sm:$0xff]  ;;  %8570 = vmatprep.subr.msk.bf16.mxu1 %vm4275_vm6, %v8650_v28 }
 0x2e6   :  { %v5212_v5 = vsel %vm4119_vm0, %v12402_v17, %v12401_v40  ;;  %v5237_v7 = vrot.slane %v10723_v61, 6  ;;  %v5204_v13 = vsel %vm4128_vm3, %v5203_v46, %v5202_v49  ;;  %v12406_v30 = vrot.slane %v12333_v62, 3  ;;  %v12412_v49 = vld [vmem:[#allocation56_spill] sm:$0xff] }
 0x2e7   :  { %v5214_v51 = vsel %vm4122_vm1, %v12403_v10, %v5212_v5  ;;  %v5228_v9 = vsel %vm4122_vm1, %v12405_v11, %v12404_v23  ;;  %v12407_v19 = vrot.slane %v12335_v53, 3  ;;  %v12409_v41 = vrot.slane %v10721_v8, 7  ;;  %v12414_v28 = vld [vmem:[#allocation60_spill] sm:$0xff]  ;;  %8189 = vmatpush3.bf16.msra.mxu0 %v5335_v3  ;;  %v8653_v3 = vld [vmem:[%s11938_s4 + $0x98] sm:$0xff]  }
 0x2e8   :  { %v5216_v15 = vsel %vm4125_vm2, %v12406_v30, %v5214_v51  ;;  %v5206_v16 = vsel %vm4131_vm4, %v5205_v2, %v5204_v13  ;;  %v12410_v40 = vrot.slane %v12382_v45, 2  ;;  %v12411_v46 = vrot.slane %v12380_v43, 2  ;;  %v12413_v51 = vld [vmem:[#allocation61_spill] sm:$0xff]  ;;  %v8651_v45 = vld [vmem:[%s11938_s4 + $0x90] sm:$0xff]   ;;  %8207 = vmatpush3.bf16.msra.mxu1 %v5440_v58 }
 0x2e9   :  { %v5230_v44 = vsel %vm4125_vm2, %v12407_v19, %v5228_v9  ;;  %v5236_v60 = vsel %vm4113_vm14, %v12409_v41, %v12408_v29  ;;  %v5291_v53 = vpack.c.b16 %v5206_v16, %v5192_v12  ;;  %v5239_v2 = vrot.slane %v10736_v52, 5  ;;  %v12416_v13 = vld [vmem:[#allocation4_spill] sm:$0xff]  ;;  %8216 = vmatprep.subr.bf16.mxu0 %v8651_v45  ;;  %8234 = vmatprep.subr.bf16.mxu1 %v8652_v26  ;;  %v8654_v58 = vld [vmem:[%s11939_s5 + $0x98] sm:$0xff]  }
 0x2ea   :  { %v5218_v17 = vsel %vm4128_vm3, %v12410_v40, %v5216_v15  ;;  %v5232_v62 = vsel %vm4128_vm3, %v12411_v46, %v5230_v44  ;;  %v5238_v5 = vsel %vm4116_vm15, %v5237_v7, %v5236_v60  ;;  %v5241_v37 = vrot.slane %v10739_v57, 4  ;;  %v12418_v46 = vld [vmem:[#allocation69_spill] sm:$0xff] }
 0x2eb   :  { %v5220_v10 = vsel %vm4131_vm4, %v12412_v49, %v5218_v17  ;;  %v5234_v23 = vsel %vm4131_vm4, %v12413_v51, %v5232_v62  ;;  %v5243_v12 = vrot.slane %v12338_v4, 3  ;;  %v5245_v11 = vrot.slane %v12386_v22, 2  ;;  %8190 = vmatprep.mubr.msk.bf16.mxu0 %vm4262_vm5, %v5291_v53  ;;  %8208 = vmatprep.mubr.msk.bf16.mxu1 %vm4262_vm5, %v5291_v53 }
 0x2ec   :  { %v5292_v43 = vpack.c.b16 %v5234_v23, %v5220_v10  ;;  %v5240_v33 = vsel %vm4119_vm0, %v5239_v2, %v5238_v5  ;;  %v12415_v9 = vunpack.c.l.b16 %v12414_v28  ;;  %v12417_v30 = vrot.slane %v10760_v55, 7  ;;  %v12420_v10 = vld [vmem:[#allocation5_spill] sm:$0xff] }
 0x2ed   :  { %v5251_v19 = vrot.slane %v10774_v35, 6  ;;  %v5242_v44 = vsel %vm4122_vm1, %v5241_v37, %v5240_v33  ;;  %v5253_v29 = vrot.slane %v10776_v36, 5  ;;  %v5255_v41 = vrot.slane %v10782_v48, 4 }
 0x2ee   :  { %v5247_v7 = vrot.slane %v12415_v9, 1  ;;  %v5250_v15 = vsel %vm4113_vm14, %v12417_v30, %v12416_v13  ;;  %v5257_v60 = vrot.slane %v10846_v25, 3  ;;  %v5244_v16 = vsel %vm4125_vm2, %v5243_v12, %v5242_v44  ;;  %8191 = vmatmul.mubr.msk.bf16.vlgmr.msra.gmra.mrb[24].mxu0 %vm4262_vm5, %v5292_v43  ;;  %8209 = vmatmul.mubr.msk.bf16.vlgmr.msra.gmra.mrb[32].mxu1 %vm4262_vm5, %v5292_v43 }
 0x2ef   :  { %v5252_v40 = vsel %vm4116_vm15, %v5251_v19, %v5250_v15  ;;  %v5259_v17 = vrot.slane %v10848_v59, 2  ;;  %v12419_v62 = vunpack.c.l.b16 %v12418_v46  ;;  %v5246_v53 = vsel %vm4128_vm3, %v5245_v11, %v5244_v16  ;;  %8217 = vmatpush3.bf16.msra.mxu0 %v8651_v45  ;;  %8235 = vmatpush3.bf16.msra.mxu1 %v8652_v26  ;;  %v12422_v19 = vld [vmem:[#allocation50_spill] sm:$0xff] }
 0x2f0   :  { %v5254_v49 = vsel %vm4119_vm0, %v5253_v29, %v5252_v40  ;;  %v12421_v51 = vrot.slane %v10788_v0, 7  ;;  %v5265_v2 = vrot.slane %v10793_v42, 6  ;;  %v5248_v37 = vsel %vm4131_vm4, %v5247_v7, %v5246_v53  ;;  %v12425_v16 = vld [vmem:[#allocation26_spill] sm:$0xff]  ;;  %8218 = vmatprep.subr.bf16.mxu0 %v8653_v3  ;;  %8236 = vmatprep.subr.bf16.mxu1 %v8654_v58 }
 0x2f1   :  { %v5261_v5 = vrot.slane %v12419_v62, 1  ;;  %v5256_v12 = vsel %vm4122_vm1, %v5255_v41, %v5254_v49  ;;  %v5267_v11 = vrot.slane %v10797_v50, 5  ;;  %v5269_v33 = vrot.slane %v10799_v18, 4  ;;  %v12424_v41 = vld [vmem:[#allocation36_spill] sm:$0xff] }
 0x2f2   :  { %v5264_v23 = vsel %vm4113_vm14, %v12421_v51, %v12420_v10  ;;  %v5258_v28 = vsel %vm4125_vm2, %v5257_v60, %v5256_v12  ;;  %v5271_v13 = vrot.slane %v10897_v20, 3  ;;  %v5273_v30 = vrot.slane %v10900_v6, 2  ;;  %v8655_v10 = vld [vmem:[%s11938_s4 + $0xa0] sm:$0xff]  }
 0x2f3   :  { %v5266_v9 = vsel %vm4116_vm15, %v5265_v2, %v5264_v23  ;;  %v5260_v7 = vsel %vm4128_vm3, %v5259_v17, %v5258_v28  ;;  %v12423_v44 = vunpack.c.l.b16 %v12422_v19  ;;  %v12426_v43 = vrot.slane %v12425_v16, 7  ;;  %8219 = vmatpush3.bf16.msra.mxu0 %v8653_v3  ;;  %8237 = vmatpush3.bf16.msra.mxu1 %v8654_v58 }
 0x2f4   :  { %v5268_v15 = vsel %vm4119_vm0, %v5267_v11, %v5266_v9  ;;  %v5262_v40 = vsel %vm4131_vm4, %v5261_v5, %v5260_v7  ;;  %v5279_v17 = vrot.slane %v10894_v1, 6  ;;  %v5281_v45 = vrot.slane %v10889_v21, 5  ;;  %v8656_v5 = vld [vmem:[%s11939_s5 + $0xa0] sm:$0xff]   ;;  %v12429_v9 = vld [vmem:[#allocation7_spill] sm:$0xff]  ;;  %8220 = vmatprep.subr.bf16.mxu0 %v8655_v10 }
 0x2f5   :  { %v5275_v29 = vrot.slane %v12423_v44, 1  ;;  %v5278_v60 = vsel %vm4113_vm14, %v12426_v43, %v12424_v41  ;;  %v5270_v46 = vsel %vm4122_vm1, %v5269_v33, %v5268_v15  ;;  %v5293_v26 = vpack.c.b16 %v5262_v40, %v5248_v37  ;;  %v12427_v37 = vld [vmem:[#allocation71_spill] sm:$0xff]  ;;  %v12431_v44 = vld [vmem:[#allocation44_spill] sm:$0xff]  ;;  %8238 = vmatprep.subr.bf16.mxu1 %v8656_v5 }
 0x2f6   :  { %v5272_v62 = vsel %vm4125_vm2, %v5271_v13, %v5270_v46  ;;  %v5283_v53 = vrot.slane %v10907_v34, 4  ;;  %v5285_v49 = vrot.slane %v10945_v63, 3  ;;  %v5280_v23 = vsel %vm4116_vm15, %v5279_v17, %v5278_v60  ;;  %v8657_v46 = vld [vmem:[%s11938_s4 + $0xa8] sm:$0xff]  }
 0x2f7   :  { %v5274_v51 = vsel %vm4128_vm3, %v5273_v30, %v5272_v62  ;;  %v5287_v2 = vrot.slane %v12391_v39, 2  ;;  %v12428_v12 = vunpack.c.l.b16 %v12427_v37  ;;  %8194 = vmatprep.mubr.msk.bf16.mxu0 %vm4262_vm5, %v5293_v26  ;;  %8212 = vmatprep.mubr.msk.bf16.mxu1 %vm4262_vm5, %v5293_v26  ;;  %v5282_v28 = vsel %vm4119_vm0, %v5281_v45, %v5280_v23  ;;  %v8660_v45 = vld [vmem:[%s11939_s5 + $0xb0] ss:$0 sps:$4 sm:$0xff]  }
 0x2f8   :  { %v5276_v33 = vsel %vm4131_vm4, %v5275_v29, %v5274_v51  ;;  %v12430_v13 = vmax.f32 %v12429_v9, 0.0  ;;  %v5551_v30 = vrot.slane %v12342_v24, 6  ;;  %v5284_v15 = vsel %vm4122_vm1, %v5283_v53, %v5282_v28  ;;  %v12437_v28 = vld [vmem:[#allocation38_spill] sm:$0xff]  ;;  %8221 = vmatpush3.bf16.msra.mxu0 %v8655_v10  ;;  %8239 = vmatpush3.bf16.msra.mxu1 %v8656_v5 }
 0x2f9   :  { %v5289_v11 = vrot.slane %v12428_v12, 1  ;;  %v12432_v41 = vmax.f32 %v12431_v44, 0.0  ;;  %v12433_v60 = vrot.slane %v10318_v38, 7  ;;  %v5553_v40 = vrot.slane %v12343_v31, 5  ;;  %v8659_v31 = vld [vmem:[%s11938_s4 + $0xb0] ss:$0 sps:$4 sm:$0xff]   ;;  %8222 = vmatprep.subr.bf16.mxu0 %v8657_v46 }
 0x2fa   :  { %v3871_v7 = vpack.c.bf16 %v12430_v13, %v12430_v13  ;;  %v5286_v24 = vsel %vm4125_vm2, %v5285_v49, %v5284_v15  ;;  %v12434_v17 = vrot.slane %v12346_v47, 7  ;;  %v5565_v47 = vrot.slane %v12347_v14, 6  ;;  %v12435_v49 = vld [vmem:[#allocation9_spill] sm:$0xff]  ;;  %v12440_v14 = vld [vmem:[#allocation16_spill] sm:$0xff] }
 0x2fb   :  { %v3883_v43 = vpack.c.bf16 %v12432_v41, %v12432_v41  ;;  %v5550_v29 = vsel %vm4113_vm14, %v12433_v60, %v10312_v32  ;;  %v8658_v32 = vld [vmem:[%s11939_s5 + $0xa8] sm:$0xff]   ;;  %v5288_v26 = vsel %vm4128_vm3, %v5287_v2, %v5286_v24  ;;  %v12436_v51 = vrot.slane %v12435_v49, 4 }
 0x2fc   :  { %v5541_v3 = vunpack.c.l.b16 %v3871_v7  ;;  %v5552_v58 = vsel %vm4116_vm15, %v5551_v30, %v5550_v29  ;;  %v5564_v38 = vsel %vm4113_vm14, %v12434_v17, %v12397_v27  ;;  %v5290_v27 = vsel %vm4131_vm4, %v5289_v11, %v5288_v26  ;;  %v12438_v7 = vld [vmem:[#allocation14_spill] sm:$0xff]  ;;  %8240 = vmatprep.subr.bf16.mxu1 %v8658_v32  ;;  %v12442_v29 = vld [vmem:[#allocation53_spill] sm:$0xff]  ;;  %v12446_v26 = vld [vmem:[#allocation19_spill] sm:$0xff]  ;;  %8223 = vmatpush3.bf16.msra.mxu0 %v8657_v46 }
 0x2fd   :  { %v5542_v62 = vunpack.c.l.b16 %v3883_v43  ;;  %v5554_v53 = vsel %vm4119_vm0, %v5553_v40, %v5552_v58  ;;  %v5567_v9 = vrot.slane %v12437_v28, 5  ;;  %v5294_v13 = vpack.c.b16 %v5290_v27, %v5276_v33  ;;  %v12443_v40 = vld [vmem:[#allocation57_spill] sm:$0xff]  ;;  %v12449_v27 = vld [vmem:[#allocation70_spill] sm:$0xff]  ;;  %8241 = vmatpush3.bf16.msra.mxu1 %v8658_v32  ;;  %8571 = vmatprep.subr.msk.bf16.mxu0 %vm4275_vm6, %v8659_v31 }
 0x2fe   :  { %v5556_v23 = vsel %vm4122_vm1, %v12436_v51, %v5554_v53  ;;  %v5561_v12 = vrot.slane %v5541_v3, 1  ;;  %v12439_v30 = vrot.slane %v12438_v7, 3  ;;  %v5566_v15 = vsel %vm4116_vm15, %v5565_v47, %v5564_v38  ;;  %v12445_v38 = vld [vmem:[#allocation2_spill] sm:$0xff]  ;;  %v12447_v53 = vld [vmem:[#allocation11_spill] sm:$0xff]  ;;  %8572 = vmatprep.subr.msk.bf16.mxu1 %vm4275_vm6, %v8660_v45 }
 0x2ff   :  { %v5575_v44 = vrot.slane %v5542_v62, 1  ;;  %v5568_v41 = vsel %vm4119_vm0, %v5567_v9, %v5566_v15  ;;  %v5705_v43 = vsel %vm4275_vm6, %v8659_v31, 0  ;;  %v5810_v33 = vsel %vm4275_vm6, %v8660_v45, 0  ;;  %8195 = vmatmul.mubr.msk.bf16.gmra.mrb[28].mxu0 %vm4262_vm5, %v5294_v13  ;;  %8213 = vmatmul.mubr.msk.bf16.gmra.mrb[36].mxu1 %vm4262_vm5, %v5294_v13 }
 0x300   :  { %v5558_v2 = vsel %vm4125_vm2, %v12439_v30, %v5556_v23  ;;  %v12441_v60 = vrot.slane %v12370_v54, 4  ;;  %v5590_v24 = vsel %vm4131_vm4, %v12443_v40, %v12442_v29  ;;  %v5607_v3 = vrot.slane %v10736_v52, 6  ;;  %v12451_v23 = vld [vmem:[#allocation48_spill] sm:$0xff]  ;;  %8225 = vmatpush3.bf16.msra.mxu0 %v5705_v43 }
 0x301   :  { %v5560_v11 = vsel %vm4128_vm3, %v12440_v14, %v5558_v2  ;;  %v12444_v58 = vrot.slane %v12371_v56, 3  ;;  %v5604_v62 = vsel %vm4131_vm4, %v12446_v26, %v12445_v38  ;;  %v12448_v47 = vmax.f32 %v12447_v53, 0.0  ;;  %8243 = vmatpush3.bf16.msra.mxu1 %v5810_v33  ;;  %v12466_v53 = vld [vmem:[#allocation27_spill] sm:$0xff] }
 0x302   :  { %v5562_v10 = vsel %vm4131_vm4, %v5561_v12, %v5560_v11  ;;  %v5570_v5 = vsel %vm4122_vm1, %v12441_v60, %v5568_v41  ;;  %v12450_v49 = vmax.f32 %v12449_v27, 0.0  ;;  %v5662_v52 = vpack.c.b16 %v5604_v62, %v5590_v24 }
 0x303   :  { %v5572_v17 = vsel %vm4125_vm2, %v12444_v58, %v5570_v5  ;;  %v3919_v54 = vpack.c.bf16 %v12448_v47, %v12448_v47  ;;  %v12452_v56 = vrot.slane %v10723_v61, 7  ;;  %v5609_v9 = vrot.slane %v10739_v57, 5  ;;  %v12460_v5 = vld [vmem:[#allocation34_spill] sm:$0xff] }
 0x304   :  { %v3931_v51 = vpack.c.bf16 %v12450_v49, %v12450_v49  ;;  %v5574_v12 = vsel %vm4128_vm3, %v12451_v23, %v5572_v17  ;;  %v12453_v61 = vrot.slane %v10774_v35, 7  ;;  %v5621_v57 = vrot.slane %v10776_v36, 6 }
 0x305   :  { %v5606_v28 = vsel %vm4113_vm14, %v12452_v56, %v10721_v8  ;;  %v5576_v13 = vsel %vm4131_vm4, %v5575_v44, %v5574_v12  ;;  %v5545_v7 = vunpack.c.l.b16 %v3919_v54  ;;  %v5641_v15 = vrot.slane %v10900_v6, 3  ;;  %v12457_v6 = vld [vmem:[#allocation18_spill] sm:$0xff] }
 0x306   :  { %v5546_v30 = vunpack.c.l.b16 %v3931_v51  ;;  %v5608_v2 = vsel %vm4116_vm15, %v5607_v3, %v5606_v28  ;;  %v5661_v46 = vpack.c.b16 %v5576_v13, %v5562_v10  ;;  %v5620_v8 = vsel %vm4113_vm14, %v12453_v61, %v10760_v55  ;;  %v12459_v10 = vld [vmem:[#allocation3_spill] sm:$0xff] }
 0x307   :  { %v5610_v32 = vsel %vm4119_vm0, %v5609_v9, %v5608_v2  ;;  %v12454_v31 = vunpack.c.l.b16 %v12422_v19  ;;  %v12455_v45 = vrot.slane %v12338_v4, 4  ;;  %v5623_v11 = vrot.slane %v10782_v48, 5  ;;  %v8663_v61 = vld [vmem:[%s11941_s7 + $0x48] sm:$0xff]  }
 0x308   :  { %8226 = vmatprep.mubr.msk.bf16.mxu0 %vm4262_vm5, %v5661_v46  ;;  %8244 = vmatprep.mubr.msk.bf16.mxu1 %vm4262_vm5, %v5661_v46  ;;  %v12456_v35 = vrot.slane %v12386_v22, 3  ;;  %v5622_v36 = vsel %vm4116_vm15, %v5621_v57, %v5620_v8  ;;  %v12458_v41 = vmax.f32 %v12457_v6, 0.0  ;;  %v5635_v4 = vrot.slane %v10797_v50, 6  ;;  %v8664_v8 = vld [vmem:[%s11941_s7 + $0x8] sm:$0xff]   ;;  %v8665_v57 = vld [vmem:[%s11941_s7 + $0x50] sm:$0xff]  }
 0x309   :  { %v5643_v44 = vrot.slane %v12454_v31, 2  ;;  %v5612_v14 = vsel %vm4122_vm1, %v12455_v45, %v5610_v32  ;;  %v5624_v60 = vsel %vm4119_vm0, %v5623_v11, %v5622_v36  ;;  %v12461_v29 = vmax.f32 %v12460_v5, 0.0  ;;  %8227 = vmatmul.mubr.msk.bf16.vlgmr.msra.gmra.mrb[24].mxu0 %vm4262_vm5, %v5662_v52  ;;  %8245 = vmatmul.mubr.msk.bf16.vlgmr.msra.gmra.mrb[32].mxu1 %vm4262_vm5, %v5662_v52  ;;  %v8662_v32 = vld [vmem:[%s11941_s7] sm:$0xff]   ;;  %v8667_v31 = vld [vmem:[%s11941_s7 + $0x58] sm:$0xff]   ;;  %v8671_v11 = vld [vmem:[%s11941_s7 + $0x68] sm:$0xff]  }
 0x30a   :  { %v5614_v55 = vsel %vm4125_vm2, %v12456_v35, %v5612_v14  ;;  %v3943_v19 = vpack.c.bf16 %v12458_v41, %v12458_v41  ;;  %v5637_v40 = vrot.slane %v10799_v18, 5  ;;  %v5617_v24 = vrot.slane %v5545_v7, 1  ;;  %v8669_v45 = vld [vmem:[%s11941_s7 + $0x60] sm:$0xff]   ;;  %v8672_v35 = vld [vmem:[%s11941_s7 + $0x28] sm:$0xff]   ;;  %v8674_v6 = vld [vmem:[%s11941_s7 + $0x30] sm:$0xff]  }
 0x30b   :  { %v5616_v48 = vsel %vm4128_vm3, %v12459_v10, %v5614_v55  ;;  %v3955_v22 = vpack.c.bf16 %v12461_v29, %v12461_v29  ;;  %v12462_v3 = vrot.slane %v10846_v25, 4  ;;  %v5631_v17 = vrot.slane %v5546_v30, 1  ;;  %v8670_v14 = vld [vmem:[%s11941_s7 + $0x20] sm:$0xff]   ;;  %v8673_v55 = vld [vmem:[%s11941_s7 + $0x70] sm:$0xff]   ;;  %v12469_v41 = vld [vmem:[#allocation13_spill] sm:$0xff] }
 0x30c   :  { %v12463_v50 = vrot.slane %v10793_v42, 7  ;;  %v12464_v33 = vrot.slane %v10848_v59, 3  ;;  %v5547_v26 = vunpack.c.l.b16 %v3943_v19  ;;  %v12465_v18 = vrot.slane %v10894_v1, 7  ;;  %v7482_v36 = vld [vmem:[%s11942_s6] ss:$0 sm:$0xff] }
 0x30d   :  { %v5626_v58 = vsel %vm4122_vm1, %v12462_v3, %v5624_v60  ;;  %v5618_v42 = vsel %vm4131_vm4, %v5617_v24, %v5616_v48  ;;  %v5649_v47 = vrot.slane %v10889_v21, 6  ;;  %v5548_v27 = vunpack.c.l.b16 %v3955_v22 }
 0x30e   :  { %v5634_v43 = vsel %vm4113_vm14, %v12463_v50, %v10788_v0  ;;  %v5628_v38 = vsel %vm4125_vm2, %v12464_v33, %v5626_v58  ;;  %v5648_v25 = vsel %vm4113_vm14, %v12465_v18, %v12425_v16  ;;  %v12467_v1 = vrot.slane %v10897_v20, 4 }
 0x30f   :  { %v5636_v62 = vsel %vm4116_vm15, %v5635_v4, %v5634_v43  ;;  %v5630_v0 = vsel %vm4128_vm3, %v12466_v53, %v5628_v38  ;;  %v5651_v49 = vrot.slane %v10907_v34, 5  ;;  %v5653_v51 = vrot.slane %v10945_v63, 4 }
 0x310   :  { %v5638_v59 = vsel %vm4119_vm0, %v5637_v40, %v5636_v62  ;;  %v5632_v54 = vsel %vm4131_vm4, %v5631_v17, %v5630_v0  ;;  %v5650_v52 = vsel %vm4116_vm15, %v5649_v47, %v5648_v25  ;;  %v5655_v56 = vrot.slane %v12391_v39, 3 }
 0x311   :  { %v5640_v16 = vsel %vm4122_vm1, %v12467_v1, %v5638_v59  ;;  %v5663_v23 = vpack.c.b16 %v5632_v54, %v5618_v42  ;;  %v5645_v28 = vrot.slane %v5547_v26, 1  ;;  %v5652_v21 = vsel %vm4119_vm0, %v5651_v49, %v5650_v52 }
 0x312   :  { %v5642_v12 = vsel %vm4125_vm2, %v5641_v15, %v5640_v16  ;;  %v12468_v9 = vunpack.c.l.b16 %v12427_v37  ;;  %v5654_v34 = vsel %vm4122_vm1, %v5653_v51, %v5652_v21  ;;  %v5659_v7 = vrot.slane %v5548_v27, 1  ;;  %v8661_v37 = vld [vmem:[%s11941_s7 + $0x40] sm:$0xff]   ;;  %v8666_v15 = vld [vmem:[%s11941_s7 + $0x10] sm:$0xff]  }
 0x313   :  { %8230 = vmatprep.mubr.msk.bf16.mxu0 %vm4262_vm5, %v5663_v23  ;;  %8248 = vmatprep.mubr.msk.bf16.mxu1 %vm4262_vm5, %v5663_v23  ;;  %v5644_v20 = vsel %vm4128_vm3, %v5643_v44, %v5642_v12  ;;  %v5656_v63 = vsel %vm4125_vm2, %v5655_v56, %v5654_v34  ;;  %v8668_v44 = vld [vmem:[%s11941_s7 + $0x18] sm:$0xff]   ;;  %v11693_v19 = vrot.slane %v7482_v36, %v12469_v41  ;;  %v8727_v0 = vmov 1934713408  }
 0x314   :  { %v5657_v13 = vrot.slane %v12468_v9, 2  ;;  %v5646_v39 = vsel %vm4131_vm4, %v5645_v28, %v5644_v20  ;;  %7752 = vmatprep.subr.bf16.mxu0 %v8661_v37  ;;  %v11712_v59 = vunpack.c.l.s4 %v8727_v0 }
 0x315   :  { %7753 = vmatpush3.bf16.msra.mxu0 %v8662_v32  ;;  %v11697_v48 = vcombine.high %v11693_v19, %v11693_v19  ;;  %v11701_v17 = vrot.slane %v11693_v19, 1 }
 0x316   :  { %v5658_v30 = vsel %vm4128_vm3, %v5657_v13, %v5656_v63  ;;  %7754 = vmatprep.subr.bf16.mxu0 %v8663_v61 }
 0x317   :  { %v5660_v2 = vsel %vm4131_vm4, %v5659_v7, %v5658_v30  ;;  %v11706_v38 = vrot.slane %v11697_v48, 1 }
 0x318   :  { %v5664_v46 = vpack.c.b16 %v5660_v2, %v5646_v39 }
 0x319   :  { %7755 = vmatpush3.bf16.msra.mxu0 %v8664_v8 }
 0x31a   :  { %8231 = vmatmul.mubr.msk.bf16.gmra.mrb[28].mxu0 %vm4262_vm5, %v5664_v46  ;;  %8249 = vmatmul.mubr.msk.bf16.gmra.mrb[36].mxu1 %vm4262_vm5, %v5664_v46 }
 0x31b   :  { %7756 = vmatprep.subr.bf16.mxu0 %v8665_v57 }
 0x31d   :  { %7757 = vmatpush3.bf16.msra.mxu0 %v8666_v15 }
 0x31e   :  { %7758 = vmatprep.subr.bf16.mxu0 %v8667_v31 }
 0x321   :  { %7759 = vmatpush3.bf16.msra.mxu0 %v8668_v44 }
 0x322   :  { %7760 = vmatprep.subr.bf16.mxu0 %v8669_v45 }
 0x325   :  { %7761 = vmatpush3.bf16.msra.mxu0 %v8670_v14 }
 0x326   :  { %7762 = vmatprep.subr.bf16.mxu0 %v8671_v11 }
 0x329   :  { %7763 = vmatpush3.bf16.msra.mxu0 %v8672_v35 }
 0x32a   :  { %7764 = vmatprep.subr.bf16.mxu0 %v8673_v55 }
 0x32d   :  { %7765 = vmatpush3.bf16.msra.mxu0 %v8674_v6 }
 0x3dc   :  { %v8228_v4 = vpop.f32.mrb[24].mxu0  ;;  %v8246_v10 = vpop.f32.mrb[32].mxu1 }
 0x3dd   :  { %v5895_v60 = vmax.f32 %v8228_v4, %v8246_v10  ;;  %v5741_v5 = vpop.f32.mrb[25].mxu0  ;;  %v5846_v29 = vpop.f32.mrb[33].mxu1 }
 0x3de   :  { %v5893_v22 = vmax.f32 %v5741_v5, %v5846_v29  ;;  %v8229_v40 = vpop.f32.mrb[26].mxu0  ;;  %v8247_v24 = vpop.f32.mrb[34].mxu1 }
 0x3df   :  { %v5943_v3 = vcombine.high %v5895_v60, %v5895_v60  ;;  %v5950_v58 = vrot.slane %v5895_v60, %v12469_v41  ;;  %v11703_v50 = vmax.f32 %v8229_v40, %v8247_v24  ;;  %v5744_v43 = vpop.f32.mrb[27].mxu0  ;;  %v5849_v33 = vpop.f32.mrb[35].mxu1 }
 0x3e0   :  { %v5909_v26 = vcombine.high %v5893_v22, %v5893_v22  ;;  %v5916_v62 = vrot.slane %v5893_v22, %v12469_v41  ;;  %v11709_v18 = vmax.f32 %v5744_v43, %v5849_v33 }
 0x3e1   :  { %v5957_v25 = vrot.slane %v5943_v3, %v12469_v41  ;;  %v5958_v42 = vcombine.high %v5950_v58, %v5950_v58  ;;  %v7458_v53 = vrot.slane %v5950_v58, 9  ;;  %v5960_v1 = vcombine.high %v11703_v50, %v11703_v50 }
 0x3e2   :  { %v5923_v47 = vrot.slane %v5909_v26, %v12469_v41  ;;  %v5924_v54 = vcombine.high %v5916_v62, %v5916_v62  ;;  %v7450_v27 = vrot.slane %v5916_v62, 9  ;;  %v5967_v22 = vrot.slane %v11703_v50, %v12469_v41 }
 0x3e3   :  { %v5959_v16 = vcombine.high %v5957_v25, %v5957_v25  ;;  %v7459_v49 = vrot.slane %v5958_v42, 9  ;;  %v7460_v51 = vrot.slane %v5957_v25, 9  ;;  %v6181_v23 = vmax.f32 %v5950_v58, %v7458_v53 }
 0x3e4   :  { %v5925_v12 = vcombine.high %v5923_v47, %v5923_v47  ;;  %v7451_v52 = vrot.slane %v5924_v54, 9  ;;  %v7452_v56 = vrot.slane %v5923_v47, 9  ;;  %v6173_v28 = vmax.f32 %v5916_v62, %v7450_v27 }
 0x3e5   :  { %v7461_v21 = vrot.slane %v5959_v16, 9  ;;  %v6182_v9 = vmax.f32 %v5958_v42, %v7459_v49  ;;  %v6183_v13 = vmax.f32 %v5957_v25, %v7460_v51  ;;  %v6233_v20 = vadd.f32 %v11693_v19, %v6181_v23 }
 0x3e6   :  { %v7453_v34 = vrot.slane %v5925_v12, 9  ;;  %v6174_v63 = vmax.f32 %v5924_v54, %v7451_v52  ;;  %v6175_v7 = vmax.f32 %v5923_v47, %v7452_v56  ;;  %v6225_v30 = vadd.f32 %v11693_v19, %v6173_v28 }
 0x3e7   :  { %v6184_v46 = vmax.f32 %v5959_v16, %v7461_v21  ;;  %v6234_v37 = vadd.f32 %v11701_v17, %v6182_v9  ;;  %v6235_v32 = vadd.f32 %v11697_v48, %v6183_v13  ;;  %v6265_v61 = vmax.f32 %v6233_v20, 0.0 }
 0x3e8   :  { %v6176_v15 = vmax.f32 %v5925_v12, %v7453_v34  ;;  %v6226_v31 = vadd.f32 %v11701_v17, %v6174_v63  ;;  %v6227_v44 = vadd.f32 %v11697_v48, %v6175_v7  ;;  %v6257_v45 = vmax.f32 %v6225_v30, 0.0 }
 0x3e9   :  { %v6236_v35 = vadd.f32 %v11706_v38, %v6184_v46  ;;  %v6266_v55 = vmax.f32 %v6234_v37, 0.0  ;;  %v6267_v36 = vmax.f32 %v6235_v32, 0.0  ;;  %v6297_v6 = vpack.c.bf16 %v6265_v61, %v6265_v61 }
 0x3ea   :  { %v6228_v60 = vadd.f32 %v11706_v38, %v6176_v15  ;;  %v6258_v5 = vmax.f32 %v6226_v31, 0.0  ;;  %v6259_v29 = vmax.f32 %v6227_v44, 0.0  ;;  %v6289_v58 = vpack.c.bf16 %v6257_v45, %v6257_v45 }
 0x3eb   :  { %v6268_v40 = vmax.f32 %v6236_v35, 0.0  ;;  %v6298_v24 = vpack.c.bf16 %v6266_v55, %v6266_v55  ;;  %v6299_v3 = vpack.c.bf16 %v6267_v36, %v6267_v36  ;;  %v6361_v43 = vunpack.c.l.b16 %v6297_v6 }
 0x3ec   :  { %v6260_v33 = vmax.f32 %v6228_v60, 0.0  ;;  %v6290_v26 = vpack.c.bf16 %v6258_v5, %v6258_v5  ;;  %v6291_v62 = vpack.c.bf16 %v6259_v29, %v6259_v29  ;;  %v5974_v0 = vrot.slane %v5960_v1, %v12469_v41 }
 0x3ed   :  { %v8232_v39 = vpop.f32.mrb[28].mxu0  ;;  %v8250_v2 = vpop.f32.mrb[36].mxu1  ;;  %v6300_v25 = vpack.c.bf16 %v6268_v40, %v6268_v40  ;;  %v6362_v42 = vunpack.c.l.b16 %v6298_v24  ;;  %v6363_v53 = vunpack.c.l.b16 %v6299_v3  ;;  %v5975_v16 = vcombine.high %v5967_v22, %v5967_v22 }
 0x3ee   :  { %v5757_v8 = vpop.f32.mrb[29].mxu0  ;;  %v5862_v57 = vpop.f32.mrb[37].mxu1  ;;  %v6292_v47 = vpack.c.bf16 %v6260_v33, %v6260_v33  ;;  %v6354_v54 = vunpack.c.l.b16 %v6290_v26  ;;  %v6355_v27 = vunpack.c.l.b16 %v6291_v62  ;;  %v5976_v23 = vcombine.high %v5974_v0, %v5974_v0 }
 0x3ef   :  { %v11723_v14 = vpop.f32.mrb[30].mxu0  ;;  %v11725_v11 = vpop.f32.mrb[38].mxu1  ;;  %v6364_v49 = vunpack.c.l.b16 %v6300_v25  ;;  %v6397_v51 = vrot.slane %v6362_v42, 7  ;;  %v6399_v50 = vrot.slane %v6363_v53, 6  ;;  %v6353_v12 = vunpack.c.l.b16 %v6289_v58 }
 0x3f0   :  { %v11728_v4 = vpop.f32.mrb[31].mxu0  ;;  %v11730_v10 = vpop.f32.mrb[39].mxu1  ;;  %v7462_v52 = vrot.slane %v5967_v22, 9  ;;  %v6468_v56 = vunpack.c.0.s8 %v11712_v59  ;;  %v6356_v21 = vunpack.c.l.b16 %v6292_v47  ;;  %v7463_v9 = vrot.slane %v5975_v16, 9  ;;  %v8676_v59 = vld [vmem:[%s11941_s7 + $0x38] sm:$0xff]  }
 0x3f1   :  { %v6398_v28 = vsel %vm4113_vm14, %v6397_v51, %v6361_v43  ;;  %v7464_v13 = vrot.slane %v5974_v0, 9  ;;  %v11738_v20 = vrot.slane %v6364_v49, 5  ;;  %v6385_v1 = vrot.slane %v6354_v54, 7 }
 0x3f2   :  { %v6387_v34 = vrot.slane %v6355_v27, 6  ;;  %v7465_v63 = vrot.slane %v5976_v23, 9  ;;  %v11741_v7 = vsel %vm4116_vm15, %v6399_v50, %v6398_v28  ;;  %v6185_v30 = vmax.f32 %v5967_v22, %v7462_v52 }
 0x3f3   :  { %v6186_v46 = vmax.f32 %v5975_v16, %v7463_v9  ;;  %v6187_v37 = vmax.f32 %v5974_v0, %v7464_v13  ;;  %v5926_v61 = vcombine.high %v11709_v18, %v11709_v18  ;;  %v5933_v15 = vrot.slane %v11709_v18, %v12469_v41 }
 0x3f4   :  { %v6188_v32 = vmax.f32 %v5976_v23, %v7465_v63  ;;  %v5899_v31 = vmax.f32 %v8232_v39, %v8250_v2  ;;  %v6237_v44 = vadd.f32 %v11693_v19, %v6185_v30  ;;  %v11750_v55 = vmax.f32 %v5757_v8, %v5862_v57 }
 0x3f5   :  { %v6238_v45 = vadd.f32 %v11701_v17, %v6186_v46  ;;  %v6239_v35 = vadd.f32 %v11697_v48, %v6187_v37  ;;  %v5940_v6 = vrot.slane %v5926_v61, %v12469_v41  ;;  %v5941_v60 = vcombine.high %v5933_v15, %v5933_v15 }
 0x3f6   :  { %v6240_v36 = vadd.f32 %v11706_v38, %v6188_v32  ;;  %v7454_v5 = vrot.slane %v5933_v15, 9  ;;  %v6386_v29 = vsel %vm4113_vm14, %v6385_v1, %v6353_v12  ;;  %v6269_v22 = vmax.f32 %v6237_v44, 0.0 }
 0x3f7   :  { %v6270_v40 = vmax.f32 %v6238_v45, 0.0  ;;  %v6271_v18 = vmax.f32 %v6239_v35, 0.0  ;;  %v5942_v2 = vcombine.high %v5940_v6, %v5940_v6  ;;  %v7455_v24 = vrot.slane %v5941_v60, 9 }
 0x3f8   :  { %v6272_v39 = vmax.f32 %v6240_v36, 0.0  ;;  %v7456_v3 = vrot.slane %v5940_v6, 9  ;;  %v6177_v33 = vmax.f32 %v5933_v15, %v7454_v5  ;;  %v6011_v8 = vcombine.high %v5899_v31, %v5899_v31 }
 0x3f9   :  { %v6302_v58 = vpack.c.bf16 %v6270_v40, %v6270_v40  ;;  %v6303_v43 = vpack.c.bf16 %v6271_v18, %v6271_v18  ;;  %v6301_v57 = vpack.c.bf16 %v6269_v22, %v6269_v22  ;;  %v7457_v26 = vrot.slane %v5942_v2, 9 }
 0x3fa   :  { %v6178_v62 = vmax.f32 %v5941_v60, %v7455_v24  ;;  %v6179_v25 = vmax.f32 %v5940_v6, %v7456_v3  ;;  %v6304_v42 = vpack.c.bf16 %v6272_v39, %v6272_v39  ;;  %v6229_v47 = vadd.f32 %v11693_v19, %v6177_v33 }
 0x3fb   :  { %v6366_v53 = vunpack.c.l.b16 %v6302_v58  ;;  %v6367_v0 = vunpack.c.l.b16 %v6303_v43  ;;  %v11756_v54 = vrot.slane %v6356_v21, 5  ;;  %v6180_v27 = vmax.f32 %v5942_v2, %v7457_v26 }
 0x3fc   :  { %v6230_v16 = vadd.f32 %v11701_v17, %v6178_v62  ;;  %v6231_v49 = vadd.f32 %v11697_v48, %v6179_v25  ;;  %v11761_v51 = vsel %vm4116_vm15, %v6387_v34, %v6386_v29  ;;  %v6261_v23 = vmax.f32 %v6229_v47, 0.0 }
 0x3fd   :  { %v6403_v50 = vrot.slane %v6366_v53, 7  ;;  %v6018_v12 = vrot.slane %v5899_v31, %v12469_v41  ;;  %v6365_v52 = vunpack.c.l.b16 %v6301_v57  ;;  %v6232_v28 = vadd.f32 %v11706_v38, %v6180_v27 }
 0x3fe   :  { %v6262_v9 = vmax.f32 %v6230_v16, 0.0  ;;  %v6263_v13 = vmax.f32 %v6231_v49, 0.0  ;;  %v6368_v1 = vunpack.c.l.b16 %v6304_v42  ;;  %v6405_v21 = vrot.slane %v6367_v0, 6 }
 0x3ff   :  { %v6025_v63 = vrot.slane %v6011_v8, %v12469_v41  ;;  %v6026_v30 = vcombine.high %v6018_v12, %v6018_v12  ;;  %v6264_v46 = vmax.f32 %v6232_v28, 0.0  ;;  %v6293_v37 = vpack.c.bf16 %v6261_v23, %v6261_v23 }
 0x400   :  { %v6294_v32 = vpack.c.bf16 %v6262_v9, %v6262_v9  ;;  %v6295_v61 = vpack.c.bf16 %v6263_v13, %v6263_v13  ;;  %v6404_v34 = vsel %vm4113_vm14, %v6403_v50, %v6365_v52  ;;  %v7474_v44 = vrot.slane %v6018_v12, 9 }
 0x401   :  { %v6027_v15 = vcombine.high %v6025_v63, %v6025_v63  ;;  %v7475_v45 = vrot.slane %v6026_v30, 9  ;;  %v6296_v31 = vpack.c.bf16 %v6264_v46, %v6264_v46  ;;  %v7476_v6 = vrot.slane %v6025_v63, 9 }
 0x402   :  { %v6358_v35 = vunpack.c.l.b16 %v6294_v32  ;;  %v6359_v36 = vunpack.c.l.b16 %v6295_v61  ;;  %v6197_v5 = vmax.f32 %v6018_v12, %v7474_v44  ;;  %v5977_v22 = vcombine.high %v11750_v55, %v11750_v55 }
 0x403   :  { %v7477_v60 = vrot.slane %v6027_v15, 9  ;;  %v6198_v29 = vmax.f32 %v6026_v30, %v7475_v45  ;;  %v11770_v40 = vsel %vm4116_vm15, %v6405_v21, %v6404_v34  ;;  %v11772_v18 = vrot.slane %v6368_v1, 5 }
 0x404   :  { %v6357_v39 = vunpack.c.l.b16 %v6293_v37  ;;  %v6199_v2 = vmax.f32 %v6025_v63, %v7476_v6  ;;  %v6249_v3 = vadd.f32 %v11693_v19, %v6197_v5  ;;  %v5984_v43 = vrot.slane %v11750_v55, %v12469_v41 }
 0x405   :  { %v6200_v24 = vmax.f32 %v6027_v15, %v7477_v60  ;;  %v6250_v58 = vadd.f32 %v11701_v17, %v6198_v29  ;;  %v6360_v33 = vunpack.c.l.b16 %v6296_v31  ;;  %v6391_v8 = vrot.slane %v6358_v35, 7 }
 0x406   :  { %v6251_v57 = vadd.f32 %v11697_v48, %v6199_v2  ;;  %v5991_v26 = vrot.slane %v5977_v22, %v12469_v41  ;;  %v11780_v62 = vrot.slane %v6359_v36, 6  ;;  %v6281_v42 = vmax.f32 %v6249_v3, 0.0 }
 0x407   :  { %v6252_v25 = vadd.f32 %v11706_v38, %v6200_v24  ;;  %v6282_v53 = vmax.f32 %v6250_v58, 0.0  ;;  %v5992_v47 = vcombine.high %v5984_v43, %v5984_v43  ;;  %v7466_v16 = vrot.slane %v5984_v43, 9 }
 0x408   :  { %v6283_v0 = vmax.f32 %v6251_v57, 0.0  ;;  %v5993_v27 = vcombine.high %v5991_v26, %v5991_v26  ;;  %v6313_v50 = vpack.c.bf16 %v6281_v42, %v6281_v42  ;;  %v7468_v55 = vrot.slane %v5991_v26, 9 }
 0x409   :  { %v6284_v49 = vmax.f32 %v6252_v25, 0.0  ;;  %v6314_v23 = vpack.c.bf16 %v6282_v53, %v6282_v53  ;;  %v7467_v52 = vrot.slane %v5992_v47, 9  ;;  %v6189_v9 = vmax.f32 %v5984_v43, %v7466_v16 }
 0x40a   :  { %v6315_v12 = vpack.c.bf16 %v6283_v0, %v6283_v0  ;;  %v7469_v28 = vrot.slane %v5993_v27, 9  ;;  %v6377_v1 = vunpack.c.l.b16 %v6313_v50  ;;  %v6191_v63 = vmax.f32 %v5991_v26, %v7468_v55 }
 0x40b   :  { %v6316_v13 = vpack.c.bf16 %v6284_v49, %v6284_v49  ;;  %v6378_v21 = vunpack.c.l.b16 %v6314_v23  ;;  %v6190_v46 = vmax.f32 %v5992_v47, %v7467_v52  ;;  %v6241_v32 = vadd.f32 %v11693_v19, %v6189_v9 }
 0x40c   :  { %v6379_v30 = vunpack.c.l.b16 %v6315_v12  ;;  %v6192_v37 = vmax.f32 %v5993_v27, %v7469_v28  ;;  %v6243_v15 = vadd.f32 %v11697_v48, %v6191_v63  ;;  %v5900_v44 = vmax.f32 %v11723_v14, %v11725_v11 }
 0x40d   :  { %v6380_v61 = vunpack.c.l.b16 %v6316_v13  ;;  %v6421_v34 = vrot.slane %v6378_v21, 7  ;;  %v6242_v31 = vadd.f32 %v11701_v17, %v6190_v46  ;;  %v6273_v36 = vmax.f32 %v6241_v32, 0.0 }
 0x40e   :  { %v6423_v45 = vrot.slane %v6379_v30, 6  ;;  %v6244_v35 = vadd.f32 %v11706_v38, %v6192_v37  ;;  %v11790_v6 = vsel %vm4113_vm14, %v6391_v8, %v6357_v39  ;;  %v6275_v5 = vmax.f32 %v6243_v15, 0.0 }
 0x40f   :  { %v6422_v60 = vsel %vm4113_vm14, %v6421_v34, %v6377_v1  ;;  %v6028_v29 = vcombine.high %v5900_v44, %v5900_v44  ;;  %v11793_v22 = vrot.slane %v6360_v33, 5  ;;  %v6274_v2 = vmax.f32 %v6242_v31, 0.0 }
 0x410   :  { %v6276_v24 = vmax.f32 %v6244_v35, 0.0  ;;  %v6305_v3 = vpack.c.bf16 %v6273_v36, %v6273_v36  ;;  %v6307_v58 = vpack.c.bf16 %v6275_v5, %v6275_v5  ;;  %v6035_v14 = vrot.slane %v5900_v44, %v12469_v41 }
 0x411   :  { %v6042_v11 = vrot.slane %v6028_v29, %v12469_v41  ;;  %v5898_v43 = vmax.f32 %v11728_v4, %v11730_v10  ;;  %v11800_v39 = vsel %vm4116_vm15, %v6423_v45, %v6422_v60  ;;  %v11802_v8 = vrot.slane %v6380_v61, 5 }
 0x412   :  { %v6306_v57 = vpack.c.bf16 %v6274_v2, %v6274_v2  ;;  %v6308_v26 = vpack.c.bf16 %v6276_v24, %v6276_v24  ;;  %v6369_v33 = vunpack.c.l.b16 %v6305_v3  ;;  %v6043_v25 = vcombine.high %v6035_v14, %v6035_v14 }
 0x413   :  { %v6044_v42 = vcombine.high %v6042_v11, %v6042_v11  ;;  %v7478_v53 = vrot.slane %v6035_v14, 9  ;;  %v6371_v47 = vunpack.c.l.b16 %v6307_v58  ;;  %v7480_v27 = vrot.slane %v6042_v11, 9 }
 0x414   :  { %v6370_v0 = vunpack.c.l.b16 %v6306_v57  ;;  %v5994_v16 = vcombine.high %v5898_v43, %v5898_v43  ;;  %v6372_v49 = vunpack.c.l.b16 %v6308_v26  ;;  %v7479_v50 = vrot.slane %v6043_v25, 9 }
 0x415   :  { %v7481_v23 = vrot.slane %v6044_v42, 9  ;;  %v6201_v55 = vmax.f32 %v6035_v14, %v7478_v53  ;;  %v6203_v10 = vmax.f32 %v6042_v11, %v7480_v27  ;;  %v6001_v12 = vrot.slane %v5898_v43, %v12469_v41 }
 0x416   :  { %v6409_v4 = vrot.slane %v6370_v0, 7  ;;  %v11808_v52 = vsel %vm4119_vm0, %v11756_v54, %v11761_v51  ;;  %v6202_v28 = vmax.f32 %v6043_v25, %v7479_v50  ;;  %v6008_v1 = vrot.slane %v5994_v16, %v12469_v41 }
 0x417   :  { %v6204_v9 = vmax.f32 %v6044_v42, %v7481_v23  ;;  %v6253_v13 = vadd.f32 %v11693_v19, %v6201_v55  ;;  %v6411_v21 = vrot.slane %v6371_v47, 6  ;;  %v6255_v63 = vadd.f32 %v11697_v48, %v6203_v10 }
 0x418   :  { %v6009_v30 = vcombine.high %v6001_v12, %v6001_v12  ;;  %v7470_v46 = vrot.slane %v6001_v12, 9  ;;  %v6413_v37 = vrot.slane %v6372_v49, 5  ;;  %v6254_v32 = vadd.f32 %v11701_v17, %v6202_v28 }
 0x419   :  { %v6256_v61 = vadd.f32 %v11706_v38, %v6204_v9  ;;  %v6285_v34 = vmax.f32 %v6253_v13, 0.0  ;;  %v6287_v15 = vmax.f32 %v6255_v63, 0.0  ;;  %v6010_v54 = vcombine.high %v6008_v1, %v6008_v1 }
 0x41a   :  { %v7471_v51 = vrot.slane %v6009_v30, 9  ;;  %v7472_v44 = vrot.slane %v6008_v1, 9  ;;  %v6410_v45 = vsel %vm4113_vm14, %v6409_v4, %v6369_v33  ;;  %v6286_v31 = vmax.f32 %v6254_v32, 0.0 }
 0x41b   :  { %v6288_v35 = vmax.f32 %v6256_v61, 0.0  ;;  %v6193_v36 = vmax.f32 %v6001_v12, %v7470_v46  ;;  %v6319_v60 = vpack.c.bf16 %v6287_v15, %v6287_v15  ;;  %v7473_v5 = vrot.slane %v6010_v54, 9 }
 0x41c   :  { %v6194_v29 = vmax.f32 %v6009_v30, %v7471_v51  ;;  %v6195_v2 = vmax.f32 %v6008_v1, %v7472_v44  ;;  %v6317_v24 = vpack.c.bf16 %v6285_v34, %v6285_v34  ;;  %v6318_v3 = vpack.c.bf16 %v6286_v31, %v6286_v31  ;;  %v8675_v31 = vld [vmem:[%s11941_s7 + $0x78] sm:$0xff]  }
 0x41d   :  { %v6320_v58 = vpack.c.bf16 %v6288_v35, %v6288_v35  ;;  %v6245_v14 = vadd.f32 %v11693_v19, %v6193_v36  ;;  %v6383_v11 = vunpack.c.l.b16 %v6319_v60  ;;  %v6196_v43 = vmax.f32 %v6010_v54, %v7473_v5  ;;  %7766 = vmatprep.subr.bf16.mxu0 %v8675_v31 }
 0x41e   :  { %v6246_v57 = vadd.f32 %v11701_v17, %v6194_v29  ;;  %v6247_v26 = vadd.f32 %v11697_v48, %v6195_v2  ;;  %v6412_v33 = vsel %vm4116_vm15, %v6411_v21, %v6410_v45  ;;  %v6382_v25 = vunpack.c.l.b16 %v6318_v3  ;;  %7767 = vmatpush3.bf16.msra.mxu0 %v8676_v59  ;;  %v8677_v2 = vld [vmem:[%s11943_s9] sm:$0xff]  }
 0x41f   :  { %v6384_v42 = vunpack.c.l.b16 %v6320_v58  ;;  %v6277_v53 = vmax.f32 %v6245_v14, 0.0  ;;  %v6429_v0 = vrot.slane %v6383_v11, 6  ;;  %v6248_v47 = vadd.f32 %v11706_v38, %v6196_v43  ;;  %v8678_v14 = vld [vmem:[%s11943_s9 + $0x8] sm:$0xff]  }
 0x420   :  { %v6278_v27 = vmax.f32 %v6246_v57, 0.0  ;;  %v6279_v16 = vmax.f32 %v6247_v26, 0.0  ;;  %v6381_v49 = vunpack.c.l.b16 %v6317_v24  ;;  %v6427_v50 = vrot.slane %v6382_v25, 7  ;;  %v8679_v25 = vld [vmem:[%s11943_s9 + $0x10] sm:$0xff]  }
 0x421   :  { %v6431_v23 = vrot.slane %v6384_v42, 5  ;;  %v6309_v19 = vpack.c.bf16 %v6277_v53, %v6277_v53  ;;  %v6280_v55 = vmax.f32 %v6248_v47, 0.0  ;;  %v6402_v48 = vsel %vm4119_vm0, %v11738_v20, %v11741_v7  ;;  %v8680_v42 = vld [vmem:[%s11943_s9 + $0x18] sm:$0xff]   ;;  %v8681_v53 = vld [vmem:[%s11943_s9 + $0x20] sm:$0xff]  }
 0x422   :  { %v6310_v4 = vpack.c.bf16 %v6278_v27, %v6278_v27  ;;  %v6311_v10 = vpack.c.bf16 %v6279_v16, %v6279_v16  ;;  %v6428_v17 = vsel %vm4113_vm14, %v6427_v50, %v6381_v49  ;;  %v6408_v12 = vsel %vm4119_vm0, %v11772_v18, %v11770_v40  ;;  %v8683_v50 = vld [vmem:[%s11943_s9 + $0x30] sm:$0xff]  }
 0x423   :  { %v6414_v38 = vsel %vm4119_vm0, %v6413_v37, %v6412_v33  ;;  %v6426_v28 = vsel %vm4119_vm0, %v11802_v8, %v11800_v39  ;;  %v6430_v9 = vsel %vm4116_vm15, %v6429_v0, %v6428_v17  ;;  %v6312_v13 = vpack.c.bf16 %v6280_v55, %v6280_v55  ;;  %v8682_v0 = vld [vmem:[%s11943_s9 + $0x28] sm:$0xff]  }
 0x424   :  { %v6374_v1 = vunpack.c.l.b16 %v6310_v4  ;;  %v6375_v21 = vunpack.c.l.b16 %v6311_v10  ;;  %v6373_v63 = vunpack.c.l.b16 %v6309_v19  ;;  %v6432_v20 = vsel %vm4119_vm0, %v6431_v23, %v6430_v9  ;;  %v8684_v23 = vld [vmem:[%s11943_s9 + $0x38] sm:$0xff]   ;;  %v8685_v19 = vld [vmem:[%s11944_s11] sm:$0xff]   ;;  %v8686_v55 = vld [vmem:[%s11944_s11 + $0x8] sm:$0xff]  }
 0x425   :  { %v7483_v7 = vpack.c.b16 %v6414_v38, %v11808_v52  ;;  %v7484_v30 = vpack.c.b16 %v6426_v28, %v6402_v48  ;;  %v6376_v46 = vunpack.c.l.b16 %v6312_v13  ;;  %v7486_v18 = vpack.c.b16 %v6432_v20, %v6408_v12  ;;  %v12470_v52 = vld [vmem:[#allocation10_spill] sm:$0xff]  ;;  %v8687_v4 = vld [vmem:[%s11944_s11 + $0x10] sm:$0xff]   ;;  %v8688_v10 = vld [vmem:[%s11944_s11 + $0x18] sm:$0xff]  }
 0x426   :  { %v6415_v32 = vrot.slane %v6374_v1, 7  ;;  %v6417_v40 = vrot.slane %v6375_v21, 6  ;;  %v6394_v37 = vsel %vm4116_vm15, %v11780_v62, %v11790_v6  ;;  %v6471_v51 = vsub.s32 %v6468_v56, %v12470_v52  ;;  %v8689_v48 = vld [vmem:[%s11944_s11 + $0x20] sm:$0xff]   ;;  %v8690_v17 = vld [vmem:[%s11944_s11 + $0x28] sm:$0xff]  }
 0x427   :  { %v6456_v39 = vrot.slane %v7483_v7, %v12469_v41  ;;  %v6464_v8 = vrot.slane %v7484_v30, %v12469_v41  ;;  %v6419_v34 = vrot.slane %v6376_v46, 5  ;;  %v6396_v44 = vsel %vm4119_vm0, %v11793_v22, %v6394_v37  ;;  %v7487_v38 = vld [vmem:[%s11945_s8] ss:$0 sm:$0xff]  ;;  %v8691_v7 = vld [vmem:[%s11944_s11 + $0x30] sm:$0xff]   ;;  %v8692_v30 = vld [vmem:[%s11944_s11 + $0x38] sm:$0xff]  }
 0x428   :  { %v6416_v61 = vsel %vm4113_vm14, %v6415_v32, %v6373_v63  ;;  %v6489_v6 = vrot.slane %v7486_v18, %v12469_v41  ;;  %v8728_v22 = vmov 0   ;;  %v8729_v29 = vmov 0.0   ;;  %v7504_v46 = vld [vmem:[%s11946_s10] ss:$0 sm:$0xff] }
 0x429   :  { %v6418_v15 = vsel %vm4116_vm15, %v6417_v40, %v6416_v61  ;;  %v6465_v54 = vcombine.low %v6456_v39, %v6464_v8  ;;  %8252 = vmatprep.subr.bf16.mxu1 %v8729_v29  ;;  %8272 = vmatprep.subr.bf16.mxu0 %v8729_v29 }
 0x42a   :  { %v6420_v45 = vsel %vm4119_vm0, %v6419_v34, %v6418_v15  ;;  %8253 = vmatpush3.bf16.msra.mxu1 %v8677_v2  ;;  %8268 = vmatprep.mubr.msk.bf16.mxu1 %vm8731_vm8, %v8729_v29  ;;  %v12471_v34 = vlaneseq }
 0x42b   :  { %v7485_v62 = vpack.c.b16 %v6420_v45, %v6396_v44  ;;  %v6472_v35 = vrot.slane %v6465_v54, %v6471_v51  ;;  %8254 = vmatprep.subr.bf16.mxu1 %v8729_v29  ;;  %v7513_v54 = vld [vmem:[%s11947_s12] ss:$0 sm:$0xff] }
 0x42c   :  { %v6926_v15 = vand.u32 127, %v12471_v34 }
 0x42d   :  { %v6481_v36 = vrot.slane %v7485_v62, %v12469_v41  ;;  %v6473_v60 = vcombine.high %v6472_v35, %v8728_v22  ;;  %v6502_v24 = vshrl.u32 %v6472_v35, 16 }
 0x42e   :  { %8255 = vmatpush3.bf16.msra.mxu1 %v8678_v14  ;;  %vm6927_vm9 = vcmp.lt.s32.totalorder %v6926_v15, 10 }
 0x42f   :  { %v6490_v56 = vcombine.low %v6481_v36, %v6489_v6  ;;  %v6508_v11 = vshrl.u32 %v6473_v60, 16  ;;  %8256 = vmatprep.subr.bf16.mxu1 %v8729_v29 }
 0x431   :  { %v6497_v5 = vrot.slane %v6490_v56, %v6471_v51 }
 0x432   :  { %8257 = vmatpush3.bf16.msra.mxu1 %v8679_v25 }
 0x433   :  { %v6498_v41 = vcombine.high %v6497_v5, %v8728_v22  ;;  %v6503_v3 = vshrl.u32 %v6497_v5, 16  ;;  %v6501_v58 = vpack.i.b16 %v6497_v5, %v6472_v35  ;;  %8258 = vmatprep.subr.bf16.mxu1 %v8729_v29 }
 0x435   :  { %v6509_v43 = vshrl.u32 %v6498_v41, 16  ;;  %v6504_v57 = vpack.i.b16 %v6503_v3, %v6502_v24  ;;  %v6507_v26 = vpack.i.b16 %v6498_v41, %v6473_v60 }
 0x436   :  { %8259 = vmatpush3.bf16.msra.mxu1 %v8680_v42 }
 0x437   :  { %v6510_v33 = vpack.i.b16 %v6509_v43, %v6508_v11  ;;  %8260 = vmatprep.subr.bf16.mxu1 %v8729_v29 }
 0x439   :  { %6513 = vrot.lane.b32.xlu0 %v6510_v33, %s8730_s3 }
 0x43a   :  { %8261 = vmatpush3.bf16.msra.mxu1 %v8681_v53 }
 0x43b   :  { %8262 = vmatprep.subr.bf16.mxu1 %v8729_v29 }
 0x43d   :  { %6511 = vrot.lane.b32.xlu0 %v6504_v57, %s8730_s3 }
 0x43e   :  { %8263 = vmatpush3.bf16.msra.mxu1 %v8682_v0 }
 0x43f   :  { %8264 = vmatprep.subr.bf16.mxu1 %v8729_v29 }
 0x442   :  { %8265 = vmatpush3.bf16.msra.mxu1 %v8683_v50 }
 0x443   :  { %8266 = vmatprep.subr.bf16.mxu1 %v8729_v29 }
 0x446   :  { %8267 = vmatpush3.bf16.msra.mxu1 %v8684_v23 }
 0x4ab   :  { %v6514_v47 = vpop.permute.xlu0 %6513 }
 0x4ac   :  { %v6522_v27 = vsel %vm6515_vm7, %v6507_v26, %v6514_v47 }
 0x4ad   :  { %6691 = vmatprep.mubr.bf16.mxu0 %v6522_v27 }
 0x4af   :  { %v6512_v16 = vpop.permute.xlu0 %6511 }
 0x4b0   :  { %v6518_v49 = vsel %vm6515_vm7, %v6501_v58, %v6512_v16 }
 0x4b1   :  { %6692 = vmatmul.mubr.bf16.vlgmr.msra.gmra.mrb[32].mxu0 %v6518_v49 }
 0x4b2   :  { %8288 = vmatprep.mubr.msk.bf16.mxu0 %vm8731_vm8, %v8729_v29  ;;  %8273 = vmatpush3.bf16.msra.mxu0 %v8685_v19 }
 0x4b3   :  { %8274 = vmatprep.subr.bf16.mxu0 %v8729_v29 }
 0x4b6   :  { %8275 = vmatpush3.bf16.msra.mxu0 %v8686_v55 }
 0x4b7   :  { %8276 = vmatprep.subr.bf16.mxu0 %v8729_v29 }
 0x4ba   :  { %8277 = vmatpush3.bf16.msra.mxu0 %v8687_v4 }
 0x4bb   :  { %8278 = vmatprep.subr.bf16.mxu0 %v8729_v29 }
 0x4be   :  { %8279 = vmatpush3.bf16.msra.mxu0 %v8688_v10 }
 0x4bf   :  { %8280 = vmatprep.subr.bf16.mxu0 %v8729_v29 }
 0x4c2   :  { %8281 = vmatpush3.bf16.msra.mxu0 %v8689_v48 }
 0x4c3   :  { %8282 = vmatprep.subr.bf16.mxu0 %v8729_v29 }
 0x4c6   :  { %8283 = vmatpush3.bf16.msra.mxu0 %v8690_v17 }
 0x4c7   :  { %8284 = vmatprep.subr.bf16.mxu0 %v8729_v29 }
 0x4ca   :  { %8285 = vmatpush3.bf16.msra.mxu0 %v8691_v7 }
 0x4cb   :  { %8286 = vmatprep.subr.bf16.mxu0 %v8729_v29 }
 0x4ce   :  { %8287 = vmatpush3.bf16.msra.mxu0 %v8692_v30 }
 0x584   :  { %v7768_v12 = vpop.f32.mrb[32].mxu0 }
 0x585   :  { %v7769_v28 = vpop.f32.mrb[33].mxu0 }
 0x586   :  { %v7770_v9 = vadd.f32 %v7769_v28, %v7768_v12  ;;  %v7771_v13 = vpop.f32.mrb[34].mxu0 }
 0x587   :  { %v7772_v1 = vpop.f32.mrb[35].mxu0 }
 0x588   :  { %v6694_v21 = vadd.f32 %v7770_v9, %v7487_v38 }
 0x58a   :  { %v6699_v63 = vmax.f32 %v6694_v21, 0.0 }
 0x58c   :  { %v6700_v20 = vpack.c.bf16 %v6699_v63, %v6699_v63 }
 0x58e   :  { %8269 = vmatmul.mubr.bf16.vlgmr.msra.gmra.mrb[40].mxu1 %v6700_v20 }
 0x661   :  { %v6806_v32 = vpop.f32.mrb[40].mxu1 }
 0x662   :  { %v6807_v40 = vadd.f32 %v7504_v46, %v6806_v32  ;;  %v8270_v18 = vpop.f32.mrb[41].mxu1 }
 0x663   :  { %v6809_v37 = vpop.f32.mrb[42].mxu1 }
 0x664   :  { %v6812_v39 = vmax.f32 %v6807_v40, 0.0  ;;  %v8271_v8 = vpop.f32.mrb[43].mxu1 }
 0x666   :  { %v6813_v61 = vpack.c.bf16 %v6812_v39, %v6812_v39 }
 0x668   :  { %8289 = vmatmul.mubr.bf16.vlgmr.msra.gmra.mrb[36].mxu0 %v6813_v61 }
 0x73b   :  { %v6919_v52 = vpop.f32.mrb[36].mxu0 }
 0x73c   :  { %v6920_v51 = vadd.f32 %v7513_v54, %v6919_v52  ;;  %v8290_v44 = vpop.f32.mrb[37].mxu0 }
 0x73d   :  { %v6922_v45 = vpop.f32.mrb[38].mxu0 }
 0x73e   :  { %v8291_v62 = vpop.f32.mrb[39].mxu0  ;;  %v6928_v6 = vsel %vm6927_vm9, %v6920_v51, -1e+30 }
 0x73f   :  { %6929 = vmax.xlane.f32.xlu1 %v6928_v6 }
 0x7cc   :  { %v6930_v31 = vpop.xlane.xlu1 %6929 }
 0x7cd   :  { %v6931_v35 = vsub.f32 %v6928_v6, %v6930_v31 }
 0x7cf   :  { %v6932_v36 = vmul.f32 1.442695, %v6931_v35 }
 0x7d1   :  { %8693 = vpow2.f32 %v6932_v36 }
 0x7db   :  { %v8694_v59 = vpop.eup %8693 }
 0x7dc   :  { %6934 = vadd.xlane.f32.xlu1 %v8694_v59 }
 0x869   :  { %v6935_v56 = vpop.xlane.xlu1 %6934 }
 0x86a   :  { %8695 = vrcp.f32 %v6935_v56 }
 0x874   :  { %v8696_v22 = vpop.eup %8695 }
 0x875   :  { %v6937_v60 = vmul.f32 %v8696_v22, %v8694_v59 }
 0x877   :  { %6938 = vst [vmem:[%s11948_s13] sm:$0xff] %v6937_v60 }

</bundles_post_ra>
